<compile_context>
chip_gen: v7x
topology: tpu7x:2x2x1
jax: 0.10.0
libtpu: 0.0.40
codegen_flags: <defaults>
</compile_context>

<pallas_src>
import functools
import math

import jax
import jax.numpy as jnp
from jax import lax
from jax.experimental import pallas as pl
from jax.experimental.pallas import tpu as pltpu

# ------------------------- synthetic config -------------------------
VOCAB = 256       # config.vocab_size
N_EMBD = 32       # config.n_embd
N_HEAD = 4
HEAD_DIM = N_EMBD // N_HEAD
N_POS = 64
MAX_LEN = 4       # Generator(max_len=4)


# ------------------------- in-kernel helpers -------------------------
def _layer_norm(x, g, b, eps=1e-5):
    mu = jnp.mean(x, axis=-1, keepdims=True)
    var = jnp.mean((x - mu) ** 2, axis=-1, keepdims=True)
    return (x - mu) * lax.rsqrt(var + eps) * g + b


def _gelu(x):
    c = math.sqrt(2.0 / math.pi)
    return 0.5 * x * (1.0 + jnp.tanh(c * (x + 0.044715 * x * x * x)))


# ------------------------- fused generator kernel -------------------------
def _make_generator_kernel(CTX, max_len):
    E, H, D, V = N_EMBD, N_HEAD, HEAD_DIM, VOCAB
    S_PAD = ((CTX + max_len + 7) // 8) * 8         # sublane-padded KV length
    scale = 1.0 / math.sqrt(D)

    def kernel(tok_ref, wte_ref, wte_t_ref, wpe_ref,
               ln1g_ref, ln1b_ref,
               wqkv_ref, bqkv_ref, wproj_ref, bproj_ref,
               ln2g_ref, ln2b_ref,
               wfc_ref, bfc_ref, wmp_ref, bmp_ref,
               lnfg_ref, lnfb_ref,
               mean_ref, gen_ref,
               k_cache, v_cache):
        # v_cache zero-init is load-bearing: masked positions get prob exactly
        # 0 (exp underflow) but 0 * stale-VMEM (possible NaN) = NaN in e@v.
        # k_cache needs no init: its unwritten rows are neutralised by the
        # causal mask before the softmax.
        v_cache[...] = jnp.zeros_like(v_cache)

        def gpt_layer(x, T, past_len):
            """One GPT-2 style layer with KV cache; x is (T, E)."""
            h = _layer_norm(x, ln1g_ref[...], ln1b_ref[...])
            # Fused QKV projection: one (T, E) @ (E, 3E) matmul.
            qkv = jnp.dot(h, wqkv_ref[...],
                          preferred_element_type=jnp.float32) + bqkv_ref[...]
            # Head-packed (lane-dense) KV cache write: one store per step.
            k_cache[past_len:past_len + T, :] = qkv[:, E:2 * E]
            v_cache[past_len:past_len + T, :] = qkv[:, 2 * E:3 * E]
            q = qkv[:, 0:E]
            k_all = k_cache[...]                               # (S_PAD, E)
            v_all = v_cache[...]                               # (S_PAD, E)

            q_pos = past_len + lax.broadcasted_iota(jnp.int32, (T, S_PAD), 0)
            k_pos = lax.broadcasted_iota(jnp.int32, (T, S_PAD), 1)
            causal = k_pos <= q_pos      # also masks the unwritten cache tail

            heads = []
            for hd in range(H):
                lo = hd * D
                hi = lo + D
                scores = lax.dot_general(
                    q[:, lo:hi], k_all[:, lo:hi], (((1,), (1,)), ((), ())),
                    preferred_element_type=jnp.float32) * scale   # (T, S_PAD)
                scores = jnp.where(causal, scores, jnp.float32(-1e9))
                m = jnp.max(scores, axis=-1, keepdims=True)
                e = jnp.exp(scores - m)
                denom = jnp.sum(e, axis=-1, keepdims=True)
                pv = jnp.dot(e, v_all[:, lo:hi],
                             preferred_element_type=jnp.float32)   # (T, D)
                # Deferred softmax normalisation on the EUP slot.
                heads.append(pv * pl.reciprocal(denom, approx=True))
            attn = jnp.concatenate(heads, axis=-1)                 # (T, E)
            # Fused output projection across heads: single (T,32)@(32,32) dot.
            x = x + jnp.dot(attn, wproj_ref[...],
                            preferred_element_type=jnp.float32) + bproj_ref[...]
            h2 = _layer_norm(x, ln2g_ref[...], ln2b_ref[...])
            f = _gelu(jnp.dot(h2, wfc_ref[...],
                              preferred_element_type=jnp.float32) + bfc_ref[...])
            x = x + jnp.dot(f, wmp_ref[...],
                            preferred_element_type=jnp.float32) + bmp_ref[...]
            return _layer_norm(x, lnfg_ref[...], lnfb_ref[...])

        def lm_head_argmax(hidden):
            """Tied lm_head + topk(k=1): returns (idx (1,1) i32, one-hot (1,V))."""
            logits = jnp.dot(hidden, wte_t_ref[...],
                             preferred_element_type=jnp.float32)   # (1, V)
            max_val = jnp.max(logits, axis=-1, keepdims=True)
            iota = lax.broadcasted_iota(jnp.int32, (1, V), 1)
            idx = jnp.min(jnp.where(logits == max_val, iota, jnp.int32(V)),
                          axis=-1, keepdims=True)   # first-max tie-break (torch.topk)
            onehot = (iota == idx).astype(jnp.float32)
            return idx, onehot

        # ---------------- prefill: embed this batch element's context ----------------
        tok = tok_ref[...]                                          # (CTX, 1) int32
        tok_oh = (tok == lax.broadcasted_iota(jnp.int32, (CTX, V), 1)
                  ).astype(jnp.float32)
        x = jnp.dot(tok_oh, wte_ref[...],
                    preferred_element_type=jnp.float32) + wpe_ref[0:CTX, :]
        out = gpt_layer(x, CTX, 0)                                  # (CTX, E)
        hidden = out[CTX - 1:CTX, :]                                # (1, E)
        acc = hidden                                                # running mean acc
        idx, onehot = lm_head_argmax(hidden)

        lane = lax.broadcasted_iota(jnp.int32, (1, max_len), 1)
        gen_row = jnp.where(lane == 0, idx, jnp.zeros((1, max_len), jnp.int32))

        # ---------------- greedy decode steps ----------------
        for step in range(1, max_len):
            past_len = CTX + step - 1
            # embedding of the just-generated token = one-hot @ wte (+ position)
            x = jnp.dot(onehot, wte_ref[...],
                        preferred_element_type=jnp.float32) \
                + wpe_ref[past_len:past_len + 1, :]                 # (1, E)
            hidden = gpt_layer(x, 1, past_len)                      # (1, E)
            acc = acc + hidden
            idx, onehot = lm_head_argmax(hidden)
            gen_row = jnp.where(lane == step, idx, gen_row)

        # Single lane-dense stores at the end.
        mean_ref[0] = acc * jnp.float32(1.0 / max_len)              # hidden_list.mean(1)
        gen_ref[0] = gen_row

    return kernel, S_PAD


def _rep_spec(arr):
    zeros = (0,) * arr.ndim
    return pl.BlockSpec(arr.shape, lambda b, _z=zeros: _z)


# ------------------------- Generator.forward -------------------------
@functools.partial(jax.jit, static_argnames=("max_len", "train", "return_path"))
def generator_forward(params, inputs, max_len=MAX_LEN, train=False,
                      return_path=False):
    # context_len = inputs.shape[1]  (original module prints it; omitted)
    # torch.no_grad(): inference only — no gradients taken here anyway.
    B, CTX = inputs.shape
    E = N_EMBD

    wte = params["wte"]                       # (V, E) — embedding one-hot matmul
    wte_t = wte.T                             # (E, V) — lm_head, one-time transpose

    args = (
        inputs.reshape(B * CTX, 1).astype(jnp.int32),
        wte, wte_t, params["wpe"],
        params["ln1_g"].reshape(1, E), params["ln1_b"].reshape(1, E),
        params["w_qkv"], params["b_qkv"].reshape(1, 3 * E),
        params["w_proj"], params["b_proj"].reshape(1, E),
        params["ln2_g"].reshape(1, E), params["ln2_b"].reshape(1, E),
        params["w_fc"], params["b_fc"].reshape(1, 4 * E),
        params["w_mproj"], params["b_mproj"].reshape(1, E),
        params["lnf_g"].reshape(1, E), params["lnf_b"].reshape(1, E),
    )

    kernel, s_pad = _make_generator_kernel(CTX, max_len)

    in_specs = [pl.BlockSpec((CTX, 1), lambda b: (b, 0))] \
        + [_rep_spec(a) for a in args[1:]]

    mean_out, gen_out = pl.pallas_call(
        kernel,
        grid=(B,),
        out_shape=(
            jax.ShapeDtypeStruct((B, 1, E), jnp.float32),
            jax.ShapeDtypeStruct((B, 1, max_len), jnp.int32),
        ),
        in_specs=in_specs,
        out_specs=(
            pl.BlockSpec((1, 1, E), lambda b: (b, 0, 0)),
            pl.BlockSpec((1, 1, max_len), lambda b: (b, 0, 0)),
        ),
        scratch_shapes=[
            pltpu.VMEM((s_pad, E), jnp.float32),   # K cache (heads packed in lanes)
            pltpu.VMEM((s_pad, E), jnp.float32),   # V cache
        ],
        compiler_params=pltpu.CompilerParams(
            dimension_semantics=("parallel",)),    # batch across v7x TensorCores
    )(*args)

    mean_hidden = mean_out[:, 0, :]
    gen = gen_out[:, 0, :]
    generated = jnp.concatenate([inputs, gen], axis=1)   # (B, CTX + max_len)
    if return_path:
        return mean_hidden, generated
    return mean_hidden


# ------------------------- parameter init -------------------------
def init_params(key):
    ks = jax.random.split(key, 8)
    s = 0.02
    return {
        "wte": jax.random.normal(ks[0], (VOCAB, N_EMBD), jnp.float32) * s,
        "wpe": jax.random.normal(ks[1], (N_POS, N_EMBD), jnp.float32) * s,
        "ln1_g": jnp.ones((N_EMBD,), jnp.float32),
        "ln1_b": jnp.zeros((N_EMBD,), jnp.float32),
        "w_qkv": jax.random.normal(ks[2], (N_EMBD, 3 * N_EMBD), jnp.float32) * s,
        "b_qkv": jnp.zeros((3 * N_EMBD,), jnp.float32),
        "w_proj": jax.random.normal(ks[3], (N_EMBD, N_EMBD), jnp.float32) * s,
        "b_proj": jnp.zeros((N_EMBD,), jnp.float32),
        "ln2_g": jnp.ones((N_EMBD,), jnp.float32),
        "ln2_b": jnp.zeros((N_EMBD,), jnp.float32),
        "w_fc": jax.random.normal(ks[4], (N_EMBD, 4 * N_EMBD), jnp.float32) * s,
        "b_fc": jnp.zeros((4 * N_EMBD,), jnp.float32),
        "w_mproj": jax.random.normal(ks[5], (4 * N_EMBD, N_EMBD), jnp.float32) * s,
        "b_mproj": jnp.zeros((N_EMBD,), jnp.float32),
        "lnf_g": jnp.ones((N_EMBD,), jnp.float32),
        "lnf_b": jnp.zeros((N_EMBD,), jnp.float32),
    }


if __name__ == "__main__":
    key = jax.random.PRNGKey(0)
    pkey, ikey = jax.random.split(key)
    params = init_params(pkey)

    batch, context_len = 2, 8
    inputs = jax.random.randint(ikey, (batch, context_len), 0, VOCAB,
                                dtype=jnp.int32)

    mean_hidden, generated = generator_forward(params, inputs,
                                               max_len=MAX_LEN,
                                               return_path=True)
    jax.block_until_ready(mean_hidden)
    jax.block_until_ready(generated)

    assert mean_hidden.shape == (batch, N_EMBD)
    assert mean_hidden.dtype == jnp.float32
    assert generated.shape == (batch, context_len + MAX_LEN)
    assert generated.dtype == jnp.int32
    assert bool(jnp.all(jnp.isfinite(mean_hidden)))
    assert bool(jnp.all((generated >= 0) & (generated < VOCAB)))
    print("KERNEL_OK")
</pallas_src>

<mosaic_0001>
module attributes {stable_mosaic.version = 11 : i64} {
  func.func @kernel(%arg0: i32, %arg1: memref<8x1xi32, #tpu.memory_space<vmem>>, %arg2: memref<256x32xf32, #tpu.memory_space<vmem>>, %arg3: memref<32x256xf32, #tpu.memory_space<vmem>>, %arg4: memref<64x32xf32, #tpu.memory_space<vmem>>, %arg5: memref<1x32xf32, #tpu.memory_space<vmem>>, %arg6: memref<1x32xf32, #tpu.memory_space<vmem>>, %arg7: memref<32x96xf32, #tpu.memory_space<vmem>>, %arg8: memref<1x96xf32, #tpu.memory_space<vmem>>, %arg9: memref<32x32xf32, #tpu.memory_space<vmem>>, %arg10: memref<1x32xf32, #tpu.memory_space<vmem>>, %arg11: memref<1x32xf32, #tpu.memory_space<vmem>>, %arg12: memref<1x32xf32, #tpu.memory_space<vmem>>, %arg13: memref<32x128xf32, #tpu.memory_space<vmem>>, %arg14: memref<1x128xf32, #tpu.memory_space<vmem>>, %arg15: memref<128x32xf32, #tpu.memory_space<vmem>>, %arg16: memref<1x32xf32, #tpu.memory_space<vmem>>, %arg17: memref<1x32xf32, #tpu.memory_space<vmem>>, %arg18: memref<1x32xf32, #tpu.memory_space<vmem>>, %arg19: memref<1x1x32xf32, #tpu.memory_space<vmem>>, %arg20: memref<1x1x4xi32, #tpu.memory_space<vmem>>, %arg21: memref<16x32xf32, #tpu.memory_space<vmem>>, %arg22: memref<16x32xf32, #tpu.memory_space<vmem>>) attributes {dimension_semantics = [#tpu.dimension_semantics<parallel>], iteration_bounds = array<i64: 2>, scalar_prefetch = 0 : i64, scratch_operands = 2 : i64, tpu.core_type = #tpu.core_type<tc>, window_params = [{transform_indices = @transform_0, window_bounds = array<i64: 8, 1>}, {pipeline_mode = #tpu.pipeline_mode<synchronous>, transform_indices = @transform_1, window_bounds = array<i64: 256, 32>}, {pipeline_mode = #tpu.pipeline_mode<synchronous>, transform_indices = @transform_2, window_bounds = array<i64: 32, 256>}, {pipeline_mode = #tpu.pipeline_mode<synchronous>, transform_indices = @transform_3, window_bounds = array<i64: 64, 32>}, {pipeline_mode = #tpu.pipeline_mode<synchronous>, transform_indices = @transform_4, window_bounds = array<i64: 1, 32>}, {pipeline_mode = #tpu.pipeline_mode<synchronous>, transform_indices = @transform_5, window_bounds = array<i64: 1, 32>}, {pipeline_mode = #tpu.pipeline_mode<synchronous>, transform_indices = @transform_6, window_bounds = array<i64: 32, 96>}, {pipeline_mode = #tpu.pipeline_mode<synchronous>, transform_indices = @transform_7, window_bounds = array<i64: 1, 96>}, {pipeline_mode = #tpu.pipeline_mode<synchronous>, transform_indices = @transform_8, window_bounds = array<i64: 32, 32>}, {pipeline_mode = #tpu.pipeline_mode<synchronous>, transform_indices = @transform_9, window_bounds = array<i64: 1, 32>}, {pipeline_mode = #tpu.pipeline_mode<synchronous>, transform_indices = @transform_10, window_bounds = array<i64: 1, 32>}, {pipeline_mode = #tpu.pipeline_mode<synchronous>, transform_indices = @transform_11, window_bounds = array<i64: 1, 32>}, {pipeline_mode = #tpu.pipeline_mode<synchronous>, transform_indices = @transform_12, window_bounds = array<i64: 32, 128>}, {pipeline_mode = #tpu.pipeline_mode<synchronous>, transform_indices = @transform_13, window_bounds = array<i64: 1, 128>}, {pipeline_mode = #tpu.pipeline_mode<synchronous>, transform_indices = @transform_14, window_bounds = array<i64: 128, 32>}, {pipeline_mode = #tpu.pipeline_mode<synchronous>, transform_indices = @transform_15, window_bounds = array<i64: 1, 32>}, {pipeline_mode = #tpu.pipeline_mode<synchronous>, transform_indices = @transform_16, window_bounds = array<i64: 1, 32>}, {pipeline_mode = #tpu.pipeline_mode<synchronous>, transform_indices = @transform_17, window_bounds = array<i64: 1, 32>}, {transform_indices = @transform_18, window_bounds = array<i64: 1, 1, 32>}, {transform_indices = @transform_19, window_bounds = array<i64: 1, 1, 4>}]} {
    %cst = arith.constant 0.000000e+00 : f32
    %0 = vector.broadcast %cst : f32 to vector<16x32xf32>
    %c0 = arith.constant 0 : index
    %c0_0 = arith.constant 0 : index
    %1 = vector.load %arg22[%c0, %c0_0] : memref<16x32xf32, #tpu.memory_space<vmem>>, vector<16x32xf32>
    tpu.vector_store %arg22[%c0, %c0_0], %0 {strides = array<i32>} : memref<16x32xf32, #tpu.memory_space<vmem>>, vector<16x32xf32>,
    %c0_1 = arith.constant 0 : index
    %c0_2 = arith.constant 0 : index
    %2 = vector.load %arg1[%c0_1, %c0_2] : memref<8x1xi32, #tpu.memory_space<vmem>>, vector<8x1xi32>
    %3 = tpu.iota {dimensions = array<i32: 1>} : vector<8x256xi32>
    %4 = vector.broadcast %2 : vector<8x1xi32> to vector<8x256xi32>
    %5 = arith.cmpi eq, %4, %3 : vector<8x256xi32>
    %6 = arith.extui %5 : vector<8x256xi1> to vector<8x256xi32>
    %7 = arith.sitofp %6 : vector<8x256xi32> to vector<8x256xf32>
    %c0_3 = arith.constant 0 : index
    %c0_4 = arith.constant 0 : index
    %8 = vector.load %arg2[%c0_3, %c0_4] : memref<256x32xf32, #tpu.memory_space<vmem>>, vector<256x32xf32>
    %cst_5 = arith.constant dense<0.000000e+00> : vector<8x32xf32>
    %9 = tpu.matmul %7, %8, %cst_5 {dimension_numbers = #tpu.dot_dimension_numbers<[1], [0], [0], [1], [0, 0, 1, 1], [], []>} : vector<8x256xf32>, vector<256x32xf32>, vector<8x32xf32> -> vector<8x32xf32>
    %c0_6 = arith.constant 0 : index
    %c0_7 = arith.constant 0 : index
    %10 = vector.load %arg4[%c0_6, %c0_7] : memref<64x32xf32, #tpu.memory_space<vmem>>, vector<8x32xf32>
    %11 = arith.addf %9, %10 : vector<8x32xf32>
    %c0_8 = arith.constant 0 : index
    %c0_9 = arith.constant 0 : index
    %12 = vector.load %arg5[%c0_8, %c0_9] : memref<1x32xf32, #tpu.memory_space<vmem>>, vector<1x32xf32>
    %c0_10 = arith.constant 0 : index
    %c0_11 = arith.constant 0 : index
    %13 = vector.load %arg6[%c0_10, %c0_11] : memref<1x32xf32, #tpu.memory_space<vmem>>, vector<1x32xf32>
    %cst_12 = arith.constant dense<0.000000e+00> : vector<8xf32>
    %14 = vector.multi_reduction <add>, %11, %cst_12 [1] : vector<8x32xf32> to vector<8xf32>
    %15 = vector.shape_cast %14 : vector<8xf32> to vector<8x1xf32>
    %cst_13 = arith.constant 3.200000e+01 : f32
    %16 = vector.broadcast %cst_13 : f32 to vector<8x1xf32>
    %17 = arith.divf %15, %16 : vector<8x1xf32>
    %18 = vector.broadcast %17 : vector<8x1xf32> to vector<8x32xf32>
    %19 = arith.subf %11, %18 : vector<8x32xf32>
    %20 = arith.mulf %19, %19 : vector<8x32xf32>
    %cst_14 = arith.constant dense<0.000000e+00> : vector<8xf32>
    %21 = vector.multi_reduction <add>, %20, %cst_14 [1] : vector<8x32xf32> to vector<8xf32>
    %22 = vector.shape_cast %21 : vector<8xf32> to vector<8x1xf32>
    %cst_15 = arith.constant 3.200000e+01 : f32
    %23 = vector.broadcast %cst_15 : f32 to vector<8x1xf32>
    %24 = arith.divf %22, %23 : vector<8x1xf32>
    %25 = vector.broadcast %17 : vector<8x1xf32> to vector<8x32xf32>
    %26 = arith.subf %11, %25 : vector<8x32xf32>
    %cst_16 = arith.constant 9.99999974E-6 : f32
    %27 = vector.broadcast %cst_16 : f32 to vector<8x1xf32>
    %28 = arith.addf %24, %27 : vector<8x1xf32>
    %29 = math.rsqrt %28 : vector<8x1xf32>
    %30 = vector.broadcast %29 : vector<8x1xf32> to vector<8x32xf32>
    %31 = arith.mulf %26, %30 : vector<8x32xf32>
    %32 = vector.broadcast %12 : vector<1x32xf32> to vector<8x32xf32>
    %33 = arith.mulf %31, %32 : vector<8x32xf32>
    %34 = vector.broadcast %13 : vector<1x32xf32> to vector<8x32xf32>
    %35 = arith.addf %33, %34 : vector<8x32xf32>
    %c0_17 = arith.constant 0 : index
    %c0_18 = arith.constant 0 : index
    %36 = vector.load %arg7[%c0_17, %c0_18] : memref<32x96xf32, #tpu.memory_space<vmem>>, vector<32x96xf32>
    %cst_19 = arith.constant dense<0.000000e+00> : vector<8x96xf32>
    %37 = tpu.matmul %35, %36, %cst_19 {dimension_numbers = #tpu.dot_dimension_numbers<[1], [0], [0], [1], [0, 0, 1, 1], [], []>} : vector<8x32xf32>, vector<32x96xf32>, vector<8x96xf32> -> vector<8x96xf32>
    %c0_20 = arith.constant 0 : index
    %c0_21 = arith.constant 0 : index
    %38 = vector.load %arg8[%c0_20, %c0_21] : memref<1x96xf32, #tpu.memory_space<vmem>>, vector<1x96xf32>
    %39 = vector.broadcast %38 : vector<1x96xf32> to vector<8x96xf32>
    %40 = arith.addf %37, %39 : vector<8x96xf32>
    %41 = vector.extract_strided_slice %40 {offsets = [0, 32], sizes = [8, 32], strides = [1, 1]} : vector<8x96xf32> to vector<8x32xf32>
    %c0_22 = arith.constant 0 : index
    %c0_23 = arith.constant 0 : index
    %42 = vector.load %arg21[%c0_22, %c0_23] : memref<16x32xf32, #tpu.memory_space<vmem>>, vector<8x32xf32>
    tpu.vector_store %arg21[%c0_22, %c0_23], %41 {strides = array<i32>} : memref<16x32xf32, #tpu.memory_space<vmem>>, vector<8x32xf32>,
    %43 = vector.extract_strided_slice %40 {offsets = [0, 64], sizes = [8, 32], strides = [1, 1]} : vector<8x96xf32> to vector<8x32xf32>
    %c0_24 = arith.constant 0 : index
    %c0_25 = arith.constant 0 : index
    %44 = vector.load %arg22[%c0_24, %c0_25] : memref<16x32xf32, #tpu.memory_space<vmem>>, vector<8x32xf32>
    tpu.vector_store %arg22[%c0_24, %c0_25], %43 {strides = array<i32>} : memref<16x32xf32, #tpu.memory_space<vmem>>, vector<8x32xf32>,
    %45 = vector.extract_strided_slice %40 {offsets = [0, 0], sizes = [8, 32], strides = [1, 1]} : vector<8x96xf32> to vector<8x32xf32>
    %c0_26 = arith.constant 0 : index
    %c0_27 = arith.constant 0 : index
    %46 = vector.load %arg21[%c0_26, %c0_27] : memref<16x32xf32, #tpu.memory_space<vmem>>, vector<16x32xf32>
    %c0_28 = arith.constant 0 : index
    %c0_29 = arith.constant 0 : index
    %47 = vector.load %arg22[%c0_28, %c0_29] : memref<16x32xf32, #tpu.memory_space<vmem>>, vector<16x32xf32>
    %48 = tpu.iota {dimensions = array<i32: 0>} : vector<8x16xi32>
    %c0_i32 = arith.constant 0 : i32
    %49 = vector.broadcast %c0_i32 : i32 to vector<8x16xi32>
    %50 = arith.addi %49, %48 : vector<8x16xi32>
    %51 = tpu.iota {dimensions = array<i32: 1>} : vector<8x16xi32>
    %52 = arith.cmpi sle, %51, %50 : vector<8x16xi32>
    %53 = vector.extract_strided_slice %45 {offsets = [0, 0], sizes = [8, 8], strides = [1, 1]} : vector<8x32xf32> to vector<8x8xf32>
    %54 = vector.extract_strided_slice %46 {offsets = [0, 0], sizes = [16, 8], strides = [1, 1]} : vector<16x32xf32> to vector<16x8xf32>
    %cst_30 = arith.constant dense<0.000000e+00> : vector<8x16xf32>
    %55 = tpu.matmul %53, %54, %cst_30 {dimension_numbers = #tpu.dot_dimension_numbers<[1], [1], [0], [0], [0, 0, 1, 0], [], []>} : vector<8x8xf32>, vector<16x8xf32>, vector<8x16xf32> -> vector<8x16xf32>
    %cst_31 = arith.constant 0.353553385 : f32
    %56 = vector.broadcast %cst_31 : f32 to vector<8x16xf32>
    %57 = arith.mulf %55, %56 : vector<8x16xf32>
    %cst_32 = arith.constant -1.000000e+09 : f32
    %58 = vector.broadcast %cst_32 : f32 to vector<8x16xf32>
    %59 = arith.select %52, %57, %58 : vector<8x16xi1>, vector<8x16xf32>
    %cst_33 = arith.constant dense<0xFF800000> : vector<8xf32>
    %60 = vector.multi_reduction <maximumf>, %59, %cst_33 [1] : vector<8x16xf32> to vector<8xf32>
    %61 = vector.shape_cast %60 : vector<8xf32> to vector<8x1xf32>
    %62 = vector.broadcast %61 : vector<8x1xf32> to vector<8x16xf32>
    %63 = arith.subf %59, %62 : vector<8x16xf32>
    %64 = math.exp %63 : vector<8x16xf32>
    %cst_34 = arith.constant dense<0.000000e+00> : vector<8xf32>
    %65 = vector.multi_reduction <add>, %64, %cst_34 [1] : vector<8x16xf32> to vector<8xf32>
    %66 = vector.shape_cast %65 : vector<8xf32> to vector<8x1xf32>
    %67 = vector.extract_strided_slice %47 {offsets = [0, 0], sizes = [16, 8], strides = [1, 1]} : vector<16x32xf32> to vector<16x8xf32>
    %cst_35 = arith.constant dense<0.000000e+00> : vector<8x8xf32>
    %68 = tpu.matmul %64, %67, %cst_35 {dimension_numbers = #tpu.dot_dimension_numbers<[1], [0], [0], [1], [0, 0, 1, 1], [], []>} : vector<8x16xf32>, vector<16x8xf32>, vector<8x8xf32> -> vector<8x8xf32>
    %69 = tpu.reciprocal %66 {approx = true} : vector<8x1xf32> -> vector<8x1xf32>
    %70 = vector.broadcast %69 : vector<8x1xf32> to vector<8x8xf32>
    %71 = arith.mulf %68, %70 : vector<8x8xf32>
    %72 = vector.extract_strided_slice %45 {offsets = [0, 8], sizes = [8, 8], strides = [1, 1]} : vector<8x32xf32> to vector<8x8xf32>
    %73 = vector.extract_strided_slice %46 {offsets = [0, 8], sizes = [16, 8], strides = [1, 1]} : vector<16x32xf32> to vector<16x8xf32>
    %cst_36 = arith.constant dense<0.000000e+00> : vector<8x16xf32>
    %74 = tpu.matmul %72, %73, %cst_36 {dimension_numbers = #tpu.dot_dimension_numbers<[1], [1], [0], [0], [0, 0, 1, 0], [], []>} : vector<8x8xf32>, vector<16x8xf32>, vector<8x16xf32> -> vector<8x16xf32>
    %cst_37 = arith.constant 0.353553385 : f32
    %75 = vector.broadcast %cst_37 : f32 to vector<8x16xf32>
    %76 = arith.mulf %74, %75 : vector<8x16xf32>
    %cst_38 = arith.constant -1.000000e+09 : f32
    %77 = vector.broadcast %cst_38 : f32 to vector<8x16xf32>
    %78 = arith.select %52, %76, %77 : vector<8x16xi1>, vector<8x16xf32>
    %cst_39 = arith.constant dense<0xFF800000> : vector<8xf32>
    %79 = vector.multi_reduction <maximumf>, %78, %cst_39 [1] : vector<8x16xf32> to vector<8xf32>
    %80 = vector.shape_cast %79 : vector<8xf32> to vector<8x1xf32>
    %81 = vector.broadcast %80 : vector<8x1xf32> to vector<8x16xf32>
    %82 = arith.subf %78, %81 : vector<8x16xf32>
    %83 = math.exp %82 : vector<8x16xf32>
    %cst_40 = arith.constant dense<0.000000e+00> : vector<8xf32>
    %84 = vector.multi_reduction <add>, %83, %cst_40 [1] : vector<8x16xf32> to vector<8xf32>
    %85 = vector.shape_cast %84 : vector<8xf32> to vector<8x1xf32>
    %86 = vector.extract_strided_slice %47 {offsets = [0, 8], sizes = [16, 8], strides = [1, 1]} : vector<16x32xf32> to vector<16x8xf32>
    %cst_41 = arith.constant dense<0.000000e+00> : vector<8x8xf32>
    %87 = tpu.matmul %83, %86, %cst_41 {dimension_numbers = #tpu.dot_dimension_numbers<[1], [0], [0], [1], [0, 0, 1, 1], [], []>} : vector<8x16xf32>, vector<16x8xf32>, vector<8x8xf32> -> vector<8x8xf32>
    %88 = tpu.reciprocal %85 {approx = true} : vector<8x1xf32> -> vector<8x1xf32>
    %89 = vector.broadcast %88 : vector<8x1xf32> to vector<8x8xf32>
    %90 = arith.mulf %87, %89 : vector<8x8xf32>
    %91 = vector.extract_strided_slice %45 {offsets = [0, 16], sizes = [8, 8], strides = [1, 1]} : vector<8x32xf32> to vector<8x8xf32>
    %92 = vector.extract_strided_slice %46 {offsets = [0, 16], sizes = [16, 8], strides = [1, 1]} : vector<16x32xf32> to vector<16x8xf32>
    %cst_42 = arith.constant dense<0.000000e+00> : vector<8x16xf32>
    %93 = tpu.matmul %91, %92, %cst_42 {dimension_numbers = #tpu.dot_dimension_numbers<[1], [1], [0], [0], [0, 0, 1, 0], [], []>} : vector<8x8xf32>, vector<16x8xf32>, vector<8x16xf32> -> vector<8x16xf32>
    %cst_43 = arith.constant 0.353553385 : f32
    %94 = vector.broadcast %cst_43 : f32 to vector<8x16xf32>
    %95 = arith.mulf %93, %94 : vector<8x16xf32>
    %cst_44 = arith.constant -1.000000e+09 : f32
    %96 = vector.broadcast %cst_44 : f32 to vector<8x16xf32>
    %97 = arith.select %52, %95, %96 : vector<8x16xi1>, vector<8x16xf32>
    %cst_45 = arith.constant dense<0xFF800000> : vector<8xf32>
    %98 = vector.multi_reduction <maximumf>, %97, %cst_45 [1] : vector<8x16xf32> to vector<8xf32>
    %99 = vector.shape_cast %98 : vector<8xf32> to vector<8x1xf32>
    %100 = vector.broadcast %99 : vector<8x1xf32> to vector<8x16xf32>
    %101 = arith.subf %97, %100 : vector<8x16xf32>
    %102 = math.exp %101 : vector<8x16xf32>
    %cst_46 = arith.constant dense<0.000000e+00> : vector<8xf32>
    %103 = vector.multi_reduction <add>, %102, %cst_46 [1] : vector<8x16xf32> to vector<8xf32>
    %104 = vector.shape_cast %103 : vector<8xf32> to vector<8x1xf32>
    %105 = vector.extract_strided_slice %47 {offsets = [0, 16], sizes = [16, 8], strides = [1, 1]} : vector<16x32xf32> to vector<16x8xf32>
    %cst_47 = arith.constant dense<0.000000e+00> : vector<8x8xf32>
    %106 = tpu.matmul %102, %105, %cst_47 {dimension_numbers = #tpu.dot_dimension_numbers<[1], [0], [0], [1], [0, 0, 1, 1], [], []>} : vector<8x16xf32>, vector<16x8xf32>, vector<8x8xf32> -> vector<8x8xf32>
    %107 = tpu.reciprocal %104 {approx = true} : vector<8x1xf32> -> vector<8x1xf32>
    %108 = vector.broadcast %107 : vector<8x1xf32> to vector<8x8xf32>
    %109 = arith.mulf %106, %108 : vector<8x8xf32>
    %110 = vector.extract_strided_slice %45 {offsets = [0, 24], sizes = [8, 8], strides = [1, 1]} : vector<8x32xf32> to vector<8x8xf32>
    %111 = vector.extract_strided_slice %46 {offsets = [0, 24], sizes = [16, 8], strides = [1, 1]} : vector<16x32xf32> to vector<16x8xf32>
    %cst_48 = arith.constant dense<0.000000e+00> : vector<8x16xf32>
    %112 = tpu.matmul %110, %111, %cst_48 {dimension_numbers = #tpu.dot_dimension_numbers<[1], [1], [0], [0], [0, 0, 1, 0], [], []>} : vector<8x8xf32>, vector<16x8xf32>, vector<8x16xf32> -> vector<8x16xf32>
    %cst_49 = arith.constant 0.353553385 : f32
    %113 = vector.broadcast %cst_49 : f32 to vector<8x16xf32>
    %114 = arith.mulf %112, %113 : vector<8x16xf32>
    %cst_50 = arith.constant -1.000000e+09 : f32
    %115 = vector.broadcast %cst_50 : f32 to vector<8x16xf32>
    %116 = arith.select %52, %114, %115 : vector<8x16xi1>, vector<8x16xf32>
    %cst_51 = arith.constant dense<0xFF800000> : vector<8xf32>
    %117 = vector.multi_reduction <maximumf>, %116, %cst_51 [1] : vector<8x16xf32> to vector<8xf32>
    %118 = vector.shape_cast %117 : vector<8xf32> to vector<8x1xf32>
    %119 = vector.broadcast %118 : vector<8x1xf32> to vector<8x16xf32>
    %120 = arith.subf %116, %119 : vector<8x16xf32>
    %121 = math.exp %120 : vector<8x16xf32>
    %cst_52 = arith.constant dense<0.000000e+00> : vector<8xf32>
    %122 = vector.multi_reduction <add>, %121, %cst_52 [1] : vector<8x16xf32> to vector<8xf32>
    %123 = vector.shape_cast %122 : vector<8xf32> to vector<8x1xf32>
    %124 = vector.extract_strided_slice %47 {offsets = [0, 24], sizes = [16, 8], strides = [1, 1]} : vector<16x32xf32> to vector<16x8xf32>
    %cst_53 = arith.constant dense<0.000000e+00> : vector<8x8xf32>
    %125 = tpu.matmul %121, %124, %cst_53 {dimension_numbers = #tpu.dot_dimension_numbers<[1], [0], [0], [1], [0, 0, 1, 1], [], []>} : vector<8x16xf32>, vector<16x8xf32>, vector<8x8xf32> -> vector<8x8xf32>
    %126 = tpu.reciprocal %123 {approx = true} : vector<8x1xf32> -> vector<8x1xf32>
    %127 = vector.broadcast %126 : vector<8x1xf32> to vector<8x8xf32>
    %128 = arith.mulf %125, %127 : vector<8x8xf32>
    %129 = tpu.concatenate %71, %90, %109, %128 in 1 : vector<8x8xf32>, vector<8x8xf32>, vector<8x8xf32>, vector<8x8xf32> -> vector<8x32xf32>
    %c0_54 = arith.constant 0 : index
    %c0_55 = arith.constant 0 : index
    %130 = vector.load %arg9[%c0_54, %c0_55] : memref<32x32xf32, #tpu.memory_space<vmem>>, vector<32x32xf32>
    %cst_56 = arith.constant dense<0.000000e+00> : vector<8x32xf32>
    %131 = tpu.matmul %129, %130, %cst_56 {dimension_numbers = #tpu.dot_dimension_numbers<[1], [0], [0], [1], [0, 0, 1, 1], [], []>} : vector<8x32xf32>, vector<32x32xf32>, vector<8x32xf32> -> vector<8x32xf32>
    %132 = arith.addf %11, %131 : vector<8x32xf32>
    %c0_57 = arith.constant 0 : index
    %c0_58 = arith.constant 0 : index
    %133 = vector.load %arg10[%c0_57, %c0_58] : memref<1x32xf32, #tpu.memory_space<vmem>>, vector<1x32xf32>
    %134 = vector.broadcast %133 : vector<1x32xf32> to vector<8x32xf32>
    %135 = arith.addf %132, %134 : vector<8x32xf32>
    %c0_59 = arith.constant 0 : index
    %c0_60 = arith.constant 0 : index
    %136 = vector.load %arg11[%c0_59, %c0_60] : memref<1x32xf32, #tpu.memory_space<vmem>>, vector<1x32xf32>
    %c0_61 = arith.constant 0 : index
    %c0_62 = arith.constant 0 : index
    %137 = vector.load %arg12[%c0_61, %c0_62] : memref<1x32xf32, #tpu.memory_space<vmem>>, vector<1x32xf32>
    %cst_63 = arith.constant dense<0.000000e+00> : vector<8xf32>
    %138 = vector.multi_reduction <add>, %135, %cst_63 [1] : vector<8x32xf32> to vector<8xf32>
    %139 = vector.shape_cast %138 : vector<8xf32> to vector<8x1xf32>
    %cst_64 = arith.constant 3.200000e+01 : f32
    %140 = vector.broadcast %cst_64 : f32 to vector<8x1xf32>
    %141 = arith.divf %139, %140 : vector<8x1xf32>
    %142 = vector.broadcast %141 : vector<8x1xf32> to vector<8x32xf32>
    %143 = arith.subf %135, %142 : vector<8x32xf32>
    %144 = arith.mulf %143, %143 : vector<8x32xf32>
    %cst_65 = arith.constant dense<0.000000e+00> : vector<8xf32>
    %145 = vector.multi_reduction <add>, %144, %cst_65 [1] : vector<8x32xf32> to vector<8xf32>
    %146 = vector.shape_cast %145 : vector<8xf32> to vector<8x1xf32>
    %cst_66 = arith.constant 3.200000e+01 : f32
    %147 = vector.broadcast %cst_66 : f32 to vector<8x1xf32>
    %148 = arith.divf %146, %147 : vector<8x1xf32>
    %149 = vector.broadcast %141 : vector<8x1xf32> to vector<8x32xf32>
    %150 = arith.subf %135, %149 : vector<8x32xf32>
    %cst_67 = arith.constant 9.99999974E-6 : f32
    %151 = vector.broadcast %cst_67 : f32 to vector<8x1xf32>
    %152 = arith.addf %148, %151 : vector<8x1xf32>
    %153 = math.rsqrt %152 : vector<8x1xf32>
    %154 = vector.broadcast %153 : vector<8x1xf32> to vector<8x32xf32>
    %155 = arith.mulf %150, %154 : vector<8x32xf32>
    %156 = vector.broadcast %136 : vector<1x32xf32> to vector<8x32xf32>
    %157 = arith.mulf %155, %156 : vector<8x32xf32>
    %158 = vector.broadcast %137 : vector<1x32xf32> to vector<8x32xf32>
    %159 = arith.addf %157, %158 : vector<8x32xf32>
    %c0_68 = arith.constant 0 : index
    %c0_69 = arith.constant 0 : index
    %160 = vector.load %arg13[%c0_68, %c0_69] : memref<32x128xf32, #tpu.memory_space<vmem>>, vector<32x128xf32>
    %cst_70 = arith.constant dense<0.000000e+00> : vector<8x128xf32>
    %161 = tpu.matmul %159, %160, %cst_70 {dimension_numbers = #tpu.dot_dimension_numbers<[1], [0], [0], [1], [0, 0, 1, 1], [], []>} : vector<8x32xf32>, vector<32x128xf32>, vector<8x128xf32> -> vector<8x128xf32>
    %c0_71 = arith.constant 0 : index
    %c0_72 = arith.constant 0 : index
    %162 = vector.load %arg14[%c0_71, %c0_72] : memref<1x128xf32, #tpu.memory_space<vmem>>, vector<1x128xf32>
    %163 = vector.broadcast %162 : vector<1x128xf32> to vector<8x128xf32>
    %164 = arith.addf %161, %163 : vector<8x128xf32>
    %cst_73 = arith.constant 5.000000e-01 : f32
    %165 = vector.broadcast %cst_73 : f32 to vector<8x128xf32>
    %166 = arith.mulf %165, %164 : vector<8x128xf32>
    %cst_74 = arith.constant 4.471500e-02 : f32
    %167 = vector.broadcast %cst_74 : f32 to vector<8x128xf32>
    %168 = arith.mulf %167, %164 : vector<8x128xf32>
    %169 = arith.mulf %168, %164 : vector<8x128xf32>
    %170 = arith.mulf %169, %164 : vector<8x128xf32>
    %171 = arith.addf %164, %170 : vector<8x128xf32>
    %cst_75 = arith.constant 0.797884583 : f32
    %172 = vector.broadcast %cst_75 : f32 to vector<8x128xf32>
    %173 = arith.mulf %172, %171 : vector<8x128xf32>
    %174 = math.tanh %173 : vector<8x128xf32>
    %cst_76 = arith.constant 1.000000e+00 : f32
    %175 = vector.broadcast %cst_76 : f32 to vector<8x128xf32>
    %176 = arith.addf %175, %174 : vector<8x128xf32>
    %177 = arith.mulf %166, %176 : vector<8x128xf32>
    %c0_77 = arith.constant 0 : index
    %c0_78 = arith.constant 0 : index
    %178 = vector.load %arg15[%c0_77, %c0_78] : memref<128x32xf32, #tpu.memory_space<vmem>>, vector<128x32xf32>
    %cst_79 = arith.constant dense<0.000000e+00> : vector<8x32xf32>
    %179 = tpu.matmul %177, %178, %cst_79 {dimension_numbers = #tpu.dot_dimension_numbers<[1], [0], [0], [1], [0, 0, 1, 1], [], []>} : vector<8x128xf32>, vector<128x32xf32>, vector<8x32xf32> -> vector<8x32xf32>
    %180 = arith.addf %135, %179 : vector<8x32xf32>
    %c0_80 = arith.constant 0 : index
    %c0_81 = arith.constant 0 : index
    %181 = vector.load %arg16[%c0_80, %c0_81] : memref<1x32xf32, #tpu.memory_space<vmem>>, vector<1x32xf32>
    %182 = vector.broadcast %181 : vector<1x32xf32> to vector<8x32xf32>
    %183 = arith.addf %180, %182 : vector<8x32xf32>
    %c0_82 = arith.constant 0 : index
    %c0_83 = arith.constant 0 : index
    %184 = vector.load %arg17[%c0_82, %c0_83] : memref<1x32xf32, #tpu.memory_space<vmem>>, vector<1x32xf32>
    %c0_84 = arith.constant 0 : index
    %c0_85 = arith.constant 0 : index
    %185 = vector.load %arg18[%c0_84, %c0_85] : memref<1x32xf32, #tpu.memory_space<vmem>>, vector<1x32xf32>
    %cst_86 = arith.constant dense<0.000000e+00> : vector<8xf32>
    %186 = vector.multi_reduction <add>, %183, %cst_86 [1] : vector<8x32xf32> to vector<8xf32>
    %187 = vector.shape_cast %186 : vector<8xf32> to vector<8x1xf32>
    %cst_87 = arith.constant 3.200000e+01 : f32
    %188 = vector.broadcast %cst_87 : f32 to vector<8x1xf32>
    %189 = arith.divf %187, %188 : vector<8x1xf32>
    %190 = vector.broadcast %189 : vector<8x1xf32> to vector<8x32xf32>
    %191 = arith.subf %183, %190 : vector<8x32xf32>
    %192 = arith.mulf %191, %191 : vector<8x32xf32>
    %cst_88 = arith.constant dense<0.000000e+00> : vector<8xf32>
    %193 = vector.multi_reduction <add>, %192, %cst_88 [1] : vector<8x32xf32> to vector<8xf32>
    %194 = vector.shape_cast %193 : vector<8xf32> to vector<8x1xf32>
    %cst_89 = arith.constant 3.200000e+01 : f32
    %195 = vector.broadcast %cst_89 : f32 to vector<8x1xf32>
    %196 = arith.divf %194, %195 : vector<8x1xf32>
    %197 = vector.broadcast %189 : vector<8x1xf32> to vector<8x32xf32>
    %198 = arith.subf %183, %197 : vector<8x32xf32>
    %cst_90 = arith.constant 9.99999974E-6 : f32
    %199 = vector.broadcast %cst_90 : f32 to vector<8x1xf32>
    %200 = arith.addf %196, %199 : vector<8x1xf32>
    %201 = math.rsqrt %200 : vector<8x1xf32>
    %202 = vector.broadcast %201 : vector<8x1xf32> to vector<8x32xf32>
    %203 = arith.mulf %198, %202 : vector<8x32xf32>
    %204 = vector.broadcast %184 : vector<1x32xf32> to vector<8x32xf32>
    %205 = arith.mulf %203, %204 : vector<8x32xf32>
    %206 = vector.broadcast %185 : vector<1x32xf32> to vector<8x32xf32>
    %207 = arith.addf %205, %206 : vector<8x32xf32>
    %208 = vector.extract_strided_slice %207 {offsets = [7, 0], sizes = [1, 32], strides = [1, 1]} : vector<8x32xf32> to vector<1x32xf32>
    %c0_91 = arith.constant 0 : index
    %c0_92 = arith.constant 0 : index
    %209 = vector.load %arg3[%c0_91, %c0_92] : memref<32x256xf32, #tpu.memory_space<vmem>>, vector<32x256xf32>
    %cst_93 = arith.constant dense<0.000000e+00> : vector<1x256xf32>
    %210 = tpu.matmul %208, %209, %cst_93 {dimension_numbers = #tpu.dot_dimension_numbers<[1], [0], [0], [1], [0, 0, 1, 1], [], []>} : vector<1x32xf32>, vector<32x256xf32>, vector<1x256xf32> -> vector<1x256xf32>
    %cst_94 = arith.constant dense<0xFF800000> : vector<1xf32>
    %211 = vector.multi_reduction <maximumf>, %210, %cst_94 [1] : vector<1x256xf32> to vector<1xf32>
    %212 = vector.shape_cast %211 : vector<1xf32> to vector<1x1xf32>
    %213 = tpu.iota {dimensions = array<i32: 1>} : vector<1x256xi32>
    %214 = vector.broadcast %212 : vector<1x1xf32> to vector<1x256xf32>
    %215 = arith.cmpf oeq, %210, %214 : vector<1x256xf32>
    %c256_i32 = arith.constant 256 : i32
    %216 = vector.broadcast %c256_i32 : i32 to vector<1x256xi32>
    %217 = arith.select %215, %213, %216 : vector<1x256xi1>, vector<1x256xi32>
    %cst_95 = arith.constant dense<2147483647> : vector<1xi32>
    %218 = vector.multi_reduction <minsi>, %217, %cst_95 [1] : vector<1x256xi32> to vector<1xi32>
    %219 = vector.shape_cast %218 : vector<1xi32> to vector<1x1xi32>
    %220 = vector.broadcast %219 : vector<1x1xi32> to vector<1x256xi32>
    %221 = arith.cmpi eq, %213, %220 : vector<1x256xi32>
    %222 = arith.extui %221 : vector<1x256xi1> to vector<1x256xi32>
    %223 = arith.sitofp %222 : vector<1x256xi32> to vector<1x256xf32>
    %224 = tpu.iota {dimensions = array<i32: 1>} : vector<1x4xi32>
    %c0_i32_96 = arith.constant 0 : i32
    %225 = vector.broadcast %c0_i32_96 : i32 to vector<1x4xi32>
    %226 = arith.cmpi eq, %224, %225 : vector<1x4xi32>
    %c0_i32_97 = arith.constant 0 : i32
    %227 = vector.broadcast %c0_i32_97 : i32 to vector<1x4xi32>
    %228 = vector.shape_cast %219 : vector<1x1xi32> to vector<1x1xi32>
    %229 = vector.broadcast %228 : vector<1x1xi32> to vector<1x4xi32>
    %230 = arith.select %226, %229, %227 : vector<1x4xi1>, vector<1x4xi32>
    %c0_98 = arith.constant 0 : index
    %c0_99 = arith.constant 0 : index
    %231 = vector.load %arg2[%c0_98, %c0_99] : memref<256x32xf32, #tpu.memory_space<vmem>>, vector<256x32xf32>
    %cst_100 = arith.constant dense<0.000000e+00> : vector<1x32xf32>
    %232 = tpu.matmul %223, %231, %cst_100 {dimension_numbers = #tpu.dot_dimension_numbers<[1], [0], [0], [1], [0, 0, 1, 1], [], []>} : vector<1x256xf32>, vector<256x32xf32>, vector<1x32xf32> -> vector<1x32xf32>
    %c8 = arith.constant 8 : index
    %c0_101 = arith.constant 0 : index
    %233 = vector.load %arg4[%c8, %c0_101] : memref<64x32xf32, #tpu.memory_space<vmem>>, vector<1x32xf32>
    %234 = arith.addf %232, %233 : vector<1x32xf32>
    %c0_102 = arith.constant 0 : index
    %c0_103 = arith.constant 0 : index
    %235 = vector.load %arg5[%c0_102, %c0_103] : memref<1x32xf32, #tpu.memory_space<vmem>>, vector<1x32xf32>
    %c0_104 = arith.constant 0 : index
    %c0_105 = arith.constant 0 : index
    %236 = vector.load %arg6[%c0_104, %c0_105] : memref<1x32xf32, #tpu.memory_space<vmem>>, vector<1x32xf32>
    %cst_106 = arith.constant dense<0.000000e+00> : vector<1xf32>
    %237 = vector.multi_reduction <add>, %234, %cst_106 [1] : vector<1x32xf32> to vector<1xf32>
    %238 = vector.shape_cast %237 : vector<1xf32> to vector<1x1xf32>
    %cst_107 = arith.constant 3.200000e+01 : f32
    %239 = vector.broadcast %cst_107 : f32 to vector<1x1xf32>
    %240 = arith.divf %238, %239 : vector<1x1xf32>
    %241 = vector.broadcast %240 : vector<1x1xf32> to vector<1x32xf32>
    %242 = arith.subf %234, %241 : vector<1x32xf32>
    %243 = arith.mulf %242, %242 : vector<1x32xf32>
    %cst_108 = arith.constant dense<0.000000e+00> : vector<1xf32>
    %244 = vector.multi_reduction <add>, %243, %cst_108 [1] : vector<1x32xf32> to vector<1xf32>
    %245 = vector.shape_cast %244 : vector<1xf32> to vector<1x1xf32>
    %cst_109 = arith.constant 3.200000e+01 : f32
    %246 = vector.broadcast %cst_109 : f32 to vector<1x1xf32>
    %247 = arith.divf %245, %246 : vector<1x1xf32>
    %248 = vector.broadcast %240 : vector<1x1xf32> to vector<1x32xf32>
    %249 = arith.subf %234, %248 : vector<1x32xf32>
    %cst_110 = arith.constant 9.99999974E-6 : f32
    %250 = vector.broadcast %cst_110 : f32 to vector<1x1xf32>
    %251 = arith.addf %247, %250 : vector<1x1xf32>
    %252 = math.rsqrt %251 : vector<1x1xf32>
    %253 = vector.broadcast %252 : vector<1x1xf32> to vector<1x32xf32>
    %254 = arith.mulf %249, %253 : vector<1x32xf32>
    %255 = arith.mulf %254, %235 : vector<1x32xf32>
    %256 = arith.addf %255, %236 : vector<1x32xf32>
    %c0_111 = arith.constant 0 : index
    %c0_112 = arith.constant 0 : index
    %257 = vector.load %arg7[%c0_111, %c0_112] : memref<32x96xf32, #tpu.memory_space<vmem>>, vector<32x96xf32>
    %cst_113 = arith.constant dense<0.000000e+00> : vector<1x96xf32>
    %258 = tpu.matmul %256, %257, %cst_113 {dimension_numbers = #tpu.dot_dimension_numbers<[1], [0], [0], [1], [0, 0, 1, 1], [], []>} : vector<1x32xf32>, vector<32x96xf32>, vector<1x96xf32> -> vector<1x96xf32>
    %c0_114 = arith.constant 0 : index
    %c0_115 = arith.constant 0 : index
    %259 = vector.load %arg8[%c0_114, %c0_115] : memref<1x96xf32, #tpu.memory_space<vmem>>, vector<1x96xf32>
    %260 = arith.addf %258, %259 : vector<1x96xf32>
    %261 = vector.extract_strided_slice %260 {offsets = [0, 32], sizes = [1, 32], strides = [1, 1]} : vector<1x96xf32> to vector<1x32xf32>
    %c8_116 = arith.constant 8 : index
    %c0_117 = arith.constant 0 : index
    %262 = vector.load %arg21[%c8_116, %c0_117] : memref<16x32xf32, #tpu.memory_space<vmem>>, vector<1x32xf32>
    tpu.vector_store %arg21[%c8_116, %c0_117], %261 {strides = array<i32>} : memref<16x32xf32, #tpu.memory_space<vmem>>, vector<1x32xf32>,
    %263 = vector.extract_strided_slice %260 {offsets = [0, 64], sizes = [1, 32], strides = [1, 1]} : vector<1x96xf32> to vector<1x32xf32>
    %c8_118 = arith.constant 8 : index
    %c0_119 = arith.constant 0 : index
    %264 = vector.load %arg22[%c8_118, %c0_119] : memref<16x32xf32, #tpu.memory_space<vmem>>, vector<1x32xf32>
    tpu.vector_store %arg22[%c8_118, %c0_119], %263 {strides = array<i32>} : memref<16x32xf32, #tpu.memory_space<vmem>>, vector<1x32xf32>,
    %265 = vector.extract_strided_slice %260 {offsets = [0, 0], sizes = [1, 32], strides = [1, 1]} : vector<1x96xf32> to vector<1x32xf32>
    %c0_120 = arith.constant 0 : index
    %c0_121 = arith.constant 0 : index
    %266 = vector.load %arg21[%c0_120, %c0_121] : memref<16x32xf32, #tpu.memory_space<vmem>>, vector<16x32xf32>
    %c0_122 = arith.constant 0 : index
    %c0_123 = arith.constant 0 : index
    %267 = vector.load %arg22[%c0_122, %c0_123] : memref<16x32xf32, #tpu.memory_space<vmem>>, vector<16x32xf32>
    %268 = tpu.iota {dimensions = array<i32: 0>} : vector<1x16xi32>
    %c8_i32 = arith.constant 8 : i32
    %269 = vector.broadcast %c8_i32 : i32 to vector<1x16xi32>
    %270 = arith.addi %269, %268 : vector<1x16xi32>
    %271 = tpu.iota {dimensions = array<i32: 1>} : vector<1x16xi32>
    %272 = arith.cmpi sle, %271, %270 : vector<1x16xi32>
    %273 = vector.extract_strided_slice %265 {offsets = [0, 0], sizes = [1, 8], strides = [1, 1]} : vector<1x32xf32> to vector<1x8xf32>
    %274 = vector.extract_strided_slice %266 {offsets = [0, 0], sizes = [16, 8], strides = [1, 1]} : vector<16x32xf32> to vector<16x8xf32>
    %cst_124 = arith.constant dense<0.000000e+00> : vector<1x16xf32>
    %275 = tpu.matmul %273, %274, %cst_124 {dimension_numbers = #tpu.dot_dimension_numbers<[1], [1], [0], [0], [0, 0, 1, 0], [], []>} : vector<1x8xf32>, vector<16x8xf32>, vector<1x16xf32> -> vector<1x16xf32>
    %cst_125 = arith.constant 0.353553385 : f32
    %276 = vector.broadcast %cst_125 : f32 to vector<1x16xf32>
    %277 = arith.mulf %275, %276 : vector<1x16xf32>
    %cst_126 = arith.constant -1.000000e+09 : f32
    %278 = vector.broadcast %cst_126 : f32 to vector<1x16xf32>
    %279 = arith.select %272, %277, %278 : vector<1x16xi1>, vector<1x16xf32>
    %cst_127 = arith.constant dense<0xFF800000> : vector<1xf32>
    %280 = vector.multi_reduction <maximumf>, %279, %cst_127 [1] : vector<1x16xf32> to vector<1xf32>
    %281 = vector.shape_cast %280 : vector<1xf32> to vector<1x1xf32>
    %282 = vector.broadcast %281 : vector<1x1xf32> to vector<1x16xf32>
    %283 = arith.subf %279, %282 : vector<1x16xf32>
    %284 = math.exp %283 : vector<1x16xf32>
    %cst_128 = arith.constant dense<0.000000e+00> : vector<1xf32>
    %285 = vector.multi_reduction <add>, %284, %cst_128 [1] : vector<1x16xf32> to vector<1xf32>
    %286 = vector.shape_cast %285 : vector<1xf32> to vector<1x1xf32>
    %287 = vector.extract_strided_slice %267 {offsets = [0, 0], sizes = [16, 8], strides = [1, 1]} : vector<16x32xf32> to vector<16x8xf32>
    %cst_129 = arith.constant dense<0.000000e+00> : vector<1x8xf32>
    %288 = tpu.matmul %284, %287, %cst_129 {dimension_numbers = #tpu.dot_dimension_numbers<[1], [0], [0], [1], [0, 0, 1, 1], [], []>} : vector<1x16xf32>, vector<16x8xf32>, vector<1x8xf32> -> vector<1x8xf32>
    %289 = tpu.reciprocal %286 {approx = true} : vector<1x1xf32> -> vector<1x1xf32>
    %290 = vector.broadcast %289 : vector<1x1xf32> to vector<1x8xf32>
    %291 = arith.mulf %288, %290 : vector<1x8xf32>
    %292 = vector.extract_strided_slice %265 {offsets = [0, 8], sizes = [1, 8], strides = [1, 1]} : vector<1x32xf32> to vector<1x8xf32>
    %293 = vector.extract_strided_slice %266 {offsets = [0, 8], sizes = [16, 8], strides = [1, 1]} : vector<16x32xf32> to vector<16x8xf32>
    %cst_130 = arith.constant dense<0.000000e+00> : vector<1x16xf32>
    %294 = tpu.matmul %292, %293, %cst_130 {dimension_numbers = #tpu.dot_dimension_numbers<[1], [1], [0], [0], [0, 0, 1, 0], [], []>} : vector<1x8xf32>, vector<16x8xf32>, vector<1x16xf32> -> vector<1x16xf32>
    %cst_131 = arith.constant 0.353553385 : f32
    %295 = vector.broadcast %cst_131 : f32 to vector<1x16xf32>
    %296 = arith.mulf %294, %295 : vector<1x16xf32>
    %cst_132 = arith.constant -1.000000e+09 : f32
    %297 = vector.broadcast %cst_132 : f32 to vector<1x16xf32>
    %298 = arith.select %272, %296, %297 : vector<1x16xi1>, vector<1x16xf32>
    %cst_133 = arith.constant dense<0xFF800000> : vector<1xf32>
    %299 = vector.multi_reduction <maximumf>, %298, %cst_133 [1] : vector<1x16xf32> to vector<1xf32>
    %300 = vector.shape_cast %299 : vector<1xf32> to vector<1x1xf32>
    %301 = vector.broadcast %300 : vector<1x1xf32> to vector<1x16xf32>
    %302 = arith.subf %298, %301 : vector<1x16xf32>
    %303 = math.exp %302 : vector<1x16xf32>
    %cst_134 = arith.constant dense<0.000000e+00> : vector<1xf32>
    %304 = vector.multi_reduction <add>, %303, %cst_134 [1] : vector<1x16xf32> to vector<1xf32>
    %305 = vector.shape_cast %304 : vector<1xf32> to vector<1x1xf32>
    %306 = vector.extract_strided_slice %267 {offsets = [0, 8], sizes = [16, 8], strides = [1, 1]} : vector<16x32xf32> to vector<16x8xf32>
    %cst_135 = arith.constant dense<0.000000e+00> : vector<1x8xf32>
    %307 = tpu.matmul %303, %306, %cst_135 {dimension_numbers = #tpu.dot_dimension_numbers<[1], [0], [0], [1], [0, 0, 1, 1], [], []>} : vector<1x16xf32>, vector<16x8xf32>, vector<1x8xf32> -> vector<1x8xf32>
    %308 = tpu.reciprocal %305 {approx = true} : vector<1x1xf32> -> vector<1x1xf32>
    %309 = vector.broadcast %308 : vector<1x1xf32> to vector<1x8xf32>
    %310 = arith.mulf %307, %309 : vector<1x8xf32>
    %311 = vector.extract_strided_slice %265 {offsets = [0, 16], sizes = [1, 8], strides = [1, 1]} : vector<1x32xf32> to vector<1x8xf32>
    %312 = vector.extract_strided_slice %266 {offsets = [0, 16], sizes = [16, 8], strides = [1, 1]} : vector<16x32xf32> to vector<16x8xf32>
    %cst_136 = arith.constant dense<0.000000e+00> : vector<1x16xf32>
    %313 = tpu.matmul %311, %312, %cst_136 {dimension_numbers = #tpu.dot_dimension_numbers<[1], [1], [0], [0], [0, 0, 1, 0], [], []>} : vector<1x8xf32>, vector<16x8xf32>, vector<1x16xf32> -> vector<1x16xf32>
    %cst_137 = arith.constant 0.353553385 : f32
    %314 = vector.broadcast %cst_137 : f32 to vector<1x16xf32>
    %315 = arith.mulf %313, %314 : vector<1x16xf32>
    %cst_138 = arith.constant -1.000000e+09 : f32
    %316 = vector.broadcast %cst_138 : f32 to vector<1x16xf32>
    %317 = arith.select %272, %315, %316 : vector<1x16xi1>, vector<1x16xf32>
    %cst_139 = arith.constant dense<0xFF800000> : vector<1xf32>
    %318 = vector.multi_reduction <maximumf>, %317, %cst_139 [1] : vector<1x16xf32> to vector<1xf32>
    %319 = vector.shape_cast %318 : vector<1xf32> to vector<1x1xf32>
    %320 = vector.broadcast %319 : vector<1x1xf32> to vector<1x16xf32>
    %321 = arith.subf %317, %320 : vector<1x16xf32>
    %322 = math.exp %321 : vector<1x16xf32>
    %cst_140 = arith.constant dense<0.000000e+00> : vector<1xf32>
    %323 = vector.multi_reduction <add>, %322, %cst_140 [1] : vector<1x16xf32> to vector<1xf32>
    %324 = vector.shape_cast %323 : vector<1xf32> to vector<1x1xf32>
    %325 = vector.extract_strided_slice %267 {offsets = [0, 16], sizes = [16, 8], strides = [1, 1]} : vector<16x32xf32> to vector<16x8xf32>
    %cst_141 = arith.constant dense<0.000000e+00> : vector<1x8xf32>
    %326 = tpu.matmul %322, %325, %cst_141 {dimension_numbers = #tpu.dot_dimension_numbers<[1], [0], [0], [1], [0, 0, 1, 1], [], []>} : vector<1x16xf32>, vector<16x8xf32>, vector<1x8xf32> -> vector<1x8xf32>
    %327 = tpu.reciprocal %324 {approx = true} : vector<1x1xf32> -> vector<1x1xf32>
    %328 = vector.broadcast %327 : vector<1x1xf32> to vector<1x8xf32>
    %329 = arith.mulf %326, %328 : vector<1x8xf32>
    %330 = vector.extract_strided_slice %265 {offsets = [0, 24], sizes = [1, 8], strides = [1, 1]} : vector<1x32xf32> to vector<1x8xf32>
    %331 = vector.extract_strided_slice %266 {offsets = [0, 24], sizes = [16, 8], strides = [1, 1]} : vector<16x32xf32> to vector<16x8xf32>
    %cst_142 = arith.constant dense<0.000000e+00> : vector<1x16xf32>
    %332 = tpu.matmul %330, %331, %cst_142 {dimension_numbers = #tpu.dot_dimension_numbers<[1], [1], [0], [0], [0, 0, 1, 0], [], []>} : vector<1x8xf32>, vector<16x8xf32>, vector<1x16xf32> -> vector<1x16xf32>
    %cst_143 = arith.constant 0.353553385 : f32
    %333 = vector.broadcast %cst_143 : f32 to vector<1x16xf32>
    %334 = arith.mulf %332, %333 : vector<1x16xf32>
    %cst_144 = arith.constant -1.000000e+09 : f32
    %335 = vector.broadcast %cst_144 : f32 to vector<1x16xf32>
    %336 = arith.select %272, %334, %335 : vector<1x16xi1>, vector<1x16xf32>
    %cst_145 = arith.constant dense<0xFF800000> : vector<1xf32>
    %337 = vector.multi_reduction <maximumf>, %336, %cst_145 [1] : vector<1x16xf32> to vector<1xf32>
    %338 = vector.shape_cast %337 : vector<1xf32> to vector<1x1xf32>
    %339 = vector.broadcast %338 : vector<1x1xf32> to vector<1x16xf32>
    %340 = arith.subf %336, %339 : vector<1x16xf32>
    %341 = math.exp %340 : vector<1x16xf32>
    %cst_146 = arith.constant dense<0.000000e+00> : vector<1xf32>
    %342 = vector.multi_reduction <add>, %341, %cst_146 [1] : vector<1x16xf32> to vector<1xf32>
    %343 = vector.shape_cast %342 : vector<1xf32> to vector<1x1xf32>
    %344 = vector.extract_strided_slice %267 {offsets = [0, 24], sizes = [16, 8], strides = [1, 1]} : vector<16x32xf32> to vector<16x8xf32>
    %cst_147 = arith.constant dense<0.000000e+00> : vector<1x8xf32>
    %345 = tpu.matmul %341, %344, %cst_147 {dimension_numbers = #tpu.dot_dimension_numbers<[1], [0], [0], [1], [0, 0, 1, 1], [], []>} : vector<1x16xf32>, vector<16x8xf32>, vector<1x8xf32> -> vector<1x8xf32>
    %346 = tpu.reciprocal %343 {approx = true} : vector<1x1xf32> -> vector<1x1xf32>
    %347 = vector.broadcast %346 : vector<1x1xf32> to vector<1x8xf32>
    %348 = arith.mulf %345, %347 : vector<1x8xf32>
    %349 = tpu.concatenate %291, %310, %329, %348 in 1 : vector<1x8xf32>, vector<1x8xf32>, vector<1x8xf32>, vector<1x8xf32> -> vector<1x32xf32>
    %c0_148 = arith.constant 0 : index
    %c0_149 = arith.constant 0 : index
    %350 = vector.load %arg9[%c0_148, %c0_149] : memref<32x32xf32, #tpu.memory_space<vmem>>, vector<32x32xf32>
    %cst_150 = arith.constant dense<0.000000e+00> : vector<1x32xf32>
    %351 = tpu.matmul %349, %350, %cst_150 {dimension_numbers = #tpu.dot_dimension_numbers<[1], [0], [0], [1], [0, 0, 1, 1], [], []>} : vector<1x32xf32>, vector<32x32xf32>, vector<1x32xf32> -> vector<1x32xf32>
    %352 = arith.addf %234, %351 : vector<1x32xf32>
    %c0_151 = arith.constant 0 : index
    %c0_152 = arith.constant 0 : index
    %353 = vector.load %arg10[%c0_151, %c0_152] : memref<1x32xf32, #tpu.memory_space<vmem>>, vector<1x32xf32>
    %354 = arith.addf %352, %353 : vector<1x32xf32>
    %c0_153 = arith.constant 0 : index
    %c0_154 = arith.constant 0 : index
    %355 = vector.load %arg11[%c0_153, %c0_154] : memref<1x32xf32, #tpu.memory_space<vmem>>, vector<1x32xf32>
    %c0_155 = arith.constant 0 : index
    %c0_156 = arith.constant 0 : index
    %356 = vector.load %arg12[%c0_155, %c0_156] : memref<1x32xf32, #tpu.memory_space<vmem>>, vector<1x32xf32>
    %cst_157 = arith.constant dense<0.000000e+00> : vector<1xf32>
    %357 = vector.multi_reduction <add>, %354, %cst_157 [1] : vector<1x32xf32> to vector<1xf32>
    %358 = vector.shape_cast %357 : vector<1xf32> to vector<1x1xf32>
    %cst_158 = arith.constant 3.200000e+01 : f32
    %359 = vector.broadcast %cst_158 : f32 to vector<1x1xf32>
    %360 = arith.divf %358, %359 : vector<1x1xf32>
    %361 = vector.broadcast %360 : vector<1x1xf32> to vector<1x32xf32>
    %362 = arith.subf %354, %361 : vector<1x32xf32>
    %363 = arith.mulf %362, %362 : vector<1x32xf32>
    %cst_159 = arith.constant dense<0.000000e+00> : vector<1xf32>
    %364 = vector.multi_reduction <add>, %363, %cst_159 [1] : vector<1x32xf32> to vector<1xf32>
    %365 = vector.shape_cast %364 : vector<1xf32> to vector<1x1xf32>
    %cst_160 = arith.constant 3.200000e+01 : f32
    %366 = vector.broadcast %cst_160 : f32 to vector<1x1xf32>
    %367 = arith.divf %365, %366 : vector<1x1xf32>
    %368 = vector.broadcast %360 : vector<1x1xf32> to vector<1x32xf32>
    %369 = arith.subf %354, %368 : vector<1x32xf32>
    %cst_161 = arith.constant 9.99999974E-6 : f32
    %370 = vector.broadcast %cst_161 : f32 to vector<1x1xf32>
    %371 = arith.addf %367, %370 : vector<1x1xf32>
    %372 = math.rsqrt %371 : vector<1x1xf32>
    %373 = vector.broadcast %372 : vector<1x1xf32> to vector<1x32xf32>
    %374 = arith.mulf %369, %373 : vector<1x32xf32>
    %375 = arith.mulf %374, %355 : vector<1x32xf32>
    %376 = arith.addf %375, %356 : vector<1x32xf32>
    %c0_162 = arith.constant 0 : index
    %c0_163 = arith.constant 0 : index
    %377 = vector.load %arg13[%c0_162, %c0_163] : memref<32x128xf32, #tpu.memory_space<vmem>>, vector<32x128xf32>
    %cst_164 = arith.constant dense<0.000000e+00> : vector<1x128xf32>
    %378 = tpu.matmul %376, %377, %cst_164 {dimension_numbers = #tpu.dot_dimension_numbers<[1], [0], [0], [1], [0, 0, 1, 1], [], []>} : vector<1x32xf32>, vector<32x128xf32>, vector<1x128xf32> -> vector<1x128xf32>
    %c0_165 = arith.constant 0 : index
    %c0_166 = arith.constant 0 : index
    %379 = vector.load %arg14[%c0_165, %c0_166] : memref<1x128xf32, #tpu.memory_space<vmem>>, vector<1x128xf32>
    %380 = arith.addf %378, %379 : vector<1x128xf32>
    %cst_167 = arith.constant 5.000000e-01 : f32
    %381 = vector.broadcast %cst_167 : f32 to vector<1x128xf32>
    %382 = arith.mulf %381, %380 : vector<1x128xf32>
    %cst_168 = arith.constant 4.471500e-02 : f32
    %383 = vector.broadcast %cst_168 : f32 to vector<1x128xf32>
    %384 = arith.mulf %383, %380 : vector<1x128xf32>
    %385 = arith.mulf %384, %380 : vector<1x128xf32>
    %386 = arith.mulf %385, %380 : vector<1x128xf32>
    %387 = arith.addf %380, %386 : vector<1x128xf32>
    %cst_169 = arith.constant 0.797884583 : f32
    %388 = vector.broadcast %cst_169 : f32 to vector<1x128xf32>
    %389 = arith.mulf %388, %387 : vector<1x128xf32>
    %390 = math.tanh %389 : vector<1x128xf32>
    %cst_170 = arith.constant 1.000000e+00 : f32
    %391 = vector.broadcast %cst_170 : f32 to vector<1x128xf32>
    %392 = arith.addf %391, %390 : vector<1x128xf32>
    %393 = arith.mulf %382, %392 : vector<1x128xf32>
    %c0_171 = arith.constant 0 : index
    %c0_172 = arith.constant 0 : index
    %394 = vector.load %arg15[%c0_171, %c0_172] : memref<128x32xf32, #tpu.memory_space<vmem>>, vector<128x32xf32>
    %cst_173 = arith.constant dense<0.000000e+00> : vector<1x32xf32>
    %395 = tpu.matmul %393, %394, %cst_173 {dimension_numbers = #tpu.dot_dimension_numbers<[1], [0], [0], [1], [0, 0, 1, 1], [], []>} : vector<1x128xf32>, vector<128x32xf32>, vector<1x32xf32> -> vector<1x32xf32>
    %396 = arith.addf %354, %395 : vector<1x32xf32>
    %c0_174 = arith.constant 0 : index
    %c0_175 = arith.constant 0 : index
    %397 = vector.load %arg16[%c0_174, %c0_175] : memref<1x32xf32, #tpu.memory_space<vmem>>, vector<1x32xf32>
    %398 = arith.addf %396, %397 : vector<1x32xf32>
    %c0_176 = arith.constant 0 : index
    %c0_177 = arith.constant 0 : index
    %399 = vector.load %arg17[%c0_176, %c0_177] : memref<1x32xf32, #tpu.memory_space<vmem>>, vector<1x32xf32>
    %c0_178 = arith.constant 0 : index
    %c0_179 = arith.constant 0 : index
    %400 = vector.load %arg18[%c0_178, %c0_179] : memref<1x32xf32, #tpu.memory_space<vmem>>, vector<1x32xf32>
    %cst_180 = arith.constant dense<0.000000e+00> : vector<1xf32>
    %401 = vector.multi_reduction <add>, %398, %cst_180 [1] : vector<1x32xf32> to vector<1xf32>
    %402 = vector.shape_cast %401 : vector<1xf32> to vector<1x1xf32>
    %cst_181 = arith.constant 3.200000e+01 : f32
    %403 = vector.broadcast %cst_181 : f32 to vector<1x1xf32>
    %404 = arith.divf %402, %403 : vector<1x1xf32>
    %405 = vector.broadcast %404 : vector<1x1xf32> to vector<1x32xf32>
    %406 = arith.subf %398, %405 : vector<1x32xf32>
    %407 = arith.mulf %406, %406 : vector<1x32xf32>
    %cst_182 = arith.constant dense<0.000000e+00> : vector<1xf32>
    %408 = vector.multi_reduction <add>, %407, %cst_182 [1] : vector<1x32xf32> to vector<1xf32>
    %409 = vector.shape_cast %408 : vector<1xf32> to vector<1x1xf32>
    %cst_183 = arith.constant 3.200000e+01 : f32
    %410 = vector.broadcast %cst_183 : f32 to vector<1x1xf32>
    %411 = arith.divf %409, %410 : vector<1x1xf32>
    %412 = vector.broadcast %404 : vector<1x1xf32> to vector<1x32xf32>
    %413 = arith.subf %398, %412 : vector<1x32xf32>
    %cst_184 = arith.constant 9.99999974E-6 : f32
    %414 = vector.broadcast %cst_184 : f32 to vector<1x1xf32>
    %415 = arith.addf %411, %414 : vector<1x1xf32>
    %416 = math.rsqrt %415 : vector<1x1xf32>
    %417 = vector.broadcast %416 : vector<1x1xf32> to vector<1x32xf32>
    %418 = arith.mulf %413, %417 : vector<1x32xf32>
    %419 = arith.mulf %418, %399 : vector<1x32xf32>
    %420 = arith.addf %419, %400 : vector<1x32xf32>
    %421 = arith.addf %208, %420 : vector<1x32xf32>
    %c0_185 = arith.constant 0 : index
    %c0_186 = arith.constant 0 : index
    %422 = vector.load %arg3[%c0_185, %c0_186] : memref<32x256xf32, #tpu.memory_space<vmem>>, vector<32x256xf32>
    %cst_187 = arith.constant dense<0.000000e+00> : vector<1x256xf32>
    %423 = tpu.matmul %420, %422, %cst_187 {dimension_numbers = #tpu.dot_dimension_numbers<[1], [0], [0], [1], [0, 0, 1, 1], [], []>} : vector<1x32xf32>, vector<32x256xf32>, vector<1x256xf32> -> vector<1x256xf32>
    %cst_188 = arith.constant dense<0xFF800000> : vector<1xf32>
    %424 = vector.multi_reduction <maximumf>, %423, %cst_188 [1] : vector<1x256xf32> to vector<1xf32>
    %425 = vector.shape_cast %424 : vector<1xf32> to vector<1x1xf32>
    %426 = tpu.iota {dimensions = array<i32: 1>} : vector<1x256xi32>
    %427 = vector.broadcast %425 : vector<1x1xf32> to vector<1x256xf32>
    %428 = arith.cmpf oeq, %423, %427 : vector<1x256xf32>
    %c256_i32_189 = arith.constant 256 : i32
    %429 = vector.broadcast %c256_i32_189 : i32 to vector<1x256xi32>
    %430 = arith.select %428, %426, %429 : vector<1x256xi1>, vector<1x256xi32>
    %cst_190 = arith.constant dense<2147483647> : vector<1xi32>
    %431 = vector.multi_reduction <minsi>, %430, %cst_190 [1] : vector<1x256xi32> to vector<1xi32>
    %432 = vector.shape_cast %431 : vector<1xi32> to vector<1x1xi32>
    %433 = vector.broadcast %432 : vector<1x1xi32> to vector<1x256xi32>
    %434 = arith.cmpi eq, %426, %433 : vector<1x256xi32>
    %435 = arith.extui %434 : vector<1x256xi1> to vector<1x256xi32>
    %436 = arith.sitofp %435 : vector<1x256xi32> to vector<1x256xf32>
    %c1_i32 = arith.constant 1 : i32
    %437 = vector.broadcast %c1_i32 : i32 to vector<1x4xi32>
    %438 = arith.cmpi eq, %224, %437 : vector<1x4xi32>
    %439 = vector.shape_cast %432 : vector<1x1xi32> to vector<1x1xi32>
    %440 = vector.broadcast %439 : vector<1x1xi32> to vector<1x4xi32>
    %441 = arith.select %438, %440, %230 : vector<1x4xi1>, vector<1x4xi32>
    %c0_191 = arith.constant 0 : index
    %c0_192 = arith.constant 0 : index
    %442 = vector.load %arg2[%c0_191, %c0_192] : memref<256x32xf32, #tpu.memory_space<vmem>>, vector<256x32xf32>
    %cst_193 = arith.constant dense<0.000000e+00> : vector<1x32xf32>
    %443 = tpu.matmul %436, %442, %cst_193 {dimension_numbers = #tpu.dot_dimension_numbers<[1], [0], [0], [1], [0, 0, 1, 1], [], []>} : vector<1x256xf32>, vector<256x32xf32>, vector<1x32xf32> -> vector<1x32xf32>
    %c9 = arith.constant 9 : index
    %c0_194 = arith.constant 0 : index
    %444 = vector.load %arg4[%c9, %c0_194] : memref<64x32xf32, #tpu.memory_space<vmem>>, vector<1x32xf32>
    %445 = arith.addf %443, %444 : vector<1x32xf32>
    %c0_195 = arith.constant 0 : index
    %c0_196 = arith.constant 0 : index
    %446 = vector.load %arg5[%c0_195, %c0_196] : memref<1x32xf32, #tpu.memory_space<vmem>>, vector<1x32xf32>
    %c0_197 = arith.constant 0 : index
    %c0_198 = arith.constant 0 : index
    %447 = vector.load %arg6[%c0_197, %c0_198] : memref<1x32xf32, #tpu.memory_space<vmem>>, vector<1x32xf32>
    %cst_199 = arith.constant dense<0.000000e+00> : vector<1xf32>
    %448 = vector.multi_reduction <add>, %445, %cst_199 [1] : vector<1x32xf32> to vector<1xf32>
    %449 = vector.shape_cast %448 : vector<1xf32> to vector<1x1xf32>
    %cst_200 = arith.constant 3.200000e+01 : f32
    %450 = vector.broadcast %cst_200 : f32 to vector<1x1xf32>
    %451 = arith.divf %449, %450 : vector<1x1xf32>
    %452 = vector.broadcast %451 : vector<1x1xf32> to vector<1x32xf32>
    %453 = arith.subf %445, %452 : vector<1x32xf32>
    %454 = arith.mulf %453, %453 : vector<1x32xf32>
    %cst_201 = arith.constant dense<0.000000e+00> : vector<1xf32>
    %455 = vector.multi_reduction <add>, %454, %cst_201 [1] : vector<1x32xf32> to vector<1xf32>
    %456 = vector.shape_cast %455 : vector<1xf32> to vector<1x1xf32>
    %cst_202 = arith.constant 3.200000e+01 : f32
    %457 = vector.broadcast %cst_202 : f32 to vector<1x1xf32>
    %458 = arith.divf %456, %457 : vector<1x1xf32>
    %459 = vector.broadcast %451 : vector<1x1xf32> to vector<1x32xf32>
    %460 = arith.subf %445, %459 : vector<1x32xf32>
    %cst_203 = arith.constant 9.99999974E-6 : f32
    %461 = vector.broadcast %cst_203 : f32 to vector<1x1xf32>
    %462 = arith.addf %458, %461 : vector<1x1xf32>
    %463 = math.rsqrt %462 : vector<1x1xf32>
    %464 = vector.broadcast %463 : vector<1x1xf32> to vector<1x32xf32>
    %465 = arith.mulf %460, %464 : vector<1x32xf32>
    %466 = arith.mulf %465, %446 : vector<1x32xf32>
    %467 = arith.addf %466, %447 : vector<1x32xf32>
    %c0_204 = arith.constant 0 : index
    %c0_205 = arith.constant 0 : index
    %468 = vector.load %arg7[%c0_204, %c0_205] : memref<32x96xf32, #tpu.memory_space<vmem>>, vector<32x96xf32>
    %cst_206 = arith.constant dense<0.000000e+00> : vector<1x96xf32>
    %469 = tpu.matmul %467, %468, %cst_206 {dimension_numbers = #tpu.dot_dimension_numbers<[1], [0], [0], [1], [0, 0, 1, 1], [], []>} : vector<1x32xf32>, vector<32x96xf32>, vector<1x96xf32> -> vector<1x96xf32>
    %c0_207 = arith.constant 0 : index
    %c0_208 = arith.constant 0 : index
    %470 = vector.load %arg8[%c0_207, %c0_208] : memref<1x96xf32, #tpu.memory_space<vmem>>, vector<1x96xf32>
    %471 = arith.addf %469, %470 : vector<1x96xf32>
    %472 = vector.extract_strided_slice %471 {offsets = [0, 32], sizes = [1, 32], strides = [1, 1]} : vector<1x96xf32> to vector<1x32xf32>
    %c9_209 = arith.constant 9 : index
    %c0_210 = arith.constant 0 : index
    %473 = vector.load %arg21[%c9_209, %c0_210] : memref<16x32xf32, #tpu.memory_space<vmem>>, vector<1x32xf32>
    tpu.vector_store %arg21[%c9_209, %c0_210], %472 {strides = array<i32>} : memref<16x32xf32, #tpu.memory_space<vmem>>, vector<1x32xf32>,
    %474 = vector.extract_strided_slice %471 {offsets = [0, 64], sizes = [1, 32], strides = [1, 1]} : vector<1x96xf32> to vector<1x32xf32>
    %c9_211 = arith.constant 9 : index
    %c0_212 = arith.constant 0 : index
    %475 = vector.load %arg22[%c9_211, %c0_212] : memref<16x32xf32, #tpu.memory_space<vmem>>, vector<1x32xf32>
    tpu.vector_store %arg22[%c9_211, %c0_212], %474 {strides = array<i32>} : memref<16x32xf32, #tpu.memory_space<vmem>>, vector<1x32xf32>,
    %476 = vector.extract_strided_slice %471 {offsets = [0, 0], sizes = [1, 32], strides = [1, 1]} : vector<1x96xf32> to vector<1x32xf32>
    %c0_213 = arith.constant 0 : index
    %c0_214 = arith.constant 0 : index
    %477 = vector.load %arg21[%c0_213, %c0_214] : memref<16x32xf32, #tpu.memory_space<vmem>>, vector<16x32xf32>
    %c0_215 = arith.constant 0 : index
    %c0_216 = arith.constant 0 : index
    %478 = vector.load %arg22[%c0_215, %c0_216] : memref<16x32xf32, #tpu.memory_space<vmem>>, vector<16x32xf32>
    %479 = tpu.iota {dimensions = array<i32: 0>} : vector<1x16xi32>
    %c9_i32 = arith.constant 9 : i32
    %480 = vector.broadcast %c9_i32 : i32 to vector<1x16xi32>
    %481 = arith.addi %480, %479 : vector<1x16xi32>
    %482 = tpu.iota {dimensions = array<i32: 1>} : vector<1x16xi32>
    %483 = arith.cmpi sle, %482, %481 : vector<1x16xi32>
    %484 = vector.extract_strided_slice %476 {offsets = [0, 0], sizes = [1, 8], strides = [1, 1]} : vector<1x32xf32> to vector<1x8xf32>
    %485 = vector.extract_strided_slice %477 {offsets = [0, 0], sizes = [16, 8], strides = [1, 1]} : vector<16x32xf32> to vector<16x8xf32>
    %cst_217 = arith.constant dense<0.000000e+00> : vector<1x16xf32>
    %486 = tpu.matmul %484, %485, %cst_217 {dimension_numbers = #tpu.dot_dimension_numbers<[1], [1], [0], [0], [0, 0, 1, 0], [], []>} : vector<1x8xf32>, vector<16x8xf32>, vector<1x16xf32> -> vector<1x16xf32>
    %cst_218 = arith.constant 0.353553385 : f32
    %487 = vector.broadcast %cst_218 : f32 to vector<1x16xf32>
    %488 = arith.mulf %486, %487 : vector<1x16xf32>
    %cst_219 = arith.constant -1.000000e+09 : f32
    %489 = vector.broadcast %cst_219 : f32 to vector<1x16xf32>
    %490 = arith.select %483, %488, %489 : vector<1x16xi1>, vector<1x16xf32>
    %cst_220 = arith.constant dense<0xFF800000> : vector<1xf32>
    %491 = vector.multi_reduction <maximumf>, %490, %cst_220 [1] : vector<1x16xf32> to vector<1xf32>
    %492 = vector.shape_cast %491 : vector<1xf32> to vector<1x1xf32>
    %493 = vector.broadcast %492 : vector<1x1xf32> to vector<1x16xf32>
    %494 = arith.subf %490, %493 : vector<1x16xf32>
    %495 = math.exp %494 : vector<1x16xf32>
    %cst_221 = arith.constant dense<0.000000e+00> : vector<1xf32>
    %496 = vector.multi_reduction <add>, %495, %cst_221 [1] : vector<1x16xf32> to vector<1xf32>
    %497 = vector.shape_cast %496 : vector<1xf32> to vector<1x1xf32>
    %498 = vector.extract_strided_slice %478 {offsets = [0, 0], sizes = [16, 8], strides = [1, 1]} : vector<16x32xf32> to vector<16x8xf32>
    %cst_222 = arith.constant dense<0.000000e+00> : vector<1x8xf32>
    %499 = tpu.matmul %495, %498, %cst_222 {dimension_numbers = #tpu.dot_dimension_numbers<[1], [0], [0], [1], [0, 0, 1, 1], [], []>} : vector<1x16xf32>, vector<16x8xf32>, vector<1x8xf32> -> vector<1x8xf32>
    %500 = tpu.reciprocal %497 {approx = true} : vector<1x1xf32> -> vector<1x1xf32>
    %501 = vector.broadcast %500 : vector<1x1xf32> to vector<1x8xf32>
    %502 = arith.mulf %499, %501 : vector<1x8xf32>
    %503 = vector.extract_strided_slice %476 {offsets = [0, 8], sizes = [1, 8], strides = [1, 1]} : vector<1x32xf32> to vector<1x8xf32>
    %504 = vector.extract_strided_slice %477 {offsets = [0, 8], sizes = [16, 8], strides = [1, 1]} : vector<16x32xf32> to vector<16x8xf32>
    %cst_223 = arith.constant dense<0.000000e+00> : vector<1x16xf32>
    %505 = tpu.matmul %503, %504, %cst_223 {dimension_numbers = #tpu.dot_dimension_numbers<[1], [1], [0], [0], [0, 0, 1, 0], [], []>} : vector<1x8xf32>, vector<16x8xf32>, vector<1x16xf32> -> vector<1x16xf32>
    %cst_224 = arith.constant 0.353553385 : f32
    %506 = vector.broadcast %cst_224 : f32 to vector<1x16xf32>
    %507 = arith.mulf %505, %506 : vector<1x16xf32>
    %cst_225 = arith.constant -1.000000e+09 : f32
    %508 = vector.broadcast %cst_225 : f32 to vector<1x16xf32>
    %509 = arith.select %483, %507, %508 : vector<1x16xi1>, vector<1x16xf32>
    %cst_226 = arith.constant dense<0xFF800000> : vector<1xf32>
    %510 = vector.multi_reduction <maximumf>, %509, %cst_226 [1] : vector<1x16xf32> to vector<1xf32>
    %511 = vector.shape_cast %510 : vector<1xf32> to vector<1x1xf32>
    %512 = vector.broadcast %511 : vector<1x1xf32> to vector<1x16xf32>
    %513 = arith.subf %509, %512 : vector<1x16xf32>
    %514 = math.exp %513 : vector<1x16xf32>
    %cst_227 = arith.constant dense<0.000000e+00> : vector<1xf32>
    %515 = vector.multi_reduction <add>, %514, %cst_227 [1] : vector<1x16xf32> to vector<1xf32>
    %516 = vector.shape_cast %515 : vector<1xf32> to vector<1x1xf32>
    %517 = vector.extract_strided_slice %478 {offsets = [0, 8], sizes = [16, 8], strides = [1, 1]} : vector<16x32xf32> to vector<16x8xf32>
    %cst_228 = arith.constant dense<0.000000e+00> : vector<1x8xf32>
    %518 = tpu.matmul %514, %517, %cst_228 {dimension_numbers = #tpu.dot_dimension_numbers<[1], [0], [0], [1], [0, 0, 1, 1], [], []>} : vector<1x16xf32>, vector<16x8xf32>, vector<1x8xf32> -> vector<1x8xf32>
    %519 = tpu.reciprocal %516 {approx = true} : vector<1x1xf32> -> vector<1x1xf32>
    %520 = vector.broadcast %519 : vector<1x1xf32> to vector<1x8xf32>
    %521 = arith.mulf %518, %520 : vector<1x8xf32>
    %522 = vector.extract_strided_slice %476 {offsets = [0, 16], sizes = [1, 8], strides = [1, 1]} : vector<1x32xf32> to vector<1x8xf32>
    %523 = vector.extract_strided_slice %477 {offsets = [0, 16], sizes = [16, 8], strides = [1, 1]} : vector<16x32xf32> to vector<16x8xf32>
    %cst_229 = arith.constant dense<0.000000e+00> : vector<1x16xf32>
    %524 = tpu.matmul %522, %523, %cst_229 {dimension_numbers = #tpu.dot_dimension_numbers<[1], [1], [0], [0], [0, 0, 1, 0], [], []>} : vector<1x8xf32>, vector<16x8xf32>, vector<1x16xf32> -> vector<1x16xf32>
    %cst_230 = arith.constant 0.353553385 : f32
    %525 = vector.broadcast %cst_230 : f32 to vector<1x16xf32>
    %526 = arith.mulf %524, %525 : vector<1x16xf32>
    %cst_231 = arith.constant -1.000000e+09 : f32
    %527 = vector.broadcast %cst_231 : f32 to vector<1x16xf32>
    %528 = arith.select %483, %526, %527 : vector<1x16xi1>, vector<1x16xf32>
    %cst_232 = arith.constant dense<0xFF800000> : vector<1xf32>
    %529 = vector.multi_reduction <maximumf>, %528, %cst_232 [1] : vector<1x16xf32> to vector<1xf32>
    %530 = vector.shape_cast %529 : vector<1xf32> to vector<1x1xf32>
    %531 = vector.broadcast %530 : vector<1x1xf32> to vector<1x16xf32>
    %532 = arith.subf %528, %531 : vector<1x16xf32>
    %533 = math.exp %532 : vector<1x16xf32>
    %cst_233 = arith.constant dense<0.000000e+00> : vector<1xf32>
    %534 = vector.multi_reduction <add>, %533, %cst_233 [1] : vector<1x16xf32> to vector<1xf32>
    %535 = vector.shape_cast %534 : vector<1xf32> to vector<1x1xf32>
    %536 = vector.extract_strided_slice %478 {offsets = [0, 16], sizes = [16, 8], strides = [1, 1]} : vector<16x32xf32> to vector<16x8xf32>
    %cst_234 = arith.constant dense<0.000000e+00> : vector<1x8xf32>
    %537 = tpu.matmul %533, %536, %cst_234 {dimension_numbers = #tpu.dot_dimension_numbers<[1], [0], [0], [1], [0, 0, 1, 1], [], []>} : vector<1x16xf32>, vector<16x8xf32>, vector<1x8xf32> -> vector<1x8xf32>
    %538 = tpu.reciprocal %535 {approx = true} : vector<1x1xf32> -> vector<1x1xf32>
    %539 = vector.broadcast %538 : vector<1x1xf32> to vector<1x8xf32>
    %540 = arith.mulf %537, %539 : vector<1x8xf32>
    %541 = vector.extract_strided_slice %476 {offsets = [0, 24], sizes = [1, 8], strides = [1, 1]} : vector<1x32xf32> to vector<1x8xf32>
    %542 = vector.extract_strided_slice %477 {offsets = [0, 24], sizes = [16, 8], strides = [1, 1]} : vector<16x32xf32> to vector<16x8xf32>
    %cst_235 = arith.constant dense<0.000000e+00> : vector<1x16xf32>
    %543 = tpu.matmul %541, %542, %cst_235 {dimension_numbers = #tpu.dot_dimension_numbers<[1], [1], [0], [0], [0, 0, 1, 0], [], []>} : vector<1x8xf32>, vector<16x8xf32>, vector<1x16xf32> -> vector<1x16xf32>
    %cst_236 = arith.constant 0.353553385 : f32
    %544 = vector.broadcast %cst_236 : f32 to vector<1x16xf32>
    %545 = arith.mulf %543, %544 : vector<1x16xf32>
    %cst_237 = arith.constant -1.000000e+09 : f32
    %546 = vector.broadcast %cst_237 : f32 to vector<1x16xf32>
    %547 = arith.select %483, %545, %546 : vector<1x16xi1>, vector<1x16xf32>
    %cst_238 = arith.constant dense<0xFF800000> : vector<1xf32>
    %548 = vector.multi_reduction <maximumf>, %547, %cst_238 [1] : vector<1x16xf32> to vector<1xf32>
    %549 = vector.shape_cast %548 : vector<1xf32> to vector<1x1xf32>
    %550 = vector.broadcast %549 : vector<1x1xf32> to vector<1x16xf32>
    %551 = arith.subf %547, %550 : vector<1x16xf32>
    %552 = math.exp %551 : vector<1x16xf32>
    %cst_239 = arith.constant dense<0.000000e+00> : vector<1xf32>
    %553 = vector.multi_reduction <add>, %552, %cst_239 [1] : vector<1x16xf32> to vector<1xf32>
    %554 = vector.shape_cast %553 : vector<1xf32> to vector<1x1xf32>
    %555 = vector.extract_strided_slice %478 {offsets = [0, 24], sizes = [16, 8], strides = [1, 1]} : vector<16x32xf32> to vector<16x8xf32>
    %cst_240 = arith.constant dense<0.000000e+00> : vector<1x8xf32>
    %556 = tpu.matmul %552, %555, %cst_240 {dimension_numbers = #tpu.dot_dimension_numbers<[1], [0], [0], [1], [0, 0, 1, 1], [], []>} : vector<1x16xf32>, vector<16x8xf32>, vector<1x8xf32> -> vector<1x8xf32>
    %557 = tpu.reciprocal %554 {approx = true} : vector<1x1xf32> -> vector<1x1xf32>
    %558 = vector.broadcast %557 : vector<1x1xf32> to vector<1x8xf32>
    %559 = arith.mulf %556, %558 : vector<1x8xf32>
    %560 = tpu.concatenate %502, %521, %540, %559 in 1 : vector<1x8xf32>, vector<1x8xf32>, vector<1x8xf32>, vector<1x8xf32> -> vector<1x32xf32>
    %c0_241 = arith.constant 0 : index
    %c0_242 = arith.constant 0 : index
    %561 = vector.load %arg9[%c0_241, %c0_242] : memref<32x32xf32, #tpu.memory_space<vmem>>, vector<32x32xf32>
    %cst_243 = arith.constant dense<0.000000e+00> : vector<1x32xf32>
    %562 = tpu.matmul %560, %561, %cst_243 {dimension_numbers = #tpu.dot_dimension_numbers<[1], [0], [0], [1], [0, 0, 1, 1], [], []>} : vector<1x32xf32>, vector<32x32xf32>, vector<1x32xf32> -> vector<1x32xf32>
    %563 = arith.addf %445, %562 : vector<1x32xf32>
    %c0_244 = arith.constant 0 : index
    %c0_245 = arith.constant 0 : index
    %564 = vector.load %arg10[%c0_244, %c0_245] : memref<1x32xf32, #tpu.memory_space<vmem>>, vector<1x32xf32>
    %565 = arith.addf %563, %564 : vector<1x32xf32>
    %c0_246 = arith.constant 0 : index
    %c0_247 = arith.constant 0 : index
    %566 = vector.load %arg11[%c0_246, %c0_247] : memref<1x32xf32, #tpu.memory_space<vmem>>, vector<1x32xf32>
    %c0_248 = arith.constant 0 : index
    %c0_249 = arith.constant 0 : index
    %567 = vector.load %arg12[%c0_248, %c0_249] : memref<1x32xf32, #tpu.memory_space<vmem>>, vector<1x32xf32>
    %cst_250 = arith.constant dense<0.000000e+00> : vector<1xf32>
    %568 = vector.multi_reduction <add>, %565, %cst_250 [1] : vector<1x32xf32> to vector<1xf32>
    %569 = vector.shape_cast %568 : vector<1xf32> to vector<1x1xf32>
    %cst_251 = arith.constant 3.200000e+01 : f32
    %570 = vector.broadcast %cst_251 : f32 to vector<1x1xf32>
    %571 = arith.divf %569, %570 : vector<1x1xf32>
    %572 = vector.broadcast %571 : vector<1x1xf32> to vector<1x32xf32>
    %573 = arith.subf %565, %572 : vector<1x32xf32>
    %574 = arith.mulf %573, %573 : vector<1x32xf32>
    %cst_252 = arith.constant dense<0.000000e+00> : vector<1xf32>
    %575 = vector.multi_reduction <add>, %574, %cst_252 [1] : vector<1x32xf32> to vector<1xf32>
    %576 = vector.shape_cast %575 : vector<1xf32> to vector<1x1xf32>
    %cst_253 = arith.constant 3.200000e+01 : f32
    %577 = vector.broadcast %cst_253 : f32 to vector<1x1xf32>
    %578 = arith.divf %576, %577 : vector<1x1xf32>
    %579 = vector.broadcast %571 : vector<1x1xf32> to vector<1x32xf32>
    %580 = arith.subf %565, %579 : vector<1x32xf32>
    %cst_254 = arith.constant 9.99999974E-6 : f32
    %581 = vector.broadcast %cst_254 : f32 to vector<1x1xf32>
    %582 = arith.addf %578, %581 : vector<1x1xf32>
    %583 = math.rsqrt %582 : vector<1x1xf32>
    %584 = vector.broadcast %583 : vector<1x1xf32> to vector<1x32xf32>
    %585 = arith.mulf %580, %584 : vector<1x32xf32>
    %586 = arith.mulf %585, %566 : vector<1x32xf32>
    %587 = arith.addf %586, %567 : vector<1x32xf32>
    %c0_255 = arith.constant 0 : index
    %c0_256 = arith.constant 0 : index
    %588 = vector.load %arg13[%c0_255, %c0_256] : memref<32x128xf32, #tpu.memory_space<vmem>>, vector<32x128xf32>
    %cst_257 = arith.constant dense<0.000000e+00> : vector<1x128xf32>
    %589 = tpu.matmul %587, %588, %cst_257 {dimension_numbers = #tpu.dot_dimension_numbers<[1], [0], [0], [1], [0, 0, 1, 1], [], []>} : vector<1x32xf32>, vector<32x128xf32>, vector<1x128xf32> -> vector<1x128xf32>
    %c0_258 = arith.constant 0 : index
    %c0_259 = arith.constant 0 : index
    %590 = vector.load %arg14[%c0_258, %c0_259] : memref<1x128xf32, #tpu.memory_space<vmem>>, vector<1x128xf32>
    %591 = arith.addf %589, %590 : vector<1x128xf32>
    %cst_260 = arith.constant 5.000000e-01 : f32
    %592 = vector.broadcast %cst_260 : f32 to vector<1x128xf32>
    %593 = arith.mulf %592, %591 : vector<1x128xf32>
    %cst_261 = arith.constant 4.471500e-02 : f32
    %594 = vector.broadcast %cst_261 : f32 to vector<1x128xf32>
    %595 = arith.mulf %594, %591 : vector<1x128xf32>
    %596 = arith.mulf %595, %591 : vector<1x128xf32>
    %597 = arith.mulf %596, %591 : vector<1x128xf32>
    %598 = arith.addf %591, %597 : vector<1x128xf32>
    %cst_262 = arith.constant 0.797884583 : f32
    %599 = vector.broadcast %cst_262 : f32 to vector<1x128xf32>
    %600 = arith.mulf %599, %598 : vector<1x128xf32>
    %601 = math.tanh %600 : vector<1x128xf32>
    %cst_263 = arith.constant 1.000000e+00 : f32
    %602 = vector.broadcast %cst_263 : f32 to vector<1x128xf32>
    %603 = arith.addf %602, %601 : vector<1x128xf32>
    %604 = arith.mulf %593, %603 : vector<1x128xf32>
    %c0_264 = arith.constant 0 : index
    %c0_265 = arith.constant 0 : index
    %605 = vector.load %arg15[%c0_264, %c0_265] : memref<128x32xf32, #tpu.memory_space<vmem>>, vector<128x32xf32>
    %cst_266 = arith.constant dense<0.000000e+00> : vector<1x32xf32>
    %606 = tpu.matmul %604, %605, %cst_266 {dimension_numbers = #tpu.dot_dimension_numbers<[1], [0], [0], [1], [0, 0, 1, 1], [], []>} : vector<1x128xf32>, vector<128x32xf32>, vector<1x32xf32> -> vector<1x32xf32>
    %607 = arith.addf %565, %606 : vector<1x32xf32>
    %c0_267 = arith.constant 0 : index
    %c0_268 = arith.constant 0 : index
    %608 = vector.load %arg16[%c0_267, %c0_268] : memref<1x32xf32, #tpu.memory_space<vmem>>, vector<1x32xf32>
    %609 = arith.addf %607, %608 : vector<1x32xf32>
    %c0_269 = arith.constant 0 : index
    %c0_270 = arith.constant 0 : index
    %610 = vector.load %arg17[%c0_269, %c0_270] : memref<1x32xf32, #tpu.memory_space<vmem>>, vector<1x32xf32>
    %c0_271 = arith.constant 0 : index
    %c0_272 = arith.constant 0 : index
    %611 = vector.load %arg18[%c0_271, %c0_272] : memref<1x32xf32, #tpu.memory_space<vmem>>, vector<1x32xf32>
    %cst_273 = arith.constant dense<0.000000e+00> : vector<1xf32>
    %612 = vector.multi_reduction <add>, %609, %cst_273 [1] : vector<1x32xf32> to vector<1xf32>
    %613 = vector.shape_cast %612 : vector<1xf32> to vector<1x1xf32>
    %cst_274 = arith.constant 3.200000e+01 : f32
    %614 = vector.broadcast %cst_274 : f32 to vector<1x1xf32>
    %615 = arith.divf %613, %614 : vector<1x1xf32>
    %616 = vector.broadcast %615 : vector<1x1xf32> to vector<1x32xf32>
    %617 = arith.subf %609, %616 : vector<1x32xf32>
    %618 = arith.mulf %617, %617 : vector<1x32xf32>
    %cst_275 = arith.constant dense<0.000000e+00> : vector<1xf32>
    %619 = vector.multi_reduction <add>, %618, %cst_275 [1] : vector<1x32xf32> to vector<1xf32>
    %620 = vector.shape_cast %619 : vector<1xf32> to vector<1x1xf32>
    %cst_276 = arith.constant 3.200000e+01 : f32
    %621 = vector.broadcast %cst_276 : f32 to vector<1x1xf32>
    %622 = arith.divf %620, %621 : vector<1x1xf32>
    %623 = vector.broadcast %615 : vector<1x1xf32> to vector<1x32xf32>
    %624 = arith.subf %609, %623 : vector<1x32xf32>
    %cst_277 = arith.constant 9.99999974E-6 : f32
    %625 = vector.broadcast %cst_277 : f32 to vector<1x1xf32>
    %626 = arith.addf %622, %625 : vector<1x1xf32>
    %627 = math.rsqrt %626 : vector<1x1xf32>
    %628 = vector.broadcast %627 : vector<1x1xf32> to vector<1x32xf32>
    %629 = arith.mulf %624, %628 : vector<1x32xf32>
    %630 = arith.mulf %629, %610 : vector<1x32xf32>
    %631 = arith.addf %630, %611 : vector<1x32xf32>
    %632 = arith.addf %421, %631 : vector<1x32xf32>
    %c0_278 = arith.constant 0 : index
    %c0_279 = arith.constant 0 : index
    %633 = vector.load %arg3[%c0_278, %c0_279] : memref<32x256xf32, #tpu.memory_space<vmem>>, vector<32x256xf32>
    %cst_280 = arith.constant dense<0.000000e+00> : vector<1x256xf32>
    %634 = tpu.matmul %631, %633, %cst_280 {dimension_numbers = #tpu.dot_dimension_numbers<[1], [0], [0], [1], [0, 0, 1, 1], [], []>} : vector<1x32xf32>, vector<32x256xf32>, vector<1x256xf32> -> vector<1x256xf32>
    %cst_281 = arith.constant dense<0xFF800000> : vector<1xf32>
    %635 = vector.multi_reduction <maximumf>, %634, %cst_281 [1] : vector<1x256xf32> to vector<1xf32>
    %636 = vector.shape_cast %635 : vector<1xf32> to vector<1x1xf32>
    %637 = tpu.iota {dimensions = array<i32: 1>} : vector<1x256xi32>
    %638 = vector.broadcast %636 : vector<1x1xf32> to vector<1x256xf32>
    %639 = arith.cmpf oeq, %634, %638 : vector<1x256xf32>
    %c256_i32_282 = arith.constant 256 : i32
    %640 = vector.broadcast %c256_i32_282 : i32 to vector<1x256xi32>
    %641 = arith.select %639, %637, %640 : vector<1x256xi1>, vector<1x256xi32>
    %cst_283 = arith.constant dense<2147483647> : vector<1xi32>
    %642 = vector.multi_reduction <minsi>, %641, %cst_283 [1] : vector<1x256xi32> to vector<1xi32>
    %643 = vector.shape_cast %642 : vector<1xi32> to vector<1x1xi32>
    %644 = vector.broadcast %643 : vector<1x1xi32> to vector<1x256xi32>
    %645 = arith.cmpi eq, %637, %644 : vector<1x256xi32>
    %646 = arith.extui %645 : vector<1x256xi1> to vector<1x256xi32>
    %647 = arith.sitofp %646 : vector<1x256xi32> to vector<1x256xf32>
    %c2_i32 = arith.constant 2 : i32
    %648 = vector.broadcast %c2_i32 : i32 to vector<1x4xi32>
    %649 = arith.cmpi eq, %224, %648 : vector<1x4xi32>
    %650 = vector.shape_cast %643 : vector<1x1xi32> to vector<1x1xi32>
    %651 = vector.broadcast %650 : vector<1x1xi32> to vector<1x4xi32>
    %652 = arith.select %649, %651, %441 : vector<1x4xi1>, vector<1x4xi32>
    %c0_284 = arith.constant 0 : index
    %c0_285 = arith.constant 0 : index
    %653 = vector.load %arg2[%c0_284, %c0_285] : memref<256x32xf32, #tpu.memory_space<vmem>>, vector<256x32xf32>
    %cst_286 = arith.constant dense<0.000000e+00> : vector<1x32xf32>
    %654 = tpu.matmul %647, %653, %cst_286 {dimension_numbers = #tpu.dot_dimension_numbers<[1], [0], [0], [1], [0, 0, 1, 1], [], []>} : vector<1x256xf32>, vector<256x32xf32>, vector<1x32xf32> -> vector<1x32xf32>
    %c10 = arith.constant 10 : index
    %c0_287 = arith.constant 0 : index
    %655 = vector.load %arg4[%c10, %c0_287] : memref<64x32xf32, #tpu.memory_space<vmem>>, vector<1x32xf32>
    %656 = arith.addf %654, %655 : vector<1x32xf32>
    %c0_288 = arith.constant 0 : index
    %c0_289 = arith.constant 0 : index
    %657 = vector.load %arg5[%c0_288, %c0_289] : memref<1x32xf32, #tpu.memory_space<vmem>>, vector<1x32xf32>
    %c0_290 = arith.constant 0 : index
    %c0_291 = arith.constant 0 : index
    %658 = vector.load %arg6[%c0_290, %c0_291] : memref<1x32xf32, #tpu.memory_space<vmem>>, vector<1x32xf32>
    %cst_292 = arith.constant dense<0.000000e+00> : vector<1xf32>
    %659 = vector.multi_reduction <add>, %656, %cst_292 [1] : vector<1x32xf32> to vector<1xf32>
    %660 = vector.shape_cast %659 : vector<1xf32> to vector<1x1xf32>
    %cst_293 = arith.constant 3.200000e+01 : f32
    %661 = vector.broadcast %cst_293 : f32 to vector<1x1xf32>
    %662 = arith.divf %660, %661 : vector<1x1xf32>
    %663 = vector.broadcast %662 : vector<1x1xf32> to vector<1x32xf32>
    %664 = arith.subf %656, %663 : vector<1x32xf32>
    %665 = arith.mulf %664, %664 : vector<1x32xf32>
    %cst_294 = arith.constant dense<0.000000e+00> : vector<1xf32>
    %666 = vector.multi_reduction <add>, %665, %cst_294 [1] : vector<1x32xf32> to vector<1xf32>
    %667 = vector.shape_cast %666 : vector<1xf32> to vector<1x1xf32>
    %cst_295 = arith.constant 3.200000e+01 : f32
    %668 = vector.broadcast %cst_295 : f32 to vector<1x1xf32>
    %669 = arith.divf %667, %668 : vector<1x1xf32>
    %670 = vector.broadcast %662 : vector<1x1xf32> to vector<1x32xf32>
    %671 = arith.subf %656, %670 : vector<1x32xf32>
    %cst_296 = arith.constant 9.99999974E-6 : f32
    %672 = vector.broadcast %cst_296 : f32 to vector<1x1xf32>
    %673 = arith.addf %669, %672 : vector<1x1xf32>
    %674 = math.rsqrt %673 : vector<1x1xf32>
    %675 = vector.broadcast %674 : vector<1x1xf32> to vector<1x32xf32>
    %676 = arith.mulf %671, %675 : vector<1x32xf32>
    %677 = arith.mulf %676, %657 : vector<1x32xf32>
    %678 = arith.addf %677, %658 : vector<1x32xf32>
    %c0_297 = arith.constant 0 : index
    %c0_298 = arith.constant 0 : index
    %679 = vector.load %arg7[%c0_297, %c0_298] : memref<32x96xf32, #tpu.memory_space<vmem>>, vector<32x96xf32>
    %cst_299 = arith.constant dense<0.000000e+00> : vector<1x96xf32>
    %680 = tpu.matmul %678, %679, %cst_299 {dimension_numbers = #tpu.dot_dimension_numbers<[1], [0], [0], [1], [0, 0, 1, 1], [], []>} : vector<1x32xf32>, vector<32x96xf32>, vector<1x96xf32> -> vector<1x96xf32>
    %c0_300 = arith.constant 0 : index
    %c0_301 = arith.constant 0 : index
    %681 = vector.load %arg8[%c0_300, %c0_301] : memref<1x96xf32, #tpu.memory_space<vmem>>, vector<1x96xf32>
    %682 = arith.addf %680, %681 : vector<1x96xf32>
    %683 = vector.extract_strided_slice %682 {offsets = [0, 32], sizes = [1, 32], strides = [1, 1]} : vector<1x96xf32> to vector<1x32xf32>
    %c10_302 = arith.constant 10 : index
    %c0_303 = arith.constant 0 : index
    %684 = vector.load %arg21[%c10_302, %c0_303] : memref<16x32xf32, #tpu.memory_space<vmem>>, vector<1x32xf32>
    tpu.vector_store %arg21[%c10_302, %c0_303], %683 {strides = array<i32>} : memref<16x32xf32, #tpu.memory_space<vmem>>, vector<1x32xf32>,
    %685 = vector.extract_strided_slice %682 {offsets = [0, 64], sizes = [1, 32], strides = [1, 1]} : vector<1x96xf32> to vector<1x32xf32>
    %c10_304 = arith.constant 10 : index
    %c0_305 = arith.constant 0 : index
    %686 = vector.load %arg22[%c10_304, %c0_305] : memref<16x32xf32, #tpu.memory_space<vmem>>, vector<1x32xf32>
    tpu.vector_store %arg22[%c10_304, %c0_305], %685 {strides = array<i32>} : memref<16x32xf32, #tpu.memory_space<vmem>>, vector<1x32xf32>,
    %687 = vector.extract_strided_slice %682 {offsets = [0, 0], sizes = [1, 32], strides = [1, 1]} : vector<1x96xf32> to vector<1x32xf32>
    %c0_306 = arith.constant 0 : index
    %c0_307 = arith.constant 0 : index
    %688 = vector.load %arg21[%c0_306, %c0_307] : memref<16x32xf32, #tpu.memory_space<vmem>>, vector<16x32xf32>
    %c0_308 = arith.constant 0 : index
    %c0_309 = arith.constant 0 : index
    %689 = vector.load %arg22[%c0_308, %c0_309] : memref<16x32xf32, #tpu.memory_space<vmem>>, vector<16x32xf32>
    %690 = tpu.iota {dimensions = array<i32: 0>} : vector<1x16xi32>
    %c10_i32 = arith.constant 10 : i32
    %691 = vector.broadcast %c10_i32 : i32 to vector<1x16xi32>
    %692 = arith.addi %691, %690 : vector<1x16xi32>
    %693 = tpu.iota {dimensions = array<i32: 1>} : vector<1x16xi32>
    %694 = arith.cmpi sle, %693, %692 : vector<1x16xi32>
    %695 = vector.extract_strided_slice %687 {offsets = [0, 0], sizes = [1, 8], strides = [1, 1]} : vector<1x32xf32> to vector<1x8xf32>
    %696 = vector.extract_strided_slice %688 {offsets = [0, 0], sizes = [16, 8], strides = [1, 1]} : vector<16x32xf32> to vector<16x8xf32>
    %cst_310 = arith.constant dense<0.000000e+00> : vector<1x16xf32>
    %697 = tpu.matmul %695, %696, %cst_310 {dimension_numbers = #tpu.dot_dimension_numbers<[1], [1], [0], [0], [0, 0, 1, 0], [], []>} : vector<1x8xf32>, vector<16x8xf32>, vector<1x16xf32> -> vector<1x16xf32>
    %cst_311 = arith.constant 0.353553385 : f32
    %698 = vector.broadcast %cst_311 : f32 to vector<1x16xf32>
    %699 = arith.mulf %697, %698 : vector<1x16xf32>
    %cst_312 = arith.constant -1.000000e+09 : f32
    %700 = vector.broadcast %cst_312 : f32 to vector<1x16xf32>
    %701 = arith.select %694, %699, %700 : vector<1x16xi1>, vector<1x16xf32>
    %cst_313 = arith.constant dense<0xFF800000> : vector<1xf32>
    %702 = vector.multi_reduction <maximumf>, %701, %cst_313 [1] : vector<1x16xf32> to vector<1xf32>
    %703 = vector.shape_cast %702 : vector<1xf32> to vector<1x1xf32>
    %704 = vector.broadcast %703 : vector<1x1xf32> to vector<1x16xf32>
    %705 = arith.subf %701, %704 : vector<1x16xf32>
    %706 = math.exp %705 : vector<1x16xf32>
    %cst_314 = arith.constant dense<0.000000e+00> : vector<1xf32>
    %707 = vector.multi_reduction <add>, %706, %cst_314 [1] : vector<1x16xf32> to vector<1xf32>
    %708 = vector.shape_cast %707 : vector<1xf32> to vector<1x1xf32>
    %709 = vector.extract_strided_slice %689 {offsets = [0, 0], sizes = [16, 8], strides = [1, 1]} : vector<16x32xf32> to vector<16x8xf32>
    %cst_315 = arith.constant dense<0.000000e+00> : vector<1x8xf32>
    %710 = tpu.matmul %706, %709, %cst_315 {dimension_numbers = #tpu.dot_dimension_numbers<[1], [0], [0], [1], [0, 0, 1, 1], [], []>} : vector<1x16xf32>, vector<16x8xf32>, vector<1x8xf32> -> vector<1x8xf32>
    %711 = tpu.reciprocal %708 {approx = true} : vector<1x1xf32> -> vector<1x1xf32>
    %712 = vector.broadcast %711 : vector<1x1xf32> to vector<1x8xf32>
    %713 = arith.mulf %710, %712 : vector<1x8xf32>
    %714 = vector.extract_strided_slice %687 {offsets = [0, 8], sizes = [1, 8], strides = [1, 1]} : vector<1x32xf32> to vector<1x8xf32>
    %715 = vector.extract_strided_slice %688 {offsets = [0, 8], sizes = [16, 8], strides = [1, 1]} : vector<16x32xf32> to vector<16x8xf32>
    %cst_316 = arith.constant dense<0.000000e+00> : vector<1x16xf32>
    %716 = tpu.matmul %714, %715, %cst_316 {dimension_numbers = #tpu.dot_dimension_numbers<[1], [1], [0], [0], [0, 0, 1, 0], [], []>} : vector<1x8xf32>, vector<16x8xf32>, vector<1x16xf32> -> vector<1x16xf32>
    %cst_317 = arith.constant 0.353553385 : f32
    %717 = vector.broadcast %cst_317 : f32 to vector<1x16xf32>
    %718 = arith.mulf %716, %717 : vector<1x16xf32>
    %cst_318 = arith.constant -1.000000e+09 : f32
    %719 = vector.broadcast %cst_318 : f32 to vector<1x16xf32>
    %720 = arith.select %694, %718, %719 : vector<1x16xi1>, vector<1x16xf32>
    %cst_319 = arith.constant dense<0xFF800000> : vector<1xf32>
    %721 = vector.multi_reduction <maximumf>, %720, %cst_319 [1] : vector<1x16xf32> to vector<1xf32>
    %722 = vector.shape_cast %721 : vector<1xf32> to vector<1x1xf32>
    %723 = vector.broadcast %722 : vector<1x1xf32> to vector<1x16xf32>
    %724 = arith.subf %720, %723 : vector<1x16xf32>
    %725 = math.exp %724 : vector<1x16xf32>
    %cst_320 = arith.constant dense<0.000000e+00> : vector<1xf32>
    %726 = vector.multi_reduction <add>, %725, %cst_320 [1] : vector<1x16xf32> to vector<1xf32>
    %727 = vector.shape_cast %726 : vector<1xf32> to vector<1x1xf32>
    %728 = vector.extract_strided_slice %689 {offsets = [0, 8], sizes = [16, 8], strides = [1, 1]} : vector<16x32xf32> to vector<16x8xf32>
    %cst_321 = arith.constant dense<0.000000e+00> : vector<1x8xf32>
    %729 = tpu.matmul %725, %728, %cst_321 {dimension_numbers = #tpu.dot_dimension_numbers<[1], [0], [0], [1], [0, 0, 1, 1], [], []>} : vector<1x16xf32>, vector<16x8xf32>, vector<1x8xf32> -> vector<1x8xf32>
    %730 = tpu.reciprocal %727 {approx = true} : vector<1x1xf32> -> vector<1x1xf32>
    %731 = vector.broadcast %730 : vector<1x1xf32> to vector<1x8xf32>
    %732 = arith.mulf %729, %731 : vector<1x8xf32>
    %733 = vector.extract_strided_slice %687 {offsets = [0, 16], sizes = [1, 8], strides = [1, 1]} : vector<1x32xf32> to vector<1x8xf32>
    %734 = vector.extract_strided_slice %688 {offsets = [0, 16], sizes = [16, 8], strides = [1, 1]} : vector<16x32xf32> to vector<16x8xf32>
    %cst_322 = arith.constant dense<0.000000e+00> : vector<1x16xf32>
    %735 = tpu.matmul %733, %734, %cst_322 {dimension_numbers = #tpu.dot_dimension_numbers<[1], [1], [0], [0], [0, 0, 1, 0], [], []>} : vector<1x8xf32>, vector<16x8xf32>, vector<1x16xf32> -> vector<1x16xf32>
    %cst_323 = arith.constant 0.353553385 : f32
    %736 = vector.broadcast %cst_323 : f32 to vector<1x16xf32>
    %737 = arith.mulf %735, %736 : vector<1x16xf32>
    %cst_324 = arith.constant -1.000000e+09 : f32
    %738 = vector.broadcast %cst_324 : f32 to vector<1x16xf32>
    %739 = arith.select %694, %737, %738 : vector<1x16xi1>, vector<1x16xf32>
    %cst_325 = arith.constant dense<0xFF800000> : vector<1xf32>
    %740 = vector.multi_reduction <maximumf>, %739, %cst_325 [1] : vector<1x16xf32> to vector<1xf32>
    %741 = vector.shape_cast %740 : vector<1xf32> to vector<1x1xf32>
    %742 = vector.broadcast %741 : vector<1x1xf32> to vector<1x16xf32>
    %743 = arith.subf %739, %742 : vector<1x16xf32>
    %744 = math.exp %743 : vector<1x16xf32>
    %cst_326 = arith.constant dense<0.000000e+00> : vector<1xf32>
    %745 = vector.multi_reduction <add>, %744, %cst_326 [1] : vector<1x16xf32> to vector<1xf32>
    %746 = vector.shape_cast %745 : vector<1xf32> to vector<1x1xf32>
    %747 = vector.extract_strided_slice %689 {offsets = [0, 16], sizes = [16, 8], strides = [1, 1]} : vector<16x32xf32> to vector<16x8xf32>
    %cst_327 = arith.constant dense<0.000000e+00> : vector<1x8xf32>
    %748 = tpu.matmul %744, %747, %cst_327 {dimension_numbers = #tpu.dot_dimension_numbers<[1], [0], [0], [1], [0, 0, 1, 1], [], []>} : vector<1x16xf32>, vector<16x8xf32>, vector<1x8xf32> -> vector<1x8xf32>
    %749 = tpu.reciprocal %746 {approx = true} : vector<1x1xf32> -> vector<1x1xf32>
    %750 = vector.broadcast %749 : vector<1x1xf32> to vector<1x8xf32>
    %751 = arith.mulf %748, %750 : vector<1x8xf32>
    %752 = vector.extract_strided_slice %687 {offsets = [0, 24], sizes = [1, 8], strides = [1, 1]} : vector<1x32xf32> to vector<1x8xf32>
    %753 = vector.extract_strided_slice %688 {offsets = [0, 24], sizes = [16, 8], strides = [1, 1]} : vector<16x32xf32> to vector<16x8xf32>
    %cst_328 = arith.constant dense<0.000000e+00> : vector<1x16xf32>
    %754 = tpu.matmul %752, %753, %cst_328 {dimension_numbers = #tpu.dot_dimension_numbers<[1], [1], [0], [0], [0, 0, 1, 0], [], []>} : vector<1x8xf32>, vector<16x8xf32>, vector<1x16xf32> -> vector<1x16xf32>
    %cst_329 = arith.constant 0.353553385 : f32
    %755 = vector.broadcast %cst_329 : f32 to vector<1x16xf32>
    %756 = arith.mulf %754, %755 : vector<1x16xf32>
    %cst_330 = arith.constant -1.000000e+09 : f32
    %757 = vector.broadcast %cst_330 : f32 to vector<1x16xf32>
    %758 = arith.select %694, %756, %757 : vector<1x16xi1>, vector<1x16xf32>
    %cst_331 = arith.constant dense<0xFF800000> : vector<1xf32>
    %759 = vector.multi_reduction <maximumf>, %758, %cst_331 [1] : vector<1x16xf32> to vector<1xf32>
    %760 = vector.shape_cast %759 : vector<1xf32> to vector<1x1xf32>
    %761 = vector.broadcast %760 : vector<1x1xf32> to vector<1x16xf32>
    %762 = arith.subf %758, %761 : vector<1x16xf32>
    %763 = math.exp %762 : vector<1x16xf32>
    %cst_332 = arith.constant dense<0.000000e+00> : vector<1xf32>
    %764 = vector.multi_reduction <add>, %763, %cst_332 [1] : vector<1x16xf32> to vector<1xf32>
    %765 = vector.shape_cast %764 : vector<1xf32> to vector<1x1xf32>
    %766 = vector.extract_strided_slice %689 {offsets = [0, 24], sizes = [16, 8], strides = [1, 1]} : vector<16x32xf32> to vector<16x8xf32>
    %cst_333 = arith.constant dense<0.000000e+00> : vector<1x8xf32>
    %767 = tpu.matmul %763, %766, %cst_333 {dimension_numbers = #tpu.dot_dimension_numbers<[1], [0], [0], [1], [0, 0, 1, 1], [], []>} : vector<1x16xf32>, vector<16x8xf32>, vector<1x8xf32> -> vector<1x8xf32>
    %768 = tpu.reciprocal %765 {approx = true} : vector<1x1xf32> -> vector<1x1xf32>
    %769 = vector.broadcast %768 : vector<1x1xf32> to vector<1x8xf32>
    %770 = arith.mulf %767, %769 : vector<1x8xf32>
    %771 = tpu.concatenate %713, %732, %751, %770 in 1 : vector<1x8xf32>, vector<1x8xf32>, vector<1x8xf32>, vector<1x8xf32> -> vector<1x32xf32>
    %c0_334 = arith.constant 0 : index
    %c0_335 = arith.constant 0 : index
    %772 = vector.load %arg9[%c0_334, %c0_335] : memref<32x32xf32, #tpu.memory_space<vmem>>, vector<32x32xf32>
    %cst_336 = arith.constant dense<0.000000e+00> : vector<1x32xf32>
    %773 = tpu.matmul %771, %772, %cst_336 {dimension_numbers = #tpu.dot_dimension_numbers<[1], [0], [0], [1], [0, 0, 1, 1], [], []>} : vector<1x32xf32>, vector<32x32xf32>, vector<1x32xf32> -> vector<1x32xf32>
    %774 = arith.addf %656, %773 : vector<1x32xf32>
    %c0_337 = arith.constant 0 : index
    %c0_338 = arith.constant 0 : index
    %775 = vector.load %arg10[%c0_337, %c0_338] : memref<1x32xf32, #tpu.memory_space<vmem>>, vector<1x32xf32>
    %776 = arith.addf %774, %775 : vector<1x32xf32>
    %c0_339 = arith.constant 0 : index
    %c0_340 = arith.constant 0 : index
    %777 = vector.load %arg11[%c0_339, %c0_340] : memref<1x32xf32, #tpu.memory_space<vmem>>, vector<1x32xf32>
    %c0_341 = arith.constant 0 : index
    %c0_342 = arith.constant 0 : index
    %778 = vector.load %arg12[%c0_341, %c0_342] : memref<1x32xf32, #tpu.memory_space<vmem>>, vector<1x32xf32>
    %cst_343 = arith.constant dense<0.000000e+00> : vector<1xf32>
    %779 = vector.multi_reduction <add>, %776, %cst_343 [1] : vector<1x32xf32> to vector<1xf32>
    %780 = vector.shape_cast %779 : vector<1xf32> to vector<1x1xf32>
    %cst_344 = arith.constant 3.200000e+01 : f32
    %781 = vector.broadcast %cst_344 : f32 to vector<1x1xf32>
    %782 = arith.divf %780, %781 : vector<1x1xf32>
    %783 = vector.broadcast %782 : vector<1x1xf32> to vector<1x32xf32>
    %784 = arith.subf %776, %783 : vector<1x32xf32>
    %785 = arith.mulf %784, %784 : vector<1x32xf32>
    %cst_345 = arith.constant dense<0.000000e+00> : vector<1xf32>
    %786 = vector.multi_reduction <add>, %785, %cst_345 [1] : vector<1x32xf32> to vector<1xf32>
    %787 = vector.shape_cast %786 : vector<1xf32> to vector<1x1xf32>
    %cst_346 = arith.constant 3.200000e+01 : f32
    %788 = vector.broadcast %cst_346 : f32 to vector<1x1xf32>
    %789 = arith.divf %787, %788 : vector<1x1xf32>
    %790 = vector.broadcast %782 : vector<1x1xf32> to vector<1x32xf32>
    %791 = arith.subf %776, %790 : vector<1x32xf32>
    %cst_347 = arith.constant 9.99999974E-6 : f32
    %792 = vector.broadcast %cst_347 : f32 to vector<1x1xf32>
    %793 = arith.addf %789, %792 : vector<1x1xf32>
    %794 = math.rsqrt %793 : vector<1x1xf32>
    %795 = vector.broadcast %794 : vector<1x1xf32> to vector<1x32xf32>
    %796 = arith.mulf %791, %795 : vector<1x32xf32>
    %797 = arith.mulf %796, %777 : vector<1x32xf32>
    %798 = arith.addf %797, %778 : vector<1x32xf32>
    %c0_348 = arith.constant 0 : index
    %c0_349 = arith.constant 0 : index
    %799 = vector.load %arg13[%c0_348, %c0_349] : memref<32x128xf32, #tpu.memory_space<vmem>>, vector<32x128xf32>
    %cst_350 = arith.constant dense<0.000000e+00> : vector<1x128xf32>
    %800 = tpu.matmul %798, %799, %cst_350 {dimension_numbers = #tpu.dot_dimension_numbers<[1], [0], [0], [1], [0, 0, 1, 1], [], []>} : vector<1x32xf32>, vector<32x128xf32>, vector<1x128xf32> -> vector<1x128xf32>
    %c0_351 = arith.constant 0 : index
    %c0_352 = arith.constant 0 : index
    %801 = vector.load %arg14[%c0_351, %c0_352] : memref<1x128xf32, #tpu.memory_space<vmem>>, vector<1x128xf32>
    %802 = arith.addf %800, %801 : vector<1x128xf32>
    %cst_353 = arith.constant 5.000000e-01 : f32
    %803 = vector.broadcast %cst_353 : f32 to vector<1x128xf32>
    %804 = arith.mulf %803, %802 : vector<1x128xf32>
    %cst_354 = arith.constant 4.471500e-02 : f32
    %805 = vector.broadcast %cst_354 : f32 to vector<1x128xf32>
    %806 = arith.mulf %805, %802 : vector<1x128xf32>
    %807 = arith.mulf %806, %802 : vector<1x128xf32>
    %808 = arith.mulf %807, %802 : vector<1x128xf32>
    %809 = arith.addf %802, %808 : vector<1x128xf32>
    %cst_355 = arith.constant 0.797884583 : f32
    %810 = vector.broadcast %cst_355 : f32 to vector<1x128xf32>
    %811 = arith.mulf %810, %809 : vector<1x128xf32>
    %812 = math.tanh %811 : vector<1x128xf32>
    %cst_356 = arith.constant 1.000000e+00 : f32
    %813 = vector.broadcast %cst_356 : f32 to vector<1x128xf32>
    %814 = arith.addf %813, %812 : vector<1x128xf32>
    %815 = arith.mulf %804, %814 : vector<1x128xf32>
    %c0_357 = arith.constant 0 : index
    %c0_358 = arith.constant 0 : index
    %816 = vector.load %arg15[%c0_357, %c0_358] : memref<128x32xf32, #tpu.memory_space<vmem>>, vector<128x32xf32>
    %cst_359 = arith.constant dense<0.000000e+00> : vector<1x32xf32>
    %817 = tpu.matmul %815, %816, %cst_359 {dimension_numbers = #tpu.dot_dimension_numbers<[1], [0], [0], [1], [0, 0, 1, 1], [], []>} : vector<1x128xf32>, vector<128x32xf32>, vector<1x32xf32> -> vector<1x32xf32>
    %818 = arith.addf %776, %817 : vector<1x32xf32>
    %c0_360 = arith.constant 0 : index
    %c0_361 = arith.constant 0 : index
    %819 = vector.load %arg16[%c0_360, %c0_361] : memref<1x32xf32, #tpu.memory_space<vmem>>, vector<1x32xf32>
    %820 = arith.addf %818, %819 : vector<1x32xf32>
    %c0_362 = arith.constant 0 : index
    %c0_363 = arith.constant 0 : index
    %821 = vector.load %arg17[%c0_362, %c0_363] : memref<1x32xf32, #tpu.memory_space<vmem>>, vector<1x32xf32>
    %c0_364 = arith.constant 0 : index
    %c0_365 = arith.constant 0 : index
    %822 = vector.load %arg18[%c0_364, %c0_365] : memref<1x32xf32, #tpu.memory_space<vmem>>, vector<1x32xf32>
    %cst_366 = arith.constant dense<0.000000e+00> : vector<1xf32>
    %823 = vector.multi_reduction <add>, %820, %cst_366 [1] : vector<1x32xf32> to vector<1xf32>
    %824 = vector.shape_cast %823 : vector<1xf32> to vector<1x1xf32>
    %cst_367 = arith.constant 3.200000e+01 : f32
    %825 = vector.broadcast %cst_367 : f32 to vector<1x1xf32>
    %826 = arith.divf %824, %825 : vector<1x1xf32>
    %827 = vector.broadcast %826 : vector<1x1xf32> to vector<1x32xf32>
    %828 = arith.subf %820, %827 : vector<1x32xf32>
    %829 = arith.mulf %828, %828 : vector<1x32xf32>
    %cst_368 = arith.constant dense<0.000000e+00> : vector<1xf32>
    %830 = vector.multi_reduction <add>, %829, %cst_368 [1] : vector<1x32xf32> to vector<1xf32>
    %831 = vector.shape_cast %830 : vector<1xf32> to vector<1x1xf32>
    %cst_369 = arith.constant 3.200000e+01 : f32
    %832 = vector.broadcast %cst_369 : f32 to vector<1x1xf32>
    %833 = arith.divf %831, %832 : vector<1x1xf32>
    %834 = vector.broadcast %826 : vector<1x1xf32> to vector<1x32xf32>
    %835 = arith.subf %820, %834 : vector<1x32xf32>
    %cst_370 = arith.constant 9.99999974E-6 : f32
    %836 = vector.broadcast %cst_370 : f32 to vector<1x1xf32>
    %837 = arith.addf %833, %836 : vector<1x1xf32>
    %838 = math.rsqrt %837 : vector<1x1xf32>
    %839 = vector.broadcast %838 : vector<1x1xf32> to vector<1x32xf32>
    %840 = arith.mulf %835, %839 : vector<1x32xf32>
    %841 = arith.mulf %840, %821 : vector<1x32xf32>
    %842 = arith.addf %841, %822 : vector<1x32xf32>
    %843 = arith.addf %632, %842 : vector<1x32xf32>
    %c0_371 = arith.constant 0 : index
    %c0_372 = arith.constant 0 : index
    %844 = vector.load %arg3[%c0_371, %c0_372] : memref<32x256xf32, #tpu.memory_space<vmem>>, vector<32x256xf32>
    %cst_373 = arith.constant dense<0.000000e+00> : vector<1x256xf32>
    %845 = tpu.matmul %842, %844, %cst_373 {dimension_numbers = #tpu.dot_dimension_numbers<[1], [0], [0], [1], [0, 0, 1, 1], [], []>} : vector<1x32xf32>, vector<32x256xf32>, vector<1x256xf32> -> vector<1x256xf32>
    %cst_374 = arith.constant dense<0xFF800000> : vector<1xf32>
    %846 = vector.multi_reduction <maximumf>, %845, %cst_374 [1] : vector<1x256xf32> to vector<1xf32>
    %847 = vector.shape_cast %846 : vector<1xf32> to vector<1x1xf32>
    %848 = tpu.iota {dimensions = array<i32: 1>} : vector<1x256xi32>
    %849 = vector.broadcast %847 : vector<1x1xf32> to vector<1x256xf32>
    %850 = arith.cmpf oeq, %845, %849 : vector<1x256xf32>
    %c256_i32_375 = arith.constant 256 : i32
    %851 = vector.broadcast %c256_i32_375 : i32 to vector<1x256xi32>
    %852 = arith.select %850, %848, %851 : vector<1x256xi1>, vector<1x256xi32>
    %cst_376 = arith.constant dense<2147483647> : vector<1xi32>
    %853 = vector.multi_reduction <minsi>, %852, %cst_376 [1] : vector<1x256xi32> to vector<1xi32>
    %854 = vector.shape_cast %853 : vector<1xi32> to vector<1x1xi32>
    %c3_i32 = arith.constant 3 : i32
    %855 = vector.broadcast %c3_i32 : i32 to vector<1x4xi32>
    %856 = arith.cmpi eq, %224, %855 : vector<1x4xi32>
    %857 = vector.shape_cast %854 : vector<1x1xi32> to vector<1x1xi32>
    %858 = vector.broadcast %857 : vector<1x1xi32> to vector<1x4xi32>
    %859 = arith.select %856, %858, %652 : vector<1x4xi1>, vector<1x4xi32>
    %cst_377 = arith.constant 2.500000e-01 : f32
    %860 = vector.broadcast %cst_377 : f32 to vector<1x32xf32>
    %861 = arith.mulf %843, %860 : vector<1x32xf32>
    %c0_378 = arith.constant 0 : index
    %c0_379 = arith.constant 0 : index
    %c0_380 = arith.constant 0 : index
    %862 = vector.load %arg19[%c0_378, %c0_379, %c0_380] : memref<1x1x32xf32, #tpu.memory_space<vmem>>, vector<1x1x32xf32>
    %863 = vector.shape_cast %862 : vector<1x1x32xf32> to vector<1x32xf32>
    %864 = vector.shape_cast %861 : vector<1x32xf32> to vector<1x1x32xf32>
    tpu.vector_store %arg19[%c0_378, %c0_379, %c0_380], %864 {strides = array<i32>} : memref<1x1x32xf32, #tpu.memory_space<vmem>>, vector<1x1x32xf32>,
    %c0_381 = arith.constant 0 : index
    %c0_382 = arith.constant 0 : index
    %c0_383 = arith.constant 0 : index
    %865 = vector.load %arg20[%c0_381, %c0_382, %c0_383] : memref<1x1x4xi32, #tpu.memory_space<vmem>>, vector<1x1x4xi32>
    %866 = vector.shape_cast %865 : vector<1x1x4xi32> to vector<1x4xi32>
    %867 = vector.shape_cast %859 : vector<1x4xi32> to vector<1x1x4xi32>
    tpu.vector_store %arg20[%c0_381, %c0_382, %c0_383], %867 {strides = array<i32>} : memref<1x1x4xi32, #tpu.memory_space<vmem>>, vector<1x1x4xi32>,
    return
  }
  func.func @transform_0(%arg0: i32) -> (i32, i32) {
    %c0_i32 = arith.constant 0 : i32
    %c0_i32_0 = arith.constant 0 : i32
    return %arg0, %c0_i32 : i32, i32
  }
  func.func @transform_1(%arg0: i32) -> (i32, i32) {
    %c0_i32 = arith.constant 0 : i32
    %c0_i32_0 = arith.constant 0 : i32
    %c0_i32_1 = arith.constant 0 : i32
    return %c0_i32, %c0_i32_0 : i32, i32
  }
  func.func @transform_2(%arg0: i32) -> (i32, i32) {
    %c0_i32 = arith.constant 0 : i32
    %c0_i32_0 = arith.constant 0 : i32
    %c0_i32_1 = arith.constant 0 : i32
    return %c0_i32, %c0_i32_0 : i32, i32
  }
  func.func @transform_3(%arg0: i32) -> (i32, i32) {
    %c0_i32 = arith.constant 0 : i32
    %c0_i32_0 = arith.constant 0 : i32
    %c0_i32_1 = arith.constant 0 : i32
    return %c0_i32, %c0_i32_0 : i32, i32
  }
  func.func @transform_4(%arg0: i32) -> (i32, i32) {
    %c0_i32 = arith.constant 0 : i32
    %c0_i32_0 = arith.constant 0 : i32
    %c0_i32_1 = arith.constant 0 : i32
    return %c0_i32, %c0_i32_0 : i32, i32
  }
  func.func @transform_5(%arg0: i32) -> (i32, i32) {
    %c0_i32 = arith.constant 0 : i32
    %c0_i32_0 = arith.constant 0 : i32
    %c0_i32_1 = arith.constant 0 : i32
    return %c0_i32, %c0_i32_0 : i32, i32
  }
  func.func @transform_6(%arg0: i32) -> (i32, i32) {
    %c0_i32 = arith.constant 0 : i32
    %c0_i32_0 = arith.constant 0 : i32
    %c0_i32_1 = arith.constant 0 : i32
    return %c0_i32, %c0_i32_0 : i32, i32
  }
  func.func @transform_7(%arg0: i32) -> (i32, i32) {
    %c0_i32 = arith.constant 0 : i32
    %c0_i32_0 = arith.constant 0 : i32
    %c0_i32_1 = arith.constant 0 : i32
    return %c0_i32, %c0_i32_0 : i32, i32
  }
  func.func @transform_8(%arg0: i32) -> (i32, i32) {
    %c0_i32 = arith.constant 0 : i32
    %c0_i32_0 = arith.constant 0 : i32
    %c0_i32_1 = arith.constant 0 : i32
    return %c0_i32, %c0_i32_0 : i32, i32
  }
  func.func @transform_9(%arg0: i32) -> (i32, i32) {
    %c0_i32 = arith.constant 0 : i32
    %c0_i32_0 = arith.constant 0 : i32
    %c0_i32_1 = arith.constant 0 : i32
    return %c0_i32, %c0_i32_0 : i32, i32
  }
  func.func @transform_10(%arg0: i32) -> (i32, i32) {
    %c0_i32 = arith.constant 0 : i32
    %c0_i32_0 = arith.constant 0 : i32
    %c0_i32_1 = arith.constant 0 : i32
    return %c0_i32, %c0_i32_0 : i32, i32
  }
  func.func @transform_11(%arg0: i32) -> (i32, i32) {
    %c0_i32 = arith.constant 0 : i32
    %c0_i32_0 = arith.constant 0 : i32
    %c0_i32_1 = arith.constant 0 : i32
    return %c0_i32, %c0_i32_0 : i32, i32
  }
  func.func @transform_12(%arg0: i32) -> (i32, i32) {
    %c0_i32 = arith.constant 0 : i32
    %c0_i32_0 = arith.constant 0 : i32
    %c0_i32_1 = arith.constant 0 : i32
    return %c0_i32, %c0_i32_0 : i32, i32
  }
  func.func @transform_13(%arg0: i32) -> (i32, i32) {
    %c0_i32 = arith.constant 0 : i32
    %c0_i32_0 = arith.constant 0 : i32
    %c0_i32_1 = arith.constant 0 : i32
    return %c0_i32, %c0_i32_0 : i32, i32
  }
  func.func @transform_14(%arg0: i32) -> (i32, i32) {
    %c0_i32 = arith.constant 0 : i32
    %c0_i32_0 = arith.constant 0 : i32
    %c0_i32_1 = arith.constant 0 : i32
    return %c0_i32, %c0_i32_0 : i32, i32
  }
  func.func @transform_15(%arg0: i32) -> (i32, i32) {
    %c0_i32 = arith.constant 0 : i32
    %c0_i32_0 = arith.constant 0 : i32
    %c0_i32_1 = arith.constant 0 : i32
    return %c0_i32, %c0_i32_0 : i32, i32
  }
  func.func @transform_16(%arg0: i32) -> (i32, i32) {
    %c0_i32 = arith.constant 0 : i32
    %c0_i32_0 = arith.constant 0 : i32
    %c0_i32_1 = arith.constant 0 : i32
    return %c0_i32, %c0_i32_0 : i32, i32
  }
  func.func @transform_17(%arg0: i32) -> (i32, i32) {
    %c0_i32 = arith.constant 0 : i32
    %c0_i32_0 = arith.constant 0 : i32
    %c0_i32_1 = arith.constant 0 : i32
    return %c0_i32, %c0_i32_0 : i32, i32
  }
  func.func @transform_18(%arg0: i32) -> (i32, i32, i32) {
    %c0_i32 = arith.constant 0 : i32
    %c0_i32_0 = arith.constant 0 : i32
    %c0_i32_1 = arith.constant 0 : i32
    return %arg0, %c0_i32, %c0_i32_0 : i32, i32, i32
  }
  func.func @transform_19(%arg0: i32) -> (i32, i32, i32) {
    %c0_i32 = arith.constant 0 : i32
    %c0_i32_0 = arith.constant 0 : i32
    %c0_i32_1 = arith.constant 0 : i32
    return %arg0, %c0_i32, %c0_i32_0 : i32, i32, i32
  }
}

</mosaic_0001>

<bundles_post_ra>
// kernel: generator_forward.1
= control target key start
LH: loop header
LB: loop body
LE: loop exit
PB: predicated region body
PF: predicated region fallthrough
CT: control target
= control target key end

     0   :  { %s9578_s0 = inlined_call_operand.vmem [shape: s32[16,1], index: 0, kind: input, shape index: {}]   ;;  %s9579_s1 = inlined_call_operand.vmem [shape: f32[256,32], index: 1, kind: input, shape index: {}]   ;;  %s9580_s2 = inlined_call_operand.vmem [shape: f32[32,256], index: 2, kind: input, shape index: {}]   ;;  %s9581_s3 = inlined_call_operand.vmem [shape: f32[64,32], index: 3, kind: input, shape index: {}]   ;;  %s9582_s4 = inlined_call_operand.vmem [shape: f32[1,32], index: 4, kind: input, shape index: {}]   ;;  %s9583_s5 = inlined_call_operand.vmem [shape: f32[1,32], index: 5, kind: input, shape index: {}]   ;;  %s9584_s6 = inlined_call_operand.vmem [shape: f32[32,96], index: 6, kind: input, shape index: {}]   ;;  %s9585_s7 = inlined_call_operand.vmem [shape: f32[1,96], index: 7, kind: input, shape index: {}]   ;;  %s9586_s8 = inlined_call_operand.vmem [shape: f32[32,32], index: 8, kind: input, shape index: {}]   ;;  %s9587_s9 = inlined_call_operand.vmem [shape: f32[1,32], index: 9, kind: input, shape index: {}]   ;;  %s9588_s10 = inlined_call_operand.vmem [shape: f32[1,32], index: 10, kind: input, shape index: {}]   ;;  %s9589_s11 = inlined_call_operand.vmem [shape: f32[1,32], index: 11, kind: input, shape index: {}]   ;;  %s9590_s12 = inlined_call_operand.vmem [shape: f32[32,128], index: 12, kind: input, shape index: {}]   ;;  %s9591_s13 = inlined_call_operand.vmem [shape: f32[1,128], index: 13, kind: input, shape index: {}]   ;;  %s9592_s14 = inlined_call_operand.vmem [shape: f32[128,32], index: 14, kind: input, shape index: {}]   ;;  %s9593_s15 = inlined_call_operand.vmem [shape: f32[1,32], index: 15, kind: input, shape index: {}]   ;;  %s9594_s16 = inlined_call_operand.vmem [shape: f32[1,32], index: 16, kind: input, shape index: {}]   ;;  %s9595_s17 = inlined_call_operand.vmem [shape: f32[1,32], index: 17, kind: input, shape index: {}]   ;;  %s9596_s18 = inlined_call_operand.hbm [shape: f32[2,1,32], index: 18, kind: output, shape index: {0}]   ;;  %s9597_s19 = inlined_call_operand.vmem [shape: s32[2,1,4], index: 19, kind: output, shape index: {1}]  }
   0x1   :  { %9632 = sst [smem:[#allocation17_spill]] %s9578_s0 }
   0x2   :  { %9633 = sst [smem:[#allocation18_spill]] %s9579_s1 }
   0x3   :  { %9634 = sst [smem:[#allocation19_spill]] %s9580_s2 }
   0x4   :  { %9635 = sst [smem:[#allocation20_spill]] %s9581_s3 }
   0x5   :  { %9636 = sst [smem:[#allocation21_spill]] %s9582_s4 }
   0x6   :  { %9637 = sst [smem:[#allocation22_spill]] %s9594_s16 }
   0x7   :  { %9638 = sst [smem:[#allocation23_spill]] %s9595_s17 }
   0x8   :  { %9639 = sst [smem:[#allocation24_spill]] %s9596_s18 }
   0x9   :  { %9640 = sst [smem:[#allocation25_spill]] %s9597_s19 }
   0xa   :  { %25 = vsyncpa [#allocation5], 0 }
   0xb   :  { %27 = vsyncpa [#allocation5 + $0x1], 0  ;;  %s7945_s0 = smov 0   ;;  %s7947_s30 = smov 0  }
   0xc   :  { %s7949_s20 = smov 0   ;;  %s7951_s21 = smov 0  }
   0xd LB: > { %9641 = sst [smem:[#allocation7_spill]] %s7817_s0  ;;  %s7966_s1 = sadd.s32 4294967295, %s7829_s21   ;;  %s7829_s21 = sphi %s7951_s21, %s9682_s21   ;;  %s7825_s20 = sphi %s7949_s20, %s9685_s20   ;;  %s7821_s30 = sphi %s7947_s30, %s9684_s30   ;;  %s7817_s0 = sphi %s7945_s0, %s9683_s0  }
   0xe   : > { %9642 = sst [smem:[#allocation8_spill]] %s7821_s30  ;;  %s6084_s22 = sadd.s32 4294967294, %s7829_s21  }
   0xf   : > { %9643 = sst [smem:[#allocation9_spill]] %s7825_s20  ;;  %s7970_s2 = sadd.s32 1, %s7829_s21  }
  0x10   : > { %9644 = sst [smem:[#allocation10_spill]] %s7829_s21  ;;  %s423_s23 = sadd.s32 1, %s7825_s20 }
  0x11   : > { %9645 = sst [smem:[#allocation11_spill]] %s7966_s1  ;;  %s420_s24 = ssub.s32 %s7829_s21, %s7970_s2 }
  0x12   : > { %9646 = sst [smem:[#allocation12_spill]] %s7970_s2  ;;  %p433_p0 = scmp.ne.s32.totalorder %s7825_s20, %s7821_s30 }
  0x13   : > { %p421_p1 = scmp.eq.s32.totalorder %s420_s24, 0  ;;  %p434_p2 = scmp.eq.s32.totalorder %s7966_s1, 1 }
  0x14   : > { %p439_p3 = scmp.ne.s32.totalorder %s7821_s30, %s7817_s0  ;;  %p440_p4 = scmp.eq.s32.totalorder %s6084_s22, 1 }
  0x15   : > { %s7981_s25 = scalar_select %p421_p1, %s7825_s20, %s423_s23  }
  0x16   : > { %p7983_p5 = por %p434_p2, %p433_p0  ;;  %p7987_p6 = por %p440_p4, %p439_p3 }
  0x17   : > { %9647 = sst [smem:[#allocation13_spill]] %s7981_s25  ;;  %p6087_p7 = scmp.ge.s32.totalorder %s7829_s21, 1 }
  0x18   : > { %s9648_s3 = scalar_select %p7983_p5, 1, 0 }
  0x19   : > { %s9650_s26 = scalar_select %p7987_p6, 1, 0 }
  0x1a   : > { %9649 = sst [smem:[#allocation14_spill]] %s9648_s3  ;;  %p542_p8 = scmp.lt.s32.totalorder %s7829_s21, 3 }
  0x1b   : > { %9651 = sst [smem:[#allocation15_spill]] %s9650_s26 }
  0x1c   : > { %p543_p9 = pnand %p6087_p7, %p542_p8 }
  0x1e   : > { %546 = sbr.rel (%p543_p9) target bundleno = 18901 (0x49d5), region = 92 }
  0x25   : > { %p599_p10 = scmp.lt.s32.totalorder %s7966_s1, 1  ;;  %s9652_s29 = sld [smem:[#allocation18_spill]]  ;;  %v7831_v3 = vmov 0   ;;  %v610_v50 = vlaneseq  ;;  %v7832_v54 = vmov 1.0   ;;  %vm606_vm2 = vcmask 261120  }
  0x26   : > { %7550 = vset.pattern.permute.xlu0 %v7831_v3  ;;  %s9654_s21 = sld [smem:[#allocation17_spill]]  ;;  %s9655_s23 = sld [smem:[#allocation20_spill]]  ;;  %v756_v3 = vld [vmem:[%s9584_s6 + $0x8] sm:$0xff]  ;;  %vm7834_vm3 = vmmov 0   ;;  %vm855_vm4 = vcmask 64512   ;;  %vm936_vm7 = vcmask 130048  }
  0x27   : > { %s8015_s22 = scalar_select %p599_p10, %s7966_s1, 1  ;;  %v8146_v51 = vand.u32 127, %v610_v50  ;;  %vm8218_vm5 = vmpackc.low %vm855_vm4, %vm855_vm4  ;;  %vm1559_vm8 = vcmask 195584   ;;  %vm1976_vm9 = vcmask 1040384  }
  0x28   : > { %s9656_s4 = sld [smem:[#allocation21_spill]]  ;;  %s9620_s2 = smov 64  }
  0x29   : > { %9653 = sst [smem:[#allocation16_spill]] %s8015_s22  ;;  %s6088_s28 = sshll.u32 %s8015_s22, 3  ;;  %v8149_v52 = vadd.s32 128, %v8146_v51 }
  0x2a   : > { %s9622_s0 = smov 96   ;;  %s9614_s26 = smov 120  }
  0x2b   : > { %v638_v0 = vld [vmem:[%s9652_s29 + $0x80] sm:$0xff]  ;;  %v639_v1 = vld [vmem:[%s9652_s29 + $0x88] sm:$0xff]  ;;  %v640_v6 = vld [vmem:[%s9652_s29 + $0x90] sm:$0xff]  ;;  %s9612_s24 = smov 112   ;;  %s9610_s27 = smov 104  }
  0x2c   : > { %v622_v2 = vld [vmem:[%s9652_s29] sm:$0xff]  ;;  %v8003_v4 = vpack.c.bf16 %v639_v1, %v638_v0  ;;  %v623_v5 = vld [vmem:[%s9652_s29 + $0x8] sm:$0xff]  ;;  %v641_v7 = vld [vmem:[%s9652_s29 + $0x98] sm:$0xff]  ;;  %s602_s20 = scalar_lea.vmem %s9654_s21, %s6088_s28  ;;  %s9608_s25 = smov 16  }
  0x2d   : > { %v8017_v8 = vpack.c.bf16 %v623_v5, %v622_v2  ;;  %v8019_v9 = vpack.c.bf16 %v641_v7, %v640_v6  ;;  %v624_v10 = vld [vmem:[%s9652_s29 + $0x10] sm:$0xff]  ;;  %v625_v11 = vld [vmem:[%s9652_s29 + $0x18] sm:$0xff]  ;;  %v642_v12 = vld [vmem:[%s9652_s29 + $0xa0] sm:$0xff]  ;;  %v7833_v6 = vmov 0.0|0.0   ;;  %s9618_s21 = smov 8   ;;  %s9659_s19 = sld [smem:[#allocation19_spill]] }
  0x2e   : > { %7059 = vmatprep.subr.bf16.mxu0 %v8003_v4  ;;  %v643_v13 = vld [vmem:[%s9652_s29 + $0xa8] sm:$0xff]  ;;  %v8036_v14 = vpack.c.bf16 %v625_v11, %v624_v10  ;;  %v626_v16 = vld [vmem:[%s9652_s29 + $0x20] sm:$0xff]  ;;  %v644_v19 = vld [vmem:[%s9652_s29 + $0xb0] sm:$0xff]  ;;  %7090 = vmatprep.subr.bf16.mxu1 %v7833_v6  ;;  %v7835_v11 = vmov 0.0   ;;  %s9660_s16 = sld [smem:[#allocation22_spill]]  ;;  %s9661_s17 = sld [smem:[#allocation23_spill]] }
  0x2f   : > { %7061 = vmatpush3.bf16.msra.mxu0 %v8017_v8  ;;  %v8042_v15 = vpack.c.bf16 %v643_v13, %v642_v12  ;;  %v627_v17 = vld [vmem:[%s9652_s29 + $0x28] sm:$0xff]  ;;  %v609_v18 = vld [vmem:[%s602_s20] sm:$0xff]  ;;  %v645_v20 = vld [vmem:[%s9652_s29 + $0xb8] sm:$0xff]  ;;  %6570 = vmatprep.mubr.msk.f32.mxu1 %vm7834_vm3, %v7835_v11  ;;  %607 = vst.msk [vmem:[#allocation3] sm:$0xff] %vm606_vm2, %v7835_v11  ;;  %s9662_s22 = smov 120   ;;  %s9667_s28 = smov 24  }
  0x30   : > { %7063 = vmatprep.subr.bf16.mxu0 %v8019_v9  ;;  %614 = vperm.xlu0 %7550, %v609_v18   ;;  %v8057_v21 = vpack.c.bf16 %v627_v17, %v626_v16  ;;  %v8060_v22 = vpack.c.bf16 %v645_v20, %v644_v19  ;;  %v628_v23 = vld [vmem:[%s9652_s29 + $0x30] sm:$0xff]  ;;  %v629_v24 = vld [vmem:[%s9652_s29 + $0x38] sm:$0xff]  ;;  %v646_v25 = vld [vmem:[%s9652_s29 + $0xc0] sm:$0xff]  ;;  %608 = vst.msk [vmem:[#allocation3 + $0x8] sm:$0xff] %vm606_vm2, %v7835_v11  ;;  %s9670_s30 = sld [smem:[#allocation22_spill]]  ;;  %s9672_s1 = sld [smem:[#allocation8_spill]] }
  0x31   : > { %v647_v26 = vld [vmem:[%s9652_s29 + $0xc8] sm:$0xff]  ;;  %v8075_v27 = vpack.c.bf16 %v629_v24, %v628_v23  ;;  %v630_v29 = vld [vmem:[%s9652_s29 + $0x40] sm:$0xff]  ;;  %v648_v31 = vld [vmem:[%s9652_s29 + $0xd0] sm:$0xff] }
  0x32   : > { %v8078_v28 = vpack.c.bf16 %v647_v26, %v646_v25  ;;  %v631_v30 = vld [vmem:[%s9652_s29 + $0x48] sm:$0xff]  ;;  %v649_v32 = vld [vmem:[%s9652_s29 + $0xd8] sm:$0xff]  ;;  %v632_v35 = vld [vmem:[%s9652_s29 + $0x50] sm:$0xff] }
  0x33   : > { %7065 = vmatpush3.bf16.msra.mxu0 %v8036_v14  ;;  %v8093_v33 = vpack.c.bf16 %v631_v30, %v630_v29  ;;  %v8096_v34 = vpack.c.bf16 %v649_v32, %v648_v31  ;;  %v633_v36 = vld [vmem:[%s9652_s29 + $0x58] sm:$0xff]  ;;  %v650_v37 = vld [vmem:[%s9652_s29 + $0xe0] sm:$0xff]  ;;  %v651_v38 = vld [vmem:[%s9652_s29 + $0xe8] sm:$0xff] }
  0x34   : > { %7067 = vmatprep.subr.bf16.mxu0 %v8042_v15  ;;  %v8111_v39 = vpack.c.bf16 %v633_v36, %v632_v35  ;;  %v8114_v40 = vpack.c.bf16 %v651_v38, %v650_v37  ;;  %v634_v41 = vld [vmem:[%s9652_s29 + $0x60] sm:$0xff]  ;;  %v635_v42 = vld [vmem:[%s9652_s29 + $0x68] sm:$0xff]  ;;  %v652_v43 = vld [vmem:[%s9652_s29 + $0xf0] sm:$0xff] }
  0x35   : > { %v653_v44 = vld [vmem:[%s9652_s29 + $0xf8] sm:$0xff]  ;;  %v8129_v45 = vpack.c.bf16 %v635_v42, %v634_v41  ;;  %v636_v47 = vld [vmem:[%s9652_s29 + $0x70] sm:$0xff]  ;;  %v654_v56 = vld [vmem:[%s9655_s23] sm:$0xff] }
  0x36   : > { %v8132_v46 = vpack.c.bf16 %v653_v44, %v652_v43  ;;  %v637_v48 = vld [vmem:[%s9652_s29 + $0x78] sm:$0xff]  ;;  %v755_v2 = vld [vmem:[%s9584_s6] sm:$0xff]  ;;  %v757_v5 = vld [vmem:[%s9584_s6 + $0x10] sm:$0xff] }
  0x37   : > { %7069 = vmatpush3.bf16.msra.mxu0 %v8057_v21  ;;  %v8141_v49 = vpack.c.bf16 %v637_v48, %v636_v47  ;;  %v8174_v7 = vpack.c.bf16 %v756_v3, %v755_v2  ;;  %v758_v10 = vld [vmem:[%s9584_s6 + $0x18] sm:$0xff]  ;;  %v6093_v19 = vld [vmem:[%s9656_s4] ss:$0 sm:$0xff]  ;;  %v849_v36 = vld [vmem:[#allocation2 + $0x8] sm:$0xff]  ;;  %v8237_v48 = vshrl.u32 %v610_v50, 7 }
  0x38   : > { %7071 = vmatprep.subr.bf16.mxu0 %v8060_v22  ;;  %v8189_v12 = vpack.c.bf16 %v758_v10, %v757_v5  ;;  %v6094_v23 = vld [vmem:[%s9583_s5] ss:$0 sm:$0xff]  ;;  %v851_v44 = vld [vmem:[#allocation3 + $0x8] sm:$0xff] }
  0x39   : > { %7092 = vmatpush3.bf16.msra.mxu1 %v8174_v7  ;;  %v6095_v26 = vld [vmem:[%s9585_s7] ss:$0 sm:$0xff]  ;;  %vm854_vm6 = vcmp.le.s32.totalorder %v8146_v51, %v8237_v48 }
  0x3a   : > { %7093 = vmatprep.subr.bf16.mxu1 %v7833_v6 }
  0x3b   : > { %7073 = vmatpush3.bf16.msra.mxu0 %v8075_v27 }
  0x3c   : > { %7075 = vmatprep.subr.bf16.mxu0 %v8078_v28 }
  0x3d   : > { %7095 = vmatpush3.bf16.msra.mxu1 %v8189_v12 }
  0x3e   : > { %7096 = vmatprep.subr.bf16.mxu1 %v7833_v6 }
  0x3f   : > { %7077 = vmatpush3.bf16.msra.mxu0 %v8093_v33 }
  0x40   : > { %7079 = vmatprep.subr.bf16.mxu0 %v8096_v34 }
  0x43   : > { %7081 = vmatpush3.bf16.msra.mxu0 %v8111_v39 }
  0x44   : > { %7083 = vmatprep.subr.bf16.mxu0 %v8114_v40 }
  0x47   : > { %7085 = vmatpush3.bf16.msra.mxu0 %v8129_v45 }
  0x48   : > { %7087 = vmatprep.subr.bf16.mxu0 %v8132_v46 }
  0x4b   : > { %7089 = vmatpush3.bf16.msra.mxu0 %v8141_v49 }
  0x4c   : > { %7124 = vmatprep.subr.bf16.mxu0 %v7833_v6 }
  0xaf   : > { %v615_v53 = vpop.permute.xlu0 %614 }
  0xb0   : > { %vm617_vm0 = vcmp.eq.s32.totalorder %v615_v53, %v8149_v52  ;;  %vm616_vm1 = vcmp.eq.s32.totalorder %v615_v53, %v8146_v51 }
  0xb1   : > { %6091 = vmatprep.mubr.msk.f32.mxu0 %vm617_vm0, %v7832_v54  ;;  %vm2117_vm0 = vcmask 253952  }
  0xb2   : > { %6092 = vmatmul.mubr.msk.f32.vlgmr.msra.gmra.mrb[0].mxu0 %vm616_vm1, %v7832_v54 }
  0xb3   : > { %6637 = vmatprep.mubr.msk.f32.mxu0 %vm7834_vm3, %v7835_v11 }
 0x185   : > { %v6230_v55 = vpop.f32.mrb[0].mxu0 }
 0x186   : > { %v6231_v57 = vpop.f32.mrb[1].mxu0 }
 0x187   : > { %v6232_v58 = vadd.f32 %v6231_v57, %v6230_v55 }
 0x189   : > { %v8158_v59 = vadd.f32 %v6232_v58, %v654_v56 }
 0x18b   : > { %v727_v60 = vsel %vm606_vm2, %v8158_v59, 0.0 }
 0x18c   : > { %728 = vadd.xlane.f32.xlu0 %v727_v60 }
 0x219   : > { %v729_v61 = vpop.xlane.xlu0 %728 }
 0x21a   : > { %v731_v62 = vmul.f32 0.03125, %v729_v61 }
 0x21c   : > { %v732_v63 = vsub.f32 %v8158_v59, %v731_v62 }
 0x21e   : > { %v733_v0 = vmul.f32 %v732_v63, %v732_v63 }
 0x220   : > { %v734_v1 = vsel %vm606_vm2, %v733_v0, 0.0 }
 0x221   : > { %735 = vadd.xlane.f32.xlu1 %v734_v1 }
 0x2ae   : > { %v736_v13 = vpop.xlane.xlu1 %735 }
 0x2af   : > { %v737_v16 = vmul.f32 0.03125, %v736_v13 }
 0x2b1   : > { %v738_v17 = vadd.f32 1e-05, %v737_v16 }
 0x2b3   : > { %7671 = vrsqrt.f32 %v738_v17 }
 0x2bd   : > { %v7672_v18 = vpop.eup %7671 }
 0x2be   : > { %v740_v20 = vmul.f32 %v7672_v18, %v732_v63 }
 0x2c0   : > { %v747_v24 = vmul.f32 %v6093_v19, %v740_v20 }
 0x2c2   : > { %v754_v25 = vadd.f32 %v6094_v23, %v747_v24 }
 0x2c4   : > { %6571 = vmatmul.mubr.msk.f32.vlgmr.msra.gmra.mrb[0].mxu1 %vm606_vm2, %v754_v25 }
 0x2c5   : > { %6577 = vmatprep.mubr.msk.f32.mxu1 %vm7834_vm3, %v7835_v11 }
 0x397   : > { %v835_v29 = vpop.f32.mrb[0].mxu1 }
 0x398   : > { %v8206_v30 = vadd.f32 %v6095_v26, %v835_v29  ;;  %v6572_v31 = vpop.f32.mrb[1].mxu1 }
 0x39a   : > { %844 = vrot.lane.b32.xlu0 %v8206_v30, %s9620_s2  ;;  %840 = vrot.lane.b32.xlu1 %v8206_v30, %s9622_s0 }
 0x40c   : > { %v845_v32 = vpop.permute.xlu0 %844  ;;  %v841_v35 = vpop.permute.xlu1 %840 }
 0x40d   : > { %847 = vst.msk [vmem:[#allocation3] sm:$0xff] %vm606_vm2, %v845_v32  ;;  %843 = vst.msk [vmem:[#allocation2] sm:$0xff] %vm606_vm2, %v841_v35 }
 0x414   : > { %v8214_v37 = vld [vmem:[#allocation2] sm:$0xff]  ;;  %v8228_v43 = vld [vmem:[#allocation3] sm:$0xff] }
 0x415   : > { %v7551_v41 = vpack.i.bf16 %v849_v36, %v8214_v37  ;;  %v7097_v42 = vpack.c.bf16 %v849_v36, %v8214_v37  ;;  %v7101_v47 = vpack.c.bf16 %v851_v44, %v8228_v43  ;;  %v8248_v50 = vpack.i.bf16 %v851_v44, %v8228_v43 }
 0x417   : > { %7552 = vrot.lane.b32.xlu0 %v7551_v41, %s9614_s26  ;;  %7099 = vmatpush3.bf16.xpose.msk.msra.mxu1 %vm8218_vm5, %v7097_v42 }
 0x418   : > { %7100 = vmatprep.subr.bf16.mxu1 %v7833_v6 }
 0x41e   : > { %6578 = vmatmul.mubr.msk.f32.vlgmr.msra.gmra.mrb[2].mxu1 %vm855_vm4, %v8206_v30 }
 0x41f   : > { %7102 = vmatpush3.bf16.msra.mxu1 %v7101_v47  ;;  %6584 = vmatprep.mubr.msk.f32.mxu1 %vm7834_vm3, %v7835_v11 }
 0x420   : > { %7103 = vmatprep.subr.bf16.mxu1 %v7833_v6 }
 0x489   : > { %v7553_v63 = vpop.permute.xlu0 %7552 }
 0x48a   : > { %v7555_v1 = vunpack.i.h.bf16 %v7553_v63  ;;  %v7554_v2 = vunpack.i.l.bf16 %v7553_v63 }
 0x48c   : > { %v7104_v5 = vpack.c.bf16 %v7555_v1, %v7554_v2 }
 0x4f1   : > { %v930_v53 = vpop.f32.mrb[2].mxu1 }
 0x4f2   : > { %v934_v55 = vmul.f32 0.35355338, %v930_v53  ;;  %v6579_v56 = vpop.f32.mrb[3].mxu1 }
 0x4f4   : > { %v935_v57 = vsel %vm854_vm6, %v934_v55, -1e+09 }
 0x4f5   : > { %v937_v58 = vsel %vm936_vm7, %v935_v57, -inf }
 0x4f6   : > { %938 = vmax.xlane.f32.xlu1 %v937_v58 }
 0x507   : > { %1021 = vrot.lane.b32.xlu1 %v8206_v30, %s9614_s26 }
 0x50b   : > { %7557 = vrot.lane.b32.xlu1 %v8248_v50, %s9614_s26  ;;  %s9663_s26 = smov 112  }
 0x50f   : > { %7562 = vrot.lane.b32.xlu1 %v7551_v41, %s9612_s24 }
 0x513   : > { %1197 = vrot.lane.b32.xlu1 %v8206_v30, %s9612_s24 }
 0x583   : > { %v939_v60 = vpop.xlane.xlu1 %938 }
 0x584   : > { %v940_v61 = vsub.f32 %v935_v57, %v939_v60 }
 0x586   : > { %v941_v62 = vmul.f32 1.442695, %v940_v61 }
 0x587   : > { %v1022_v0 = vpop.permute.xlu1 %1021 }
 0x588   : > { %7673 = vpow2.f32 %v941_v62 }
 0x58b   : > { %v7558_v10 = vpop.permute.xlu1 %7557 }
 0x58c   : > { %v7560_v13 = vunpack.i.h.bf16 %v7558_v10  ;;  %v7559_v16 = vunpack.i.l.bf16 %v7558_v10 }
 0x58e   : > { %v7108_v17 = vpack.c.bf16 %v7560_v13, %v7559_v16 }
 0x58f   : > { %v7563_v35 = vpop.permute.xlu1 %7562 }
 0x590   : > { %v7565_v36 = vunpack.i.h.bf16 %v7563_v35  ;;  %v7564_v42 = vunpack.i.l.bf16 %v7563_v35 }
 0x592   : > { %v8255_v3 = vpop.eup %7673  ;;  %v7111_v47 = vpack.c.bf16 %v7565_v36, %v7564_v42 }
 0x593   : > { %6585 = vmatmul.mubr.msk.f32.vlgmr.msra.gmra.mrb[4].mxu1 %vm936_vm7, %v8255_v3  ;;  %v1198_v55 = vpop.permute.xlu1 %1197 }
 0x594   : > { %7106 = vmatpush3.bf16.xpose.msk.msra.mxu1 %vm8218_vm5, %v7104_v5  ;;  %6591 = vmatprep.mubr.msk.f32.mxu1 %vm7834_vm3, %v7835_v11 }
 0x595   : > { %7107 = vmatprep.subr.bf16.mxu1 %v7833_v6 }
 0x59b   : > { %6592 = vmatmul.mubr.msk.f32.vlgmr.msra.gmra.mrb[6].mxu1 %vm855_vm4, %v1022_v0 }
 0x59c   : > { %7109 = vmatpush3.bf16.msra.mxu1 %v7108_v17  ;;  %6598 = vmatprep.mubr.msk.f32.mxu1 %vm7834_vm3, %v7835_v11 }
 0x59d   : > { %7110 = vmatprep.subr.bf16.mxu1 %v7833_v6 }
 0x666   : > { %v8268_v18 = vpop.f32.mrb[4].mxu1 }
 0x667   : > { %v6586_v19 = vpop.f32.mrb[5].mxu1 }
 0x66e   : > { %v1099_v20 = vpop.f32.mrb[6].mxu1 }
 0x66f   : > { %v1103_v23 = vmul.f32 0.35355338, %v1099_v20  ;;  %v6593_v24 = vpop.f32.mrb[7].mxu1 }
 0x671   : > { %v1104_v25 = vsel %vm854_vm6, %v1103_v23, -1e+09 }
 0x672   : > { %v1105_v26 = vsel %vm936_vm7, %v1104_v25, -inf }
 0x673   : > { %1106 = vmax.xlane.f32.xlu0 %v1105_v26 }
 0x689   : > { %7567 = vrot.lane.b32.xlu0 %v8248_v50, %s9612_s24  ;;  %s9665_s24 = smov 16  }
 0x68d   : > { %7572 = vrot.lane.b32.xlu0 %v7551_v41, %s9610_s27 }
 0x691   : > { %1371 = vrot.lane.b32.xlu0 %v8206_v30, %s9610_s27 }
 0x700   : > { %v1107_v29 = vpop.xlane.xlu0 %1106 }
 0x701   : > { %v1108_v31 = vsub.f32 %v1104_v25, %v1107_v29 }
 0x703   : > { %v1109_v32 = vmul.f32 1.442695, %v1108_v31 }
 0x704   : > { %v7568_v53 = vpop.permute.xlu0 %7567 }
 0x705   : > { %7675 = vpow2.f32 %v1109_v32  ;;  %v7570_v30 = vunpack.i.h.bf16 %v7568_v53  ;;  %v7569_v41 = vunpack.i.l.bf16 %v7568_v53 }
 0x707   : > { %v7115_v56 = vpack.c.bf16 %v7570_v30, %v7569_v41 }
 0x708   : > { %v7573_v13 = vpop.permute.xlu0 %7572 }
 0x709   : > { %v7575_v16 = vunpack.i.h.bf16 %v7573_v13  ;;  %v7574_v17 = vunpack.i.l.bf16 %v7573_v13 }
 0x70b   : > { %v7118_v20 = vpack.c.bf16 %v7575_v16, %v7574_v17 }
 0x70c   : > { %v1372_v25 = vpop.permute.xlu0 %1371 }
 0x70f   : > { %v7676_v44 = vpop.eup %7675 }
 0x710   : > { %6599 = vmatmul.mubr.msk.f32.vlgmr.msra.gmra.mrb[8].mxu1 %vm936_vm7, %v7676_v44  ;;  %v1111_v1 = vsel %vm936_vm7, %v7676_v44, 0.0 }
 0x711   : > { %7113 = vmatpush3.bf16.xpose.msk.msra.mxu1 %vm8218_vm5, %v7111_v47  ;;  %6605 = vmatprep.mubr.msk.f32.mxu1 %vm7834_vm3, %v7835_v11 }
 0x712   : > { %7114 = vmatprep.subr.bf16.mxu1 %v7833_v6 }
 0x718   : > { %6606 = vmatmul.mubr.msk.f32.vlgmr.msra.gmra.mrb[10].mxu1 %vm855_vm4, %v1198_v55 }
 0x719   : > { %7116 = vmatpush3.bf16.msra.mxu1 %v7115_v56  ;;  %6612 = vmatprep.mubr.msk.f32.mxu1 %vm7834_vm3, %v7835_v11 }
 0x71a   : > { %7117 = vmatprep.subr.bf16.mxu1 %v7833_v6 }
 0x7e3   : > { %v8289_v57 = vpop.f32.mrb[8].mxu1 }
 0x7e4   : > { %v6600_v58 = vpop.f32.mrb[9].mxu1 }
 0x7eb   : > { %v1275_v60 = vpop.f32.mrb[10].mxu1 }
 0x7ec   : > { %v1279_v61 = vmul.f32 0.35355338, %v1275_v60  ;;  %v6607_v62 = vpop.f32.mrb[11].mxu1 }
 0x7ed   : > { %v943_v62 = vsel %vm936_vm7, %v8255_v3, 0.0  ;;  %v1563_v3 = vld [vmem:[%s9586_s8 + $0x10] sm:$0xff] }
 0x7ee   : > { %v1280_v63 = vsel %vm854_vm6, %v1279_v61, -1e+09 }
 0x7ef   : > { %v1281_v0 = vsel %vm936_vm7, %v1280_v63, -inf }
 0x7f0   : > { %1282 = vmax.xlane.f32.xlu1 %v1281_v0 }
 0x801   : > { %7577 = vrot.lane.b32.xlu1 %v8248_v50, %s9610_s27  ;;  %s9616_s27 = smov 24  }
 0x825   : > { %1112 = vadd.xlane.f32.xlu1 %v1111_v1 }
 0x87d   : > { %v1283_v2 = vpop.xlane.xlu1 %1282 }
 0x87e   : > { %v1284_v5 = vsub.f32 %v1280_v63, %v1283_v2  ;;  %v1561_v2 = vld [vmem:[%s9586_s8] sm:$0xff] }
 0x880   : > { %v1285_v10 = vmul.f32 1.442695, %v1284_v5  ;;  %v1562_v5 = vld [vmem:[%s9586_s8 + $0x8] sm:$0xff] }
 0x881   : > { %v7578_v23 = vpop.permute.xlu1 %7577 }
 0x882   : > { %7677 = vpow2.f32 %v1285_v10  ;;  %v7580_v50 = vunpack.i.h.bf16 %v7578_v23  ;;  %v7579_v24 = vunpack.i.l.bf16 %v7578_v23  ;;  %v8331_v10 = vpack.c.bf16 %v1562_v5, %v1561_v2  ;;  %v1769_v2 = vld [vmem:[%s9592_s14] sm:$0xff]  ;;  %v1770_v5 = vld [vmem:[%s9592_s14 + $0x8] sm:$0xff] }
 0x884   : > { %v7122_v26 = vpack.c.bf16 %v7580_v50, %v7579_v24  ;;  %7126 = vmatpush3.bf16.msra.mxu0 %v8331_v10 }
 0x885   : > { %7127 = vmatprep.subr.bf16.mxu0 %v7833_v6 }
 0x88c   : > { %v7678_v19 = vpop.eup %7677 }
 0x88d   : > { %6613 = vmatmul.mubr.msk.f32.vlgmr.msra.gmra.mrb[12].mxu1 %vm936_vm7, %v7678_v19  ;;  %v1287_v47 = vsel %vm936_vm7, %v7678_v19, 0.0 }
 0x88e   : > { %7120 = vmatpush3.bf16.xpose.msk.msra.mxu1 %vm8218_vm5, %v7118_v20  ;;  %6619 = vmatprep.mubr.msk.f32.mxu1 %vm7834_vm3, %v7835_v11 }
 0x88f   : > { %7121 = vmatprep.subr.bf16.mxu1 %v7833_v6 }
 0x895   : > { %6620 = vmatmul.mubr.msk.f32.vlgmr.msra.gmra.mrb[14].mxu1 %vm855_vm4, %v1372_v25 }
 0x896   : > { %7123 = vmatpush3.bf16.msra.mxu1 %v7122_v26  ;;  %6626 = vmatprep.mubr.msk.f32.mxu1 %vm7834_vm3, %v7835_v11 }
 0x897   : > { %7130 = vmatprep.subr.bf16.mxu1 %v7833_v6 }
 0x8b2   : > { %v1113_v63 = vpop.xlane.xlu1 %1112 }
 0x960   : > { %v1365_v29 = vpop.f32.mrb[12].mxu1 }
 0x961   : > { %v6614_v31 = vpop.f32.mrb[13].mxu1 }
 0x968   : > { %v1449_v32 = vpop.f32.mrb[14].mxu1 }
 0x969   : > { %v1453_v35 = vmul.f32 0.35355338, %v1449_v32  ;;  %v6621_v36 = vpop.f32.mrb[15].mxu1 }
 0x96b   : > { %v1454_v42 = vsel %vm854_vm6, %v1453_v35, -1e+09  ;;  %vm2306_vm6 = vcmask 122880  }
 0x96c   : > { %v1455_v44 = vsel %vm936_vm7, %v1454_v42, -inf }
 0x96d   : > { %1456 = vmax.xlane.f32.xlu0 %v1455_v44 }
 0x971   : > { %1288 = vadd.xlane.f32.xlu0 %v1287_v47 }
 0x9fa   : > { %v1457_v53 = vpop.xlane.xlu0 %1456 }
 0x9fb   : > { %v1458_v30 = vsub.f32 %v1454_v42, %v1457_v53 }
 0x9fd   : > { %v1459_v41 = vmul.f32 1.442695, %v1458_v30 }
 0x9fe   : > { %v1289_v55 = vpop.xlane.xlu0 %1288 }
 0x9ff   : > { %7679 = vpow2.f32 %v1459_v41 }
 0xa00   : > { %7681 = vrcp.f32 %v1289_v55 }
 0xa01   : > { %7683 = vrcp.f32 %v1113_v63  ;;  %v1678_v63 = vld [vmem:[%s9590_s12 + $0x10] sm:$0xff] }
 0xa09   : > { %v7680_v56 = vpop.eup %7679 }
 0xa0a   : > { %v7682_v58 = vpop.eup %7681  ;;  %6627 = vmatmul.mubr.msk.f32.vlgmr.msra.gmra.mrb[16].mxu1 %vm936_vm7, %v7680_v56  ;;  %v1461_v60 = vsel %vm936_vm7, %v7680_v56, 0.0 }
 0xa0b   : > { %1462 = vadd.xlane.f32.xlu0 %v1461_v60  ;;  %v1370_v61 = vmul.f32 %v7682_v58, %v1365_v29  ;;  %6648 = vmatprep.mubr.msk.f32.mxu1 %vm7834_vm3, %v7835_v11  ;;  %v7684_v0 = vpop.eup %7683 }
 0xa0c   : > { %v1196_v1 = vmul.f32 %v7684_v0, %v8289_v57  ;;  %v1564_v57 = vld [vmem:[%s9586_s8 + $0x18] sm:$0xff] }
 0xa0d   : > { %1550 = vrot.lane.b32.xlu1 %v1370_v61, %s9608_s25  ;;  %v8337_v13 = vpack.c.bf16 %v1564_v57, %v1563_v3  ;;  %v1676_v61 = vld [vmem:[%s9590_s12] sm:$0xff]  ;;  %v1679_v0 = vld [vmem:[%s9590_s12 + $0x18] sm:$0xff]  ;;  %v8385_v3 = vpack.c.bf16 %v1770_v5, %v1769_v2  ;;  %s9666_s25 = smov 8  }
 0xa0e   : > { %v6117_v5 = vld [vmem:[%s9591_s13] ss:$0 sm:$0xff] }
 0xa0f   : > { %944 = vadd.xlane.f32.xlu0 %v943_v62  ;;  %7129 = vmatpush3.bf16.msra.mxu0 %v8337_v13 }
 0xa10   : > { %7136 = vmatprep.subr.bf16.mxu0 %v7833_v6 }
 0xa25   : > { %1546 = vrot.lane.b32.xlu0 %v1196_v1, %s9618_s21  ;;  %v8376_v1 = vpack.c.bf16 %v1679_v0, %v1678_v63  ;;  %v1783_v63 = vld [vmem:[%s9592_s14 + $0x70] sm:$0xff]  ;;  %v1784_v0 = vld [vmem:[%s9592_s14 + $0x78] sm:$0xff]  ;;  %s9664_s21 = smov 104  }
 0xa26   : > { %v8462_v2 = vpack.c.bf16 %v1784_v0, %v1783_v63  ;;  %v1894_v63 = vld [vmem:[%s9659_s19 + $0x8] sm:$0xff] }
 0xa7f   : > { %v1551_v31 = vpop.permute.xlu1 %1550 }
 0xa98   : > { %v1463_v16 = vpop.xlane.xlu0 %1462 }
 0xa99   : > { %7685 = vrcp.f32 %v1463_v16 }
 0xa9c   : > { %v945_v50 = vpop.xlane.xlu0 %944 }
 0xa9d   : > { %7687 = vrcp.f32 %v945_v50  ;;  %v6116_v50 = vld [vmem:[%s9589_s11] ss:$0 sm:$0xff] }
 0xaa0   : > { %v1547_v26 = vpop.permute.xlu0 %1546 }
 0xaa3   : > { %v7686_v17 = vpop.eup %7685 }
 0xaa7   : > { %v7688_v24 = vpop.eup %7687 }
 0xaa8   : > { %v1020_v25 = vmul.f32 %v7688_v24, %v8268_v18  ;;  %v6114_v18 = vld [vmem:[%s9587_s9] ss:$0 sm:$0xff] }
 0xaaa   : > { %v1557_v29 = vsel %vm855_vm4, %v1020_v25, %v1547_v26  ;;  %v1771_v26 = vld [vmem:[%s9592_s14 + $0x10] sm:$0xff] }
 0xaab   : > { %v1558_v32 = vsel %vm936_vm7, %v1557_v29, %v1551_v31  ;;  %v1772_v29 = vld [vmem:[%s9592_s14 + $0x18] sm:$0xff] }
 0xaac   : > { %v8403_v31 = vpack.c.bf16 %v1772_v29, %v1771_v26 }
 0xadd   : > { %v1539_v19 = vpop.f32.mrb[16].mxu1 }
 0xade   : > { %v1544_v20 = vmul.f32 %v7686_v17, %v1539_v19  ;;  %v6628_v23 = vpop.f32.mrb[17].mxu1 }
 0xae0   : > { %1554 = vrot.lane.b32.xlu0 %v1544_v20, %s9616_s27  ;;  %v6115_v20 = vld [vmem:[%s9588_s10] ss:$0 sm:$0xff]  ;;  %s7844_s27 = smov [#allocation4]  }
 0xb52   : > { %v1555_v35 = vpop.permute.xlu0 %1554 }
 0xb53   : > { %v1560_v36 = vsel %vm1559_vm8, %v1558_v32, %v1555_v35  ;;  %v1773_v32 = vld [vmem:[%s9592_s14 + $0x20] sm:$0xff]  ;;  %v1774_v35 = vld [vmem:[%s9592_s14 + $0x28] sm:$0xff] }
 0xb54   : > { %6638 = vmatmul.mubr.msk.f32.vlgmr.msra.gmra.mrb[2].mxu0 %vm606_vm2, %v1560_v36  ;;  %v8413_v36 = vpack.c.bf16 %v1774_v35, %v1773_v32 }
 0xb55   : > { %6683 = vmatprep.mubr.msk.f32.mxu0 %vm7834_vm3, %v7835_v11  ;;  %7138 = vmatpush3.bf16.msra.mxu0 %v8385_v3 }
 0xb56   : > { %7139 = vmatprep.subr.bf16.mxu0 %v7833_v6 }
 0xb59   : > { %7141 = vmatpush3.bf16.msra.mxu0 %v8403_v31 }
 0xb5a   : > { %7142 = vmatprep.subr.bf16.mxu0 %v7833_v6 }
 0xb5d   : > { %7144 = vmatpush3.bf16.msra.mxu0 %v8413_v36 }
 0xb5e   : > { %7145 = vmatprep.subr.bf16.mxu0 %v7833_v6 }
 0xc27   : > { %v1634_v42 = vpop.f32.mrb[2].mxu0 }
 0xc28   : > { %v1638_v44 = vadd.f32 %v1634_v42, %v8158_v59  ;;  %v6639_v47 = vpop.f32.mrb[3].mxu0  ;;  %v1677_v59 = vld [vmem:[%s9590_s12 + $0x8] sm:$0xff]  ;;  %v1775_v42 = vld [vmem:[%s9592_s14 + $0x30] sm:$0xff] }
 0xc29   : > { %v8366_v62 = vpack.c.bf16 %v1677_v59, %v1676_v61  ;;  %v1777_v47 = vld [vmem:[%s9592_s14 + $0x40] sm:$0xff]  ;;  %v1782_v61 = vld [vmem:[%s9592_s14 + $0x68] sm:$0xff] }
 0xc2a   : > { %v8354_v53 = vadd.f32 %v6114_v18, %v1638_v44  ;;  %v1776_v18 = vld [vmem:[%s9592_s14 + $0x38] sm:$0xff] }
 0xc2b   : > { %7132 = vmatpush3.bf16.msra.mxu1 %v8366_v62  ;;  %v8423_v44 = vpack.c.bf16 %v1776_v18, %v1775_v42  ;;  %v6119_v42 = vld [vmem:[%s9593_s15] ss:$0 sm:$0xff] }
 0xc2c   : > { %v1649_v30 = vsel %vm606_vm2, %v8354_v53, 0.0  ;;  %7133 = vmatprep.subr.bf16.mxu1 %v7833_v6 }
 0xc2d   : > { %1650 = vadd.xlane.f32.xlu0 %v1649_v30  ;;  %v1778_v30 = vld [vmem:[%s9592_s14 + $0x48] sm:$0xff]  ;;  %7147 = vmatpush3.bf16.msra.mxu0 %v8423_v44 }
 0xc2e   : > { %7148 = vmatprep.subr.bf16.mxu0 %v7833_v6 }
 0xc2f   : > { %7135 = vmatpush3.bf16.msra.mxu1 %v8376_v1 }
 0xcba   : > { %v1651_v41 = vpop.xlane.xlu0 %1650 }
 0xcbb   : > { %v1652_v55 = vmul.f32 0.03125, %v1651_v41  ;;  %v8432_v41 = vpack.c.bf16 %v1778_v30, %v1777_v47 }
 0xcbd   : > { %v1653_v56 = vsub.f32 %v8354_v53, %v1652_v55  ;;  %v1779_v55 = vld [vmem:[%s9592_s14 + $0x50] sm:$0xff]  ;;  %7150 = vmatpush3.bf16.msra.mxu0 %v8432_v41 }
 0xcbe   : > { %7151 = vmatprep.subr.bf16.mxu0 %v7833_v6 }
 0xcbf   : > { %v1654_v58 = vmul.f32 %v1653_v56, %v1653_v56 }
 0xcc1   : > { %v1655_v60 = vsel %vm606_vm2, %v1654_v58, 0.0 }
 0xcc2   : > { %1656 = vadd.xlane.f32.xlu1 %v1655_v60  ;;  %v1781_v60 = vld [vmem:[%s9592_s14 + $0x60] sm:$0xff] }
 0xcc3   : > { %v8452_v59 = vpack.c.bf16 %v1782_v61, %v1781_v60 }
 0xd4f   : > { %v1657_v57 = vpop.xlane.xlu1 %1656 }
 0xd50   : > { %v1658_v16 = vmul.f32 0.03125, %v1657_v57 }
 0xd52   : > { %v1659_v17 = vadd.f32 1e-05, %v1658_v16 }
 0xd54   : > { %7689 = vrsqrt.f32 %v1659_v17 }
 0xd5e   : > { %v7690_v19 = vpop.eup %7689 }
 0xd5f   : > { %v1661_v23 = vmul.f32 %v7690_v19, %v1653_v56  ;;  %v1780_v56 = vld [vmem:[%s9592_s14 + $0x58] sm:$0xff] }
 0xd60   : > { %v8442_v58 = vpack.c.bf16 %v1780_v56, %v1779_v55 }
 0xd61   : > { %v1668_v24 = vmul.f32 %v6115_v20, %v1661_v23 }
 0xd62   : > { %7153 = vmatpush3.bf16.msra.mxu0 %v8442_v58 }
 0xd63   : > { %v1675_v25 = vadd.f32 %v6116_v50, %v1668_v24  ;;  %7154 = vmatprep.subr.bf16.mxu0 %v7833_v6 }
 0xd65   : > { %6649 = vmatmul.mubr.msk.f32.vlgmr.msra.gmra.mrb[18].mxu1 %vm606_vm2, %v1675_v25 }
 0xd66   : > { %1969 = vmatprep.mubr.f32.mxu1 %v7835_v11  ;;  %7156 = vmatpush3.bf16.msra.mxu0 %v8452_v59 }
 0xd67   : > { %7157 = vmatprep.subr.bf16.mxu0 %v7833_v6 }
 0xd6a   : > { %7159 = vmatpush3.bf16.msra.mxu0 %v8462_v2 }
 0xd6b   : > { %7200 = vmatprep.subr.bf16.mxu0 %v7833_v6 }
 0xe38   : > { %v1756_v57 = vpop.f32.mrb[18].mxu1 }
 0xe39   : > { %v1757_v16 = vadd.f32 %v6117_v5, %v1756_v57  ;;  %v6650_v17 = vpop.f32.mrb[19].mxu1  ;;  %v1893_v5 = vld [vmem:[%s9659_s19] sm:$0xff]  ;;  %v1895_v57 = vld [vmem:[%s9659_s19 + $0x10] sm:$0xff] }
 0xe3a   : > { %v1898_v17 = vld [vmem:[%s9659_s19 + $0x28] sm:$0xff] }
 0xe3b   : > { %v1761_v19 = vmul.f32 0.044715, %v1757_v16  ;;  %v1760_v26 = vmul.f32 0.5, %v1757_v16 }
 0xe3d   : > { %v1762_v20 = vmul.f32 %v1761_v19, %v1757_v16  ;;  %v1900_v19 = vld [vmem:[%s9659_s19 + $0x38] sm:$0xff] }
 0xe3f   : > { %v1763_v23 = vmul.f32 %v1762_v20, %v1757_v16  ;;  %v1897_v20 = vld [vmem:[%s9659_s19 + $0x20] sm:$0xff] }
 0xe41   : > { %v1764_v50 = vadd.f32 %v1763_v23, %v1757_v16  ;;  %v8496_v16 = vpack.c.bf16 %v1895_v57, %v1893_v5  ;;  %v8509_v23 = vpack.c.bf16 %v1900_v19, %v1898_v17  ;;  %v2044_v5 = vld [vmem:[%s9655_s23 + $0x8] sm:$0x1] }
 0xe43   : > { %v1765_v24 = vmul.f32 0.7978846, %v1764_v50  ;;  %v1899_v50 = vld [vmem:[%s9659_s19 + $0x30] sm:$0xff] }
 0xe45   : > { %7691 = vtanh.f32 %v1765_v24  ;;  %v8514_v24 = vpack.c.bf16 %v1899_v50, %v1897_v20 }
 0xe4f   : > { %v7692_v25 = vpop.eup %7691 }
 0xe50   : > { %v1767_v29 = vadd.f32 1.0, %v7692_v25 }
 0xe52   : > { %v1768_v32 = vmul.f32 %v1767_v29, %v1760_v26 }
 0xe54   : > { %6684 = vmatmul.mubr.f32.vlgmr.msra.gmra.mrb[4].mxu0 %v1768_v32 }
 0xe55   : > { %7202 = vmatpush3.bf16.msra.mxu0 %v8174_v7  ;;  %6694 = vmatprep.mubr.msk.f32.mxu0 %vm7834_vm3, %v7835_v11 }
 0xe56   : > { %7203 = vmatprep.subr.bf16.mxu0 %v7833_v6 }
 0xe59   : > { %7205 = vmatpush3.bf16.msra.mxu0 %v8189_v12 }
 0xe5a   : > { %7206 = vmatprep.subr.bf16.mxu0 %v7833_v6 }
 0xf27   : > { %v1851_v35 = vpop.f32.mrb[4].mxu0 }
 0xf28   : > { %v1855_v18 = vadd.f32 %v1851_v35, %v8354_v53  ;;  %v6685_v47 = vpop.f32.mrb[5].mxu0  ;;  %v1896_v53 = vld [vmem:[%s9659_s19 + $0x18] sm:$0xff]  ;;  %v6120_v35 = vld [vmem:[%s9660_s16] ss:$0 sm:$0xff] }
 0xf29   : > { %v8488_v0 = vpack.c.bf16 %v1896_v53, %v1894_v63 }
 0xf2a   : > { %v1863_v30 = vadd.f32 %v6119_v42, %v1855_v18  ;;  %v6121_v18 = vld [vmem:[%s9661_s17] ss:$0 sm:$0xff] }
 0xf2b   : > { %7161 = vmatprep.subr.bf16.mxu1 %v8488_v0 }
 0xf2c   : > { %v1866_v7 = vsel %vm606_vm2, %v1863_v30, 0.0  ;;  %7163 = vmatpush1.bf16.msra.mxu1 %v8496_v16 }
 0xf2d   : > { %1867 = vadd.xlane.f32.xlu0 %v1866_v7  ;;  %7165 = vmatprep.subr.bf16.mxu1 %v8509_v23 }
 0xf30   : > { %7167 = vmatpush1.bf16.msra.mxu1 %v8514_v24 }
 0xf31   : > { %7169 = vmatprep.subr.bf16.mxu1 %v8003_v4 }
 0xfba   : > { %v1868_v55 = vpop.xlane.xlu0 %1867 }
 0xfbb   : > { %v1869_v56 = vmul.f32 0.03125, %v1868_v55 }
 0xfbd   : > { %v1870_v60 = vsub.f32 %v1863_v30, %v1869_v56 }
 0xfbf   : > { %v1871_v61 = vmul.f32 %v1870_v60, %v1870_v60 }
 0xfc1   : > { %v1872_v12 = vsel %vm606_vm2, %v1871_v61, 0.0 }
 0xfc2   : > { %1873 = vadd.xlane.f32.xlu0 %v1872_v12 }
0x104f   : > { %v1874_v25 = vpop.xlane.xlu0 %1873 }
0x1050   : > { %v1875_v26 = vmul.f32 0.03125, %v1874_v25 }
0x1052   : > { %v1876_v29 = vadd.f32 1e-05, %v1875_v26 }
0x1054   : > { %7693 = vrsqrt.f32 %v1876_v29 }
0x105e   : > { %v7694_v32 = vpop.eup %7693 }
0x105f   : > { %v1878_v42 = vmul.f32 %v7694_v32, %v1870_v60 }
0x1061   : > { %v1885_v47 = vmul.f32 %v6120_v35, %v1878_v42 }
0x1063   : > { %v8525_v30 = vadd.f32 %v6121_v18, %v1885_v47 }
0x1065   : > { %v1902_v7 = vrot.slane %v8525_v30, 7 }
0x1067   : > { %6122 = vmatmul.mubr.msk.f32.vlgmr.msra.gmra.mrb[20].mxu1 %vm606_vm2, %v1902_v7  ;;  %v2115_v7 = vld [vmem:[%s9656_s4] sm:$0x1] }
0x1068   : > { %7171 = vmatpush3.bf16.msra.mxu1 %v8017_v8 }
0x1069   : > { %7173 = vmatprep.subr.bf16.mxu1 %v8019_v9 }
0x106c   : > { %7175 = vmatpush3.bf16.msra.mxu1 %v8036_v14 }
0x106d   : > { %7177 = vmatprep.subr.bf16.mxu1 %v8042_v15 }
0x1070   : > { %7179 = vmatpush3.bf16.msra.mxu1 %v8057_v21 }
0x1071   : > { %7181 = vmatprep.subr.bf16.mxu1 %v8060_v22 }
0x1074   : > { %7183 = vmatpush3.bf16.msra.mxu1 %v8075_v27 }
0x1075   : > { %7185 = vmatprep.subr.bf16.mxu1 %v8078_v28 }
0x1078   : > { %7187 = vmatpush3.bf16.msra.mxu1 %v8093_v33 }
0x1079   : > { %7189 = vmatprep.subr.bf16.mxu1 %v8096_v34 }
0x107c   : > { %7191 = vmatpush3.bf16.msra.mxu1 %v8111_v39 }
0x107d   : > { %7193 = vmatprep.subr.bf16.mxu1 %v8114_v40 }
0x1080   : > { %7195 = vmatpush3.bf16.msra.mxu1 %v8129_v45 }
0x1081   : > { %7197 = vmatprep.subr.bf16.mxu1 %v8132_v46 }
0x1084   : > { %7199 = vmatpush3.bf16.msra.mxu1 %v8141_v49 }
0x1085   : > { %7210 = vmatprep.subr.bf16.mxu1 %v7833_v6 }
0x113a   : > { %v1971_v4 = vpop.f32.mrb[20].mxu1 }
0x113b   : > { %v1977_v8 = vsel %vm1976_vm9, %v1971_v4, -inf  ;;  %v1973_v9 = vpop.f32.mrb[21].mxu1 }
0x113c   : > { %v1978_v14 = vsel %vm1976_vm9, %v1973_v9, -inf }
0x113d   : > { %v1979_v15 = vmax.f32 %v1977_v8, %v1978_v14  ;;  %v2116_v8 = vld [vmem:[%s9583_s5] sm:$0x1] }
0x113f   : > { %1980 = vmax.xlane.f32.xlu1 %v1979_v15  ;;  %v2137_v15 = vld [vmem:[%s9585_s7] sm:$0x1] }
0x11cc   : > { %v1981_v21 = vpop.xlane.xlu1 %1980 }
0x11cd   : > { %vm1982_vm10 = vcmp.eq.f32.partialorder %v1971_v4, %v1981_v21  ;;  %vm1983_vm11 = vcmp.eq.f32.partialorder %v1973_v9, %v1981_v21 }
0x11ce   : > { %v1984_v22 = vsel %vm1982_vm10, %v8146_v51, 256  ;;  %v1985_v27 = vsel %vm1983_vm11, %v8149_v52, 256 }
0x11cf   : > { %v1986_v28 = vsel %vm1976_vm9, %v1984_v22, 2147483647  ;;  %v1987_v33 = vsel %vm1976_vm9, %v1985_v27, 2147483647 }
0x11d0   : > { %vm1988_vm12 = vcmp.lt.s32.totalorder %v1986_v28, %v1987_v33 }
0x11d1   : > { %v1989_v34 = vsel %vm1988_vm12, %v1986_v28, %v1987_v33 }
0x11d2   : > { %v1991_v39 = vshra.s32 %v1989_v34, 16  ;;  %v1990_v45 = vand.u32 65535, %v1989_v34 }
0x11d4   : > { %v1993_v40 = vcvt.s32.f32 %v1991_v39  ;;  %v1992_v49 = vcvt.s32.f32 %v1990_v45 }
0x11d6   : > { %1994 = vmin.xlane.f32.xlu0 %v1993_v40 }
0x1263   : > { %v1995_v46 = vpop.xlane.xlu0 %1994 }
0x1264   : > { %vm1996_vm13 = vcmp.eq.f32.partialorder %v1993_v40, %v1995_v46  ;;  %v2001_v56 = vcvt.f32.s32 %v1995_v46 }
0x1265   : > { %v1997_v55 = vsel %vm1996_vm13, %v1992_v49, inf  ;;  %v8606_v49 = vadd.s32 8, %v8237_v48 }
0x1266   : > { %1998 = vmin.xlane.f32.xlu1 %v1997_v55  ;;  %v2002_v61 = vshll.u32 %v2001_v56, 16 }
0x1267   : > { %vm2225_vm1 = vcmp.le.s32.totalorder %v8146_v51, %v8606_v49 }
0x12f3   : > { %v1999_v60 = vpop.xlane.xlu1 %1998 }
0x12f4   : > { %v2000_v12 = vcvt.f32.s32 %v1999_v60 }
0x12f6   : > { %v8551_v63 = vadd.s32 %v2002_v61, %v2000_v12 }
0x12f8   : > { %vm2005_vm14 = vcmp.eq.s32.totalorder %v8149_v52, %v8551_v63  ;;  %vm2004_vm15 = vcmp.eq.s32.totalorder %v8146_v51, %v8551_v63 }
0x12f9   : > { %6125 = vmatprep.mubr.msk.f32.mxu1 %vm2005_vm14, %v7832_v54  ;;  %vm2010_vm14 = vcmp.eq.s32.totalorder %v8146_v51, 0 }
0x12fa   : > { %6126 = vmatmul.mubr.msk.f32.vlgmr.msra.gmra.mrb[22].mxu1 %vm2004_vm15, %v7832_v54  ;;  %vm3338_vm15 = vcmp.eq.s32.totalorder %v8146_v51, 1 }
0x12fb   : > { %6708 = vmatprep.mubr.msk.f32.mxu1 %vm7834_vm3, %v7835_v11 }
0x13cd   : > { %v6321_v53 = vpop.f32.mrb[22].mxu1 }
0x13ce   : > { %v6322_v57 = vpop.f32.mrb[23].mxu1 }
0x13cf   : > { %v6323_v17 = vadd.f32 %v6322_v57, %v6321_v53 }
0x13d1   : > { %v8564_v19 = vadd.f32 %v6323_v17, %v2044_v5 }
0x13d3   : > { %v2118_v20 = vsel %vm2117_vm0, %v8564_v19, 0.0 }
0x13d4   : > { %2119 = vadd.xlane.f32.xlu0 %v2118_v20 }
0x1461   : > { %v2120_v50 = vpop.xlane.xlu0 %2119 }
0x1462   : > { %v2121_v25 = vmul.f32 0.03125, %v2120_v50 }
0x1464   : > { %v2122_v26 = vsub.f32 %v8564_v19, %v2121_v25 }
0x1466   : > { %v2123_v29 = vmul.f32 %v2122_v26, %v2122_v26 }
0x1468   : > { %v2124_v32 = vsel %vm2117_vm0, %v2123_v29, 0.0 }
0x1469   : > { %2125 = vadd.xlane.f32.xlu1 %v2124_v32 }
0x14f6   : > { %v2126_v35 = vpop.xlane.xlu1 %2125 }
0x14f7   : > { %v2127_v42 = vmul.f32 0.03125, %v2126_v35 }
0x14f9   : > { %v2128_v18 = vadd.f32 1e-05, %v2127_v42 }
0x14fb   : > { %7695 = vrsqrt.f32 %v2128_v18 }
0x1505   : > { %v7696_v47 = vpop.eup %7695 }
0x1506   : > { %v2130_v4 = vmul.f32 %v7696_v47, %v2122_v26 }
0x1508   : > { %v2131_v9 = vmul.f32 %v2130_v4, %v2115_v7 }
0x150a   : > { %v2132_v14 = vadd.f32 %v2131_v9, %v2116_v8 }
0x150c   : > { %6695 = vmatmul.mubr.msk.f32.vlgmr.msra.gmra.mrb[6].mxu0 %vm606_vm2, %v2132_v14 }
0x150d   : > { %6701 = vmatprep.mubr.msk.f32.mxu0 %vm7834_vm3, %v7835_v11 }
0x15df   : > { %v2207_v21 = vpop.f32.mrb[6].mxu0 }
0x15e0   : > { %v8582_v22 = vadd.f32 %v2207_v21, %v2137_v15  ;;  %v6696_v27 = vpop.f32.mrb[7].mxu0 }
0x15e2   : > { %2216 = vrot.lane.b32.xlu1 %v8582_v22, %s9620_s2  ;;  %2212 = vrot.lane.b32.xlu0 %v8582_v22, %s9622_s0  ;;  %s9668_s2 = smov 96   ;;  %s9669_s0 = smov 64  }
0x1654   : > { %v2217_v28 = vpop.permute.xlu1 %2216  ;;  %v2213_v33 = vpop.permute.xlu0 %2212 }
0x1655   : > { %2219 = vst.msk [vmem:[#allocation3 + $0x8] sm:$0x1] %vm2117_vm0, %v2217_v28  ;;  %2215 = vst.msk [vmem:[#allocation2 + $0x8] sm:$0x1] %vm2117_vm0, %v2213_v33 }
0x165c   : > { %v2223_v34 = vld [vmem:[#allocation3 + $0x8] sm:$0xff]  ;;  %v2221_v39 = vld [vmem:[#allocation2 + $0x8] sm:$0xff] }
0x165d   : > { %v7211_v40 = vpack.c.bf16 %v2223_v34, %v8228_v43  ;;  %v8592_v45 = vpack.i.bf16 %v2221_v39, %v8214_v37  ;;  %v7207_v46 = vpack.c.bf16 %v2221_v39, %v8214_v37  ;;  %v8617_v12 = vpack.i.bf16 %v2223_v34, %v8228_v43 }
0x165f   : > { %7212 = vmatpush3.bf16.msra.mxu1 %v7211_v40  ;;  %7582 = vrot.lane.b32.xlu0 %v8592_v45, %s9662_s22 }
0x1660   : > { %7209 = vmatpush3.bf16.xpose.msk.msra.mxu0 %vm8218_vm5, %v7207_v46  ;;  %7213 = vmatprep.subr.bf16.mxu1 %v7833_v6 }
0x1661   : > { %7217 = vmatprep.subr.bf16.mxu0 %v7833_v6 }
0x1667   : > { %6702 = vmatmul.mubr.msk.f32.vlgmr.msra.gmra.mrb[8].mxu0 %vm855_vm4, %v8582_v22 }
0x1668   : > { %6722 = vmatprep.mubr.msk.f32.mxu0 %vm7834_vm3, %v7835_v11 }
0x16d1   : > { %v7583_v20 = vpop.permute.xlu0 %7582 }
0x16d2   : > { %v7585_v43 = vunpack.i.h.bf16 %v7583_v20  ;;  %v7584_v29 = vunpack.i.l.bf16 %v7583_v20 }
0x16d4   : > { %v7214_v42 = vpack.c.bf16 %v7585_v43, %v7584_v29 }
0x173a   : > { %v2300_v37 = vpop.f32.mrb[8].mxu0 }
0x173b   : > { %v2304_v55 = vmul.f32 0.35355338, %v2300_v37  ;;  %v6703_v56 = vpop.f32.mrb[9].mxu0 }
0x173d   : > { %v2305_v60 = vsel %vm2225_vm1, %v2304_v55, -1e+09 }
0x173e   : > { %v2307_v61 = vsel %vm2306_vm6, %v2305_v60, -inf }
0x173f   : > { %2308 = vmax.xlane.f32.xlu1 %v2307_v61 }
0x1750   : > { %2391 = vrot.lane.b32.xlu1 %v8582_v22, %s9662_s22 }
0x1754   : > { %7587 = vrot.lane.b32.xlu1 %v8617_v12, %s9662_s22 }
0x1758   : > { %7592 = vrot.lane.b32.xlu1 %v8592_v45, %s9663_s26 }
0x175c   : > { %2567 = vrot.lane.b32.xlu1 %v8582_v22, %s9663_s26 }
0x17cc   : > { %v2309_v53 = vpop.xlane.xlu1 %2308 }
0x17cd   : > { %v2310_v5 = vsub.f32 %v2305_v60, %v2309_v53 }
0x17cf   : > { %v2311_v57 = vmul.f32 1.442695, %v2310_v5 }
0x17d0   : > { %v2392_v17 = vpop.permute.xlu1 %2391 }
0x17d1   : > { %7697 = vpow2.f32 %v2311_v57 }
0x17d4   : > { %v7588_v50 = vpop.permute.xlu1 %7587 }
0x17d5   : > { %v7590_v25 = vunpack.i.h.bf16 %v7588_v50  ;;  %v7589_v26 = vunpack.i.l.bf16 %v7588_v50 }
0x17d7   : > { %v7218_v32 = vpack.c.bf16 %v7590_v25, %v7589_v26 }
0x17d8   : > { %v7593_v40 = vpop.permute.xlu1 %7592 }
0x17d9   : > { %7219 = vmatpush3.bf16.msra.mxu0 %v7218_v32  ;;  %v7595_v46 = vunpack.i.h.bf16 %v7593_v40  ;;  %v7594_v37 = vunpack.i.l.bf16 %v7593_v40 }
0x17da   : > { %7220 = vmatprep.subr.bf16.mxu0 %v7833_v6 }
0x17db   : > { %v8626_v35 = vpop.eup %7697  ;;  %v7221_v56 = vpack.c.bf16 %v7595_v46, %v7594_v37 }
0x17dc   : > { %6709 = vmatmul.mubr.msk.f32.vlgmr.msra.gmra.mrb[24].mxu1 %vm936_vm7, %v8626_v35 }
0x17dd   : > { %7216 = vmatpush3.bf16.xpose.msk.msra.mxu1 %vm8218_vm5, %v7214_v42  ;;  %6715 = vmatprep.mubr.msk.f32.mxu1 %vm7834_vm3, %v7835_v11 }
0x17de   : > { %7224 = vmatprep.subr.bf16.mxu1 %v7833_v6 }
0x17e4   : > { %6716 = vmatmul.mubr.msk.f32.vlgmr.msra.gmra.mrb[26].mxu1 %vm855_vm4, %v2392_v17 }
0x17e5   : > { %6736 = vmatprep.mubr.msk.f32.mxu1 %vm7834_vm3, %v7835_v11 }
0x18af   : > { %v8638_v18 = vpop.f32.mrb[24].mxu1 }
0x18b0   : > { %v6710_v47 = vpop.f32.mrb[25].mxu1 }
0x18b7   : > { %v2469_v7 = vpop.f32.mrb[26].mxu1 }
0x18b8   : > { %v2473_v4 = vmul.f32 0.35355338, %v2469_v7  ;;  %v6717_v8 = vpop.f32.mrb[27].mxu1 }
0x18ba   : > { %v2474_v9 = vsel %vm2225_vm1, %v2473_v4, -1e+09 }
0x18bb   : > { %v2475_v14 = vsel %vm2306_vm6, %v2474_v9, -inf }
0x18bc   : > { %2476 = vmax.xlane.f32.xlu0 %v2475_v14 }
0x18d2   : > { %7597 = vrot.lane.b32.xlu0 %v8617_v12, %s9663_s26 }
0x18d6   : > { %2741 = vrot.lane.b32.xlu0 %v8582_v22, %s9664_s21  ;;  %v2568_v22 = vpop.permute.xlu1 %2567 }
0x1949   : > { %v2477_v15 = vpop.xlane.xlu0 %2476 }
0x194a   : > { %v2478_v21 = vsub.f32 %v2474_v9, %v2477_v15 }
0x194c   : > { %v2479_v27 = vmul.f32 1.442695, %v2478_v21 }
0x194d   : > { %v7598_v28 = vpop.permute.xlu0 %7597 }
0x194e   : > { %7699 = vpow2.f32 %v2479_v27  ;;  %v7600_v33 = vunpack.i.h.bf16 %v7598_v28  ;;  %v7599_v34 = vunpack.i.l.bf16 %v7598_v28 }
0x1950   : > { %v7225_v39 = vpack.c.bf16 %v7600_v33, %v7599_v34 }
0x1952   : > { %7226 = vmatpush3.bf16.msra.mxu1 %v7225_v39 }
0x1953   : > { %7227 = vmatprep.subr.bf16.mxu1 %v7833_v6 }
0x1958   : > { %v7700_v55 = vpop.eup %7699 }
0x1959   : > { %6723 = vmatmul.mubr.msk.f32.vlgmr.msra.gmra.mrb[10].mxu0 %vm936_vm7, %v7700_v55  ;;  %v2481_v50 = vsel %vm2306_vm6, %v7700_v55, 0.0 }
0x195a   : > { %7223 = vmatpush3.bf16.xpose.msk.msra.mxu0 %vm8218_vm5, %v7221_v56  ;;  %6729 = vmatprep.mubr.msk.f32.mxu0 %vm7834_vm3, %v7835_v11  ;;  %v2313_v56 = vsel %vm2306_vm6, %v8626_v35, 0.0 }
0x195b   : > { %7231 = vmatprep.subr.bf16.mxu0 %v7833_v6 }
0x1961   : > { %6730 = vmatmul.mubr.msk.f32.vlgmr.msra.gmra.mrb[12].mxu0 %vm855_vm4, %v2568_v22 }
0x1962   : > { %6750 = vmatprep.mubr.msk.f32.mxu0 %vm7834_vm3, %v7835_v11 }
0x1a2c   : > { %v8658_v60 = vpop.f32.mrb[10].mxu0 }
0x1a2d   : > { %v6724_v61 = vpop.f32.mrb[11].mxu0 }
0x1a34   : > { %v2645_v53 = vpop.f32.mrb[12].mxu0 }
0x1a35   : > { %v2649_v5 = vmul.f32 0.35355338, %v2645_v53  ;;  %v6731_v57 = vpop.f32.mrb[13].mxu0 }
0x1a37   : > { %v2650_v17 = vsel %vm2225_vm1, %v2649_v5, -1e+09 }
0x1a38   : > { %v2651_v20 = vsel %vm2306_vm6, %v2650_v17, -inf }
0x1a39   : > { %2652 = vmax.xlane.f32.xlu1 %v2651_v20 }
0x1a4a   : > { %7602 = vrot.lane.b32.xlu1 %v8592_v45, %s9664_s21 }
0x1a4e   : > { %7607 = vrot.lane.b32.xlu1 %v8617_v12, %s9664_s21  ;;  %v2742_v12 = vpop.permute.xlu0 %2741 }
0x1a72   : > { %2482 = vadd.xlane.f32.xlu1 %v2481_v50 }
0x1ac6   : > { %v2653_v25 = vpop.xlane.xlu1 %2652 }
0x1ac7   : > { %v2654_v26 = vsub.f32 %v2650_v17, %v2653_v25 }
0x1ac9   : > { %v2655_v43 = vmul.f32 1.442695, %v2654_v26 }
0x1aca   : > { %v7603_v29 = vpop.permute.xlu1 %7602 }
0x1acb   : > { %7701 = vpow2.f32 %v2655_v43  ;;  %v7605_v7 = vunpack.i.h.bf16 %v7603_v29  ;;  %v7604_v4 = vunpack.i.l.bf16 %v7603_v29 }
0x1acd   : > { %v7228_v9 = vpack.c.bf16 %v7605_v7, %v7604_v4 }
0x1ace   : > { %v7608_v32 = vpop.permute.xlu1 %7607 }
0x1acf   : > { %v7610_v42 = vunpack.i.h.bf16 %v7608_v32  ;;  %v7609_v47 = vunpack.i.l.bf16 %v7608_v32 }
0x1ad1   : > { %v7232_v8 = vpack.c.bf16 %v7610_v42, %v7609_v47 }
0x1ad3   : > { %7233 = vmatpush3.bf16.msra.mxu0 %v7232_v8 }
0x1ad4   : > { %7234 = vmatprep.subr.bf16.mxu0 %v7833_v6 }
0x1ad5   : > { %v7702_v45 = vpop.eup %7701 }
0x1ad6   : > { %6737 = vmatmul.mubr.msk.f32.vlgmr.msra.gmra.mrb[28].mxu1 %vm936_vm7, %v7702_v45  ;;  %v2657_v34 = vsel %vm2306_vm6, %v7702_v45, 0.0 }
0x1ad7   : > { %7230 = vmatpush3.bf16.xpose.msk.msra.mxu1 %vm8218_vm5, %v7228_v9  ;;  %6743 = vmatprep.mubr.msk.f32.mxu1 %vm7834_vm3, %v7835_v11 }
0x1ad8   : > { %7240 = vmatprep.subr.bf16.mxu1 %v7833_v6 }
0x1ade   : > { %6744 = vmatmul.mubr.msk.f32.vlgmr.msra.gmra.mrb[30].mxu1 %vm855_vm4, %v2742_v12  ;;  %v3011_v12 = vld [vmem:[%s9589_s11] sm:$0x1] }
0x1adf   : > { %7242 = vmatpush3.bf16.msra.mxu1 %v8366_v62  ;;  %6772 = vmatprep.mubr.msk.f32.mxu1 %vm7834_vm3, %v7835_v11 }
0x1ae0   : > { %7243 = vmatprep.subr.bf16.mxu1 %v7833_v6 }
0x1ae3   : > { %7245 = vmatpush3.bf16.msra.mxu1 %v8376_v1 }
0x1ae4   : > { %7271 = vmatprep.subr.bf16.mxu1 %v8488_v0 }
0x1aff   : > { %v2483_v22 = vpop.xlane.xlu1 %2482 }
0x1ba9   : > { %v2735_v14 = vpop.f32.mrb[28].mxu1 }
0x1baa   : > { %v6738_v15 = vpop.f32.mrb[29].mxu1 }
0x1bb1   : > { %v2819_v21 = vpop.f32.mrb[30].mxu1 }
0x1bb2   : > { %v2823_v27 = vmul.f32 0.35355338, %v2819_v21  ;;  %v6745_v28 = vpop.f32.mrb[31].mxu1  ;;  %v3031_v21 = vld [vmem:[%s9591_s13] sm:$0x1] }
0x1bb4   : > { %v2824_v33 = vsel %vm2225_vm1, %v2823_v27, -1e+09 }
0x1bb5   : > { %v2825_v62 = vsel %vm2306_vm6, %v2824_v33, -inf }
0x1bb6   : > { %2826 = vmax.xlane.f32.xlu0 %v2825_v62 }
0x1bba   : > { %2658 = vadd.xlane.f32.xlu0 %v2657_v34 }
0x1c43   : > { %v2827_v39 = vpop.xlane.xlu0 %2826 }
0x1c44   : > { %v2828_v40 = vsub.f32 %v2824_v33, %v2827_v39 }
0x1c46   : > { %v2829_v1 = vmul.f32 1.442695, %v2828_v40 }
0x1c47   : > { %v2659_v46 = vpop.xlane.xlu0 %2658 }
0x1c48   : > { %7703 = vpow2.f32 %v2829_v1 }
0x1c49   : > { %7705 = vrcp.f32 %v2659_v46 }
0x1c4a   : > { %7707 = vrcp.f32 %v2483_v22 }
0x1c52   : > { %v7704_v0 = vpop.eup %7703 }
0x1c53   : > { %v7706_v37 = vpop.eup %7705  ;;  %6751 = vmatmul.mubr.msk.f32.vlgmr.msra.gmra.mrb[14].mxu0 %vm936_vm7, %v7704_v0  ;;  %v2831_v55 = vsel %vm2306_vm6, %v7704_v0, 0.0 }
0x1c54   : > { %2832 = vadd.xlane.f32.xlu0 %v2831_v55  ;;  %v2740_v49 = vmul.f32 %v7706_v37, %v2735_v14  ;;  %7236 = vmatpush3.bf16.msra.mxu0 %v8331_v10  ;;  %v7708_v61 = vpop.eup %7707 }
0x1c55   : > { %7237 = vmatprep.subr.bf16.mxu0 %v7833_v6  ;;  %6761 = vmatprep.mubr.msk.f32.mxu0 %vm7834_vm3, %v7835_v11  ;;  %v2566_v10 = vmul.f32 %v7708_v61, %v8658_v60 }
0x1c56   : > { %2920 = vrot.lane.b32.xlu1 %v2740_v49, %s9665_s24 }
0x1c58   : > { %2314 = vadd.xlane.f32.xlu0 %v2313_v56  ;;  %7239 = vmatpush3.bf16.msra.mxu0 %v8337_v13 }
0x1c59   : > { %7246 = vmatprep.subr.bf16.mxu0 %v7833_v6 }
0x1c6e   : > { %2916 = vrot.lane.b32.xlu0 %v2566_v10, %s9666_s25 }
0x1cc8   : > { %v2921_v43 = vpop.permute.xlu1 %2920 }
0x1ce1   : > { %v2833_v53 = vpop.xlane.xlu0 %2832 }
0x1ce2   : > { %7709 = vrcp.f32 %v2833_v53 }
0x1ce5   : > { %v2315_v35 = vpop.xlane.xlu0 %2314 }
0x1ce6   : > { %7711 = vrcp.f32 %v2315_v35 }
0x1ce9   : > { %v2917_v25 = vpop.permute.xlu0 %2916 }
0x1cec   : > { %v7710_v5 = vpop.eup %7709 }
0x1cf0   : > { %v7712_v13 = vpop.eup %7711 }
0x1cf1   : > { %v2390_v50 = vmul.f32 %v7712_v13, %v8638_v18 }
0x1cf3   : > { %v2927_v26 = vsel %vm855_vm4, %v2390_v50, %v2917_v25  ;;  %v3203_v50 = vld [vmem:[%s9660_s16] sm:$0x1] }
0x1cf4   : > { %v2928_v60 = vsel %vm936_vm7, %v2927_v26, %v2921_v43  ;;  %v3204_v26 = vld [vmem:[%s9661_s17] sm:$0x1]  ;;  %s9671_s17 = sld [smem:[#allocation23_spill]] }
0x1d26   : > { %v2909_v57 = vpop.f32.mrb[14].mxu0 }
0x1d27   : > { %v2914_v17 = vmul.f32 %v7710_v5, %v2909_v57  ;;  %v6752_v20 = vpop.f32.mrb[15].mxu0 }
0x1d29   : > { %2924 = vrot.lane.b32.xlu0 %v2914_v17, %s9667_s28 }
0x1d9b   : > { %v2925_v29 = vpop.permute.xlu0 %2924 }
0x1d9c   : > { %v2929_v32 = vsel %vm1559_vm8, %v2928_v60, %v2925_v29 }
0x1d9d   : > { %6762 = vmatmul.mubr.msk.f32.vlgmr.msra.gmra.mrb[16].mxu0 %vm606_vm2, %v2929_v32 }
0x1d9e   : > { %7248 = vmatpush3.bf16.msra.mxu0 %v8385_v3  ;;  %6807 = vmatprep.mubr.msk.f32.mxu0 %vm7834_vm3, %v7835_v11 }
0x1d9f   : > { %7249 = vmatprep.subr.bf16.mxu0 %v7833_v6 }
0x1da2   : > { %7251 = vmatpush3.bf16.msra.mxu0 %v8403_v31  ;;  %v3008_v31 = vld [vmem:[%s9587_s9] sm:$0x1] }
0x1da3   : > { %7252 = vmatprep.subr.bf16.mxu0 %v7833_v6 }
0x1da6   : > { %7254 = vmatpush3.bf16.msra.mxu0 %v8413_v36 }
0x1da7   : > { %7255 = vmatprep.subr.bf16.mxu0 %v7833_v6 }
0x1daa   : > { %7257 = vmatpush3.bf16.msra.mxu0 %v8423_v44 }
0x1dab   : > { %7258 = vmatprep.subr.bf16.mxu0 %v7833_v6 }
0x1dae   : > { %7260 = vmatpush3.bf16.msra.mxu0 %v8432_v41 }
0x1daf   : > { %7261 = vmatprep.subr.bf16.mxu0 %v7833_v6 }
0x1db2   : > { %7263 = vmatpush3.bf16.msra.mxu0 %v8442_v58 }
0x1db3   : > { %7264 = vmatprep.subr.bf16.mxu0 %v7833_v6 }
0x1db6   : > { %7266 = vmatpush3.bf16.msra.mxu0 %v8452_v59 }
0x1db7   : > { %7267 = vmatprep.subr.bf16.mxu0 %v7833_v6 }
0x1dba   : > { %7269 = vmatpush3.bf16.msra.mxu0 %v8462_v2 }
0x1dbb   : > { %7310 = vmatprep.subr.bf16.mxu0 %v7833_v6 }
0x1e70   : > { %v3003_v3 = vpop.f32.mrb[16].mxu0 }
0x1e71   : > { %v3007_v36 = vadd.f32 %v3003_v3, %v8564_v19  ;;  %v6763_v44 = vpop.f32.mrb[17].mxu0  ;;  %v3010_v19 = vld [vmem:[%s9588_s10] sm:$0x1] }
0x1e73   : > { %v3009_v41 = vadd.f32 %v3008_v31, %v3007_v36 }
0x1e75   : > { %v3012_v58 = vsel %vm2117_vm0, %v3009_v41, 0.0 }
0x1e76   : > { %3013 = vadd.xlane.f32.xlu1 %v3012_v58 }
0x1f03   : > { %v3014_v18 = vpop.xlane.xlu1 %3013 }
0x1f04   : > { %v3015_v59 = vmul.f32 0.03125, %v3014_v18 }
0x1f06   : > { %v3016_v42 = vsub.f32 %v3009_v41, %v3015_v59 }
0x1f08   : > { %v3017_v47 = vmul.f32 %v3016_v42, %v3016_v42 }
0x1f0a   : > { %v3018_v2 = vsel %vm2117_vm0, %v3017_v47, 0.0 }
0x1f0b   : > { %3019 = vadd.xlane.f32.xlu0 %v3018_v2 }
0x1f98   : > { %v3020_v7 = vpop.xlane.xlu0 %3019 }
0x1f99   : > { %v3021_v4 = vmul.f32 0.03125, %v3020_v7  ;;  %v3356_v7 = vld [vmem:[%s9652_s29 + $0x80] sm:$0xff] }
0x1f9b   : > { %v3022_v8 = vadd.f32 1e-05, %v3021_v4  ;;  %v3357_v4 = vld [vmem:[%s9652_s29 + $0x88] sm:$0xff] }
0x1f9d   : > { %7713 = vrsqrt.f32 %v3022_v8  ;;  %v3340_v8 = vld [vmem:[%s9652_s29] sm:$0xff] }
0x1fa7   : > { %v7714_v45 = vpop.eup %7713 }
0x1fa8   : > { %v3024_v9 = vmul.f32 %v7714_v45, %v3016_v42  ;;  %v8780_v45 = vpack.c.bf16 %v3357_v4, %v3356_v7 }
0x1faa   : > { %v3025_v14 = vmul.f32 %v3024_v9, %v3010_v19  ;;  %v3341_v19 = vld [vmem:[%s9652_s29 + $0x8] sm:$0xff]  ;;  %v3358_v9 = vld [vmem:[%s9652_s29 + $0x90] sm:$0xff] }
0x1fac   : > { %v3026_v15 = vadd.f32 %v3025_v14, %v3011_v12  ;;  %v3359_v12 = vld [vmem:[%s9652_s29 + $0x98] sm:$0xff]  ;;  %v8791_v14 = vpack.c.bf16 %v3341_v19, %v3340_v8  ;;  %v2011_v19 = vsel %vm2010_vm14, %v8551_v63, 0 }
0x1fae   : > { %6773 = vmatmul.mubr.msk.f32.vlgmr.msra.gmra.mrb[32].mxu1 %vm606_vm2, %v3026_v15  ;;  %v8793_v15 = vpack.c.bf16 %v3359_v12, %v3358_v9 }
0x1faf   : > { %7273 = vmatpush1.bf16.msra.mxu1 %v8496_v16  ;;  %3298 = vmatprep.mubr.f32.mxu1 %v7835_v11 }
0x1fb0   : > { %7275 = vmatprep.subr.bf16.mxu1 %v8509_v23 }
0x1fb3   : > { %7277 = vmatpush1.bf16.msra.mxu1 %v8514_v24  ;;  %v3201_v24 = vld [vmem:[%s9593_s15] sm:$0x1] }
0x1fb4   : > { %7279 = vmatprep.subr.bf16.mxu1 %v8780_v45 }
0x2081   : > { %v3101_v27 = vpop.f32.mrb[32].mxu1 }
0x2082   : > { %v3102_v28 = vadd.f32 %v3101_v27, %v3031_v21  ;;  %v6774_v33 = vpop.f32.mrb[33].mxu1  ;;  %v3342_v21 = vld [vmem:[%s9652_s29 + $0x10] sm:$0xff]  ;;  %v3343_v27 = vld [vmem:[%s9652_s29 + $0x18] sm:$0xff] }
0x2083   : > { %v3361_v33 = vld [vmem:[%s9652_s29 + $0xa8] sm:$0xff] }
0x2084   : > { %v3106_v62 = vmul.f32 0.044715, %v3102_v28  ;;  %v3105_v46 = vmul.f32 0.5, %v3102_v28 }
0x2086   : > { %v3107_v34 = vmul.f32 %v3106_v62, %v3102_v28  ;;  %v8809_v62 = vpack.c.bf16 %v3343_v27, %v3342_v21  ;;  %v3372_v21 = vld [vmem:[%s9655_s23 + $0x9] sm:$0x1] }
0x2088   : > { %v3108_v39 = vmul.f32 %v3107_v34, %v3102_v28 }
0x208a   : > { %v3109_v40 = vadd.f32 %v3108_v39, %v3102_v28  ;;  %v3360_v28 = vld [vmem:[%s9652_s29 + $0xa0] sm:$0xff] }
0x208b   : > { %v8812_v34 = vpack.c.bf16 %v3361_v33, %v3360_v28  ;;  %v3344_v39 = vld [vmem:[%s9652_s29 + $0x20] sm:$0xff] }
0x208c   : > { %v3110_v1 = vmul.f32 0.7978846, %v3109_v40  ;;  %v3345_v40 = vld [vmem:[%s9652_s29 + $0x28] sm:$0xff] }
0x208e   : > { %7715 = vtanh.f32 %v3110_v1  ;;  %v3362_v1 = vld [vmem:[%s9652_s29 + $0xb0] sm:$0xff] }
0x2098   : > { %v7716_v16 = vpop.eup %7715 }
0x2099   : > { %v3112_v0 = vadd.f32 1.0, %v7716_v16  ;;  %v3363_v16 = vld [vmem:[%s9652_s29 + $0xb8] sm:$0xff] }
0x209b   : > { %v3113_v37 = vmul.f32 %v3112_v0, %v3105_v46  ;;  %v8827_v46 = vpack.c.bf16 %v3345_v40, %v3344_v39  ;;  %v8830_v0 = vpack.c.bf16 %v3363_v16, %v3362_v1 }
0x209d   : > { %6808 = vmatmul.mubr.f32.vlgmr.msra.gmra.mrb[18].mxu0 %v3113_v37  ;;  %v3346_v37 = vld [vmem:[%s9652_s29 + $0x30] sm:$0xff] }
0x209e   : > { %6818 = vmatprep.mubr.msk.f32.mxu0 %vm7834_vm3, %v7835_v11 }
0x2170   : > { %v3196_v23 = vpop.f32.mrb[18].mxu0 }
0x2171   : > { %v3200_v55 = vadd.f32 %v3196_v23, %v3009_v41  ;;  %v6809_v49 = vpop.f32.mrb[19].mxu0  ;;  %v3347_v23 = vld [vmem:[%s9652_s29 + $0x38] sm:$0xff] }
0x2172   : > { %v8845_v49 = vpack.c.bf16 %v3347_v23, %v3346_v37  ;;  %v3460_v23 = vld [vmem:[%s9584_s6] sm:$0xff] }
0x2173   : > { %v3202_v56 = vadd.f32 %v3201_v24, %v3200_v55  ;;  %v3364_v24 = vld [vmem:[%s9652_s29 + $0xc0] sm:$0xff]  ;;  %v3365_v55 = vld [vmem:[%s9652_s29 + $0xc8] sm:$0xff] }
0x2175   : > { %v3205_v22 = vsel %vm2117_vm0, %v3202_v56, 0.0 }
0x2176   : > { %3206 = vadd.xlane.f32.xlu0 %v3205_v22  ;;  %v3348_v22 = vld [vmem:[%s9652_s29 + $0x40] sm:$0xff] }
0x2203   : > { %v3207_v61 = vpop.xlane.xlu0 %3206 }
0x2204   : > { %v3208_v10 = vmul.f32 0.03125, %v3207_v61  ;;  %v3349_v61 = vld [vmem:[%s9652_s29 + $0x48] sm:$0xff] }
0x2206   : > { %v3209_v53 = vsub.f32 %v3202_v56, %v3208_v10  ;;  %v8848_v56 = vpack.c.bf16 %v3365_v55, %v3364_v24  ;;  %v3366_v10 = vld [vmem:[%s9652_s29 + $0xd0] sm:$0xff]  ;;  %v3461_v24 = vld [vmem:[%s9584_s6 + $0x8] sm:$0xff] }
0x2207   : > { %v8943_v55 = vpack.c.bf16 %v3461_v24, %v3460_v23 }
0x2208   : > { %v3210_v5 = vmul.f32 %v3209_v53, %v3209_v53 }
0x2209   : > { %7312 = vmatpush3.bf16.msra.mxu0 %v8943_v55 }
0x220a   : > { %v3211_v57 = vsel %vm2117_vm0, %v3210_v5, 0.0  ;;  %v8863_v5 = vpack.c.bf16 %v3349_v61, %v3348_v22  ;;  %v3462_v22 = vld [vmem:[%s9584_s6 + $0x10] sm:$0xff]  ;;  %v3463_v61 = vld [vmem:[%s9584_s6 + $0x18] sm:$0xff]  ;;  %7313 = vmatprep.subr.bf16.mxu0 %v7833_v6 }
0x220b   : > { %3212 = vadd.xlane.f32.xlu1 %v3211_v57 }
0x2298   : > { %v3213_v17 = vpop.xlane.xlu1 %3212 }
0x2299   : > { %v3214_v20 = vmul.f32 0.03125, %v3213_v17  ;;  %v3350_v17 = vld [vmem:[%s9652_s29 + $0x50] sm:$0xff] }
0x229b   : > { %v3215_v35 = vadd.f32 1e-05, %v3214_v20  ;;  %v3351_v20 = vld [vmem:[%s9652_s29 + $0x58] sm:$0xff] }
0x229d   : > { %7717 = vrsqrt.f32 %v3215_v35  ;;  %v3368_v35 = vld [vmem:[%s9652_s29 + $0xe0] sm:$0xff] }
0x22a7   : > { %v7718_v13 = vpop.eup %7717 }
0x22a8   : > { %v3217_v25 = vmul.f32 %v7718_v13, %v3209_v53  ;;  %v3367_v53 = vld [vmem:[%s9652_s29 + $0xd8] sm:$0xff]  ;;  %v3369_v13 = vld [vmem:[%s9652_s29 + $0xe8] sm:$0xff] }
0x22a9   : > { %v8866_v57 = vpack.c.bf16 %v3367_v53, %v3366_v10  ;;  %v8953_v10 = vpack.c.bf16 %v3463_v61, %v3462_v22 }
0x22aa   : > { %v3218_v43 = vmul.f32 %v3217_v25, %v3203_v50  ;;  %v8881_v50 = vpack.c.bf16 %v3351_v20, %v3350_v17  ;;  %v8884_v25 = vpack.c.bf16 %v3369_v13, %v3368_v35  ;;  %v3443_v13 = vld [vmem:[%s9656_s4] sm:$0x1] }
0x22ab   : > { %7315 = vmatpush3.bf16.msra.mxu0 %v8953_v10 }
0x22ac   : > { %v8758_v60 = vadd.f32 %v3218_v43, %v3204_v26  ;;  %v3352_v26 = vld [vmem:[%s9652_s29 + $0x60] sm:$0xff]  ;;  %v3353_v43 = vld [vmem:[%s9652_s29 + $0x68] sm:$0xff]  ;;  %7316 = vmatprep.subr.bf16.mxu0 %v7833_v6 }
0x22ae   : > { %6146 = vmatmul.mubr.msk.f32.vlgmr.msra.gmra.mrb[34].mxu1 %vm606_vm2, %v8758_v60 }
0x22af   : > { %7281 = vmatpush3.bf16.msra.mxu1 %v8791_v14 }
0x22b0   : > { %7283 = vmatprep.subr.bf16.mxu1 %v8793_v15 }
0x22b3   : > { %7285 = vmatpush3.bf16.msra.mxu1 %v8809_v62 }
0x22b4   : > { %7287 = vmatprep.subr.bf16.mxu1 %v8812_v34 }
0x22b7   : > { %7289 = vmatpush3.bf16.msra.mxu1 %v8827_v46 }
0x22b8   : > { %7291 = vmatprep.subr.bf16.mxu1 %v8830_v0 }
0x22bb   : > { %7293 = vmatpush3.bf16.msra.mxu1 %v8845_v49 }
0x22bc   : > { %7295 = vmatprep.subr.bf16.mxu1 %v8848_v56 }
0x22bf   : > { %7297 = vmatpush3.bf16.msra.mxu1 %v8863_v5 }
0x22c0   : > { %7299 = vmatprep.subr.bf16.mxu1 %v8866_v57 }
0x22c3   : > { %7301 = vmatpush3.bf16.msra.mxu1 %v8881_v50 }
0x22c4   : > { %7303 = vmatprep.subr.bf16.mxu1 %v8884_v25 }
0x2381   : > { %v3300_v29 = vpop.f32.mrb[34].mxu1 }
0x2382   : > { %v3305_v32 = vsel %vm1976_vm9, %v3300_v29, -inf  ;;  %v3302_v3 = vpop.f32.mrb[35].mxu1 }
0x2383   : > { %v3306_v31 = vsel %vm1976_vm9, %v3302_v3, -inf }
0x2384   : > { %v3307_v36 = vmax.f32 %v3305_v32, %v3306_v31 }
0x2386   : > { %3308 = vmax.xlane.f32.xlu0 %v3307_v36 }
0x2413   : > { %v3309_v44 = vpop.xlane.xlu0 %3308 }
0x2414   : > { %vm3310_vm10 = vcmp.eq.f32.partialorder %v3300_v29, %v3309_v44  ;;  %vm3311_vm11 = vcmp.eq.f32.partialorder %v3302_v3, %v3309_v44  ;;  %v8893_v29 = vpack.c.bf16 %v3353_v43, %v3352_v26  ;;  %v3370_v44 = vld [vmem:[%s9652_s29 + $0xf0] sm:$0xff]  ;;  %v3444_v43 = vld [vmem:[%s9583_s5] sm:$0x1] }
0x2415   : > { %v3312_v41 = vsel %vm3310_vm10, %v8146_v51, 256  ;;  %v3313_v58 = vsel %vm3311_vm11, %v8149_v52, 256 }
0x2416   : > { %v3314_v18 = vsel %vm1976_vm9, %v3312_v41, 2147483647  ;;  %v3315_v59 = vsel %vm1976_vm9, %v3313_v58, 2147483647  ;;  %7305 = vmatpush3.bf16.msra.mxu1 %v8893_v29  ;;  %v3371_v41 = vld [vmem:[%s9652_s29 + $0xf8] sm:$0xff] }
0x2417   : > { %vm3316_vm12 = vcmp.lt.s32.totalorder %v3314_v18, %v3315_v59  ;;  %v8904_v58 = vpack.c.bf16 %v3371_v41, %v3370_v44 }
0x2418   : > { %v3317_v42 = vsel %vm3316_vm12, %v3314_v18, %v3315_v59  ;;  %v3354_v18 = vld [vmem:[%s9652_s29 + $0x70] sm:$0xff]  ;;  %v3355_v59 = vld [vmem:[%s9652_s29 + $0x78] sm:$0xff] }
0x2419   : > { %v3319_v47 = vshra.s32 %v3317_v42, 16  ;;  %v3318_v32 = vand.u32 65535, %v3317_v42  ;;  %v8912_v42 = vpack.c.bf16 %v3355_v59, %v3354_v18  ;;  %7307 = vmatprep.subr.bf16.mxu1 %v8904_v58  ;;  %v8974_v59 = vld [vmem:[#allocation2] sm:$0xff] }
0x241b   : > { %v8768_v2 = vcvt.s32.f32 %v3319_v47  ;;  %v3320_v31 = vcvt.s32.f32 %v3318_v32  ;;  %7309 = vmatpush3.bf16.msra.mxu1 %v8912_v42 }
0x241c   : > { %7320 = vmatprep.subr.bf16.mxu1 %v7833_v6 }
0x241d   : > { %3322 = vmin.xlane.f32.xlu1 %v8768_v2 }
0x24aa   : > { %v3323_v3 = vpop.xlane.xlu1 %3322 }
0x24ab   : > { %vm3324_vm13 = vcmp.eq.f32.partialorder %v8768_v2, %v3323_v3  ;;  %v3329_v47 = vcvt.f32.s32 %v3323_v3 }
0x24ac   : > { %v3325_v36 = vsel %vm3324_vm13, %v3320_v31, inf  ;;  %v3464_v31 = vld [vmem:[%s9585_s7] sm:$0x1] }
0x24ad   : > { %3326 = vmin.xlane.f32.xlu0 %v3325_v36  ;;  %v3330_v7 = vshll.u32 %v3329_v47, 16 }
0x253a   : > { %v3327_v2 = vpop.xlane.xlu0 %3326 }
0x253b   : > { %v3328_v4 = vcvt.f32.s32 %v3327_v2 }
0x253d   : > { %v3331_v8 = vadd.s32 %v3330_v7, %v3328_v4  ;;  %v8992_v4 = vadd.s32 9, %v8237_v48 }
0x253f   : > { %v8920_v9 = vsel %vm3338_vm15, %v3331_v8, %v2011_v19  ;;  %vm3333_vm1 = vcmp.eq.s32.totalorder %v8149_v52, %v3331_v8  ;;  %vm3332_vm10 = vcmp.eq.s32.totalorder %v8146_v51, %v3331_v8  ;;  %vm3552_vm11 = vcmp.le.s32.totalorder %v8146_v51, %v8992_v4 }
0x2540   : > { %6149 = vmatprep.mubr.msk.f32.mxu1 %vm3333_vm1, %v7832_v54  ;;  %vm4664_vm1 = vcmp.eq.s32.totalorder %v8146_v51, 2 }
0x2541   : > { %6150 = vmatmul.mubr.msk.f32.vlgmr.msra.gmra.mrb[36].mxu1 %vm3332_vm10, %v7832_v54 }
0x2542   : > { %6832 = vmatprep.mubr.msk.f32.mxu1 %vm7834_vm3, %v7835_v11 }
0x2614   : > { %v6412_v12 = vpop.f32.mrb[36].mxu1 }
0x2615   : > { %v6413_v27 = vpop.f32.mrb[37].mxu1 }
0x2616   : > { %v6414_v63 = vadd.f32 %v6413_v27, %v6412_v12 }
0x2618   : > { %v8931_v28 = vadd.f32 %v6414_v63, %v3372_v21 }
0x261a   : > { %v3445_v33 = vsel %vm2117_vm0, %v8931_v28, 0.0 }
0x261b   : > { %3446 = vadd.xlane.f32.xlu1 %v3445_v33 }
0x26a8   : > { %v3447_v39 = vpop.xlane.xlu1 %3446 }
0x26a9   : > { %v3448_v40 = vmul.f32 0.03125, %v3447_v39 }
0x26ab   : > { %v3449_v1 = vsub.f32 %v8931_v28, %v3448_v40 }
0x26ad   : > { %v3450_v16 = vmul.f32 %v3449_v1, %v3449_v1 }
0x26af   : > { %v3451_v37 = vsel %vm2117_vm0, %v3450_v16, 0.0 }
0x26b0   : > { %3452 = vadd.xlane.f32.xlu0 %v3451_v37 }
0x273d   : > { %v3453_v53 = vpop.xlane.xlu0 %3452 }
0x273e   : > { %v3454_v17 = vmul.f32 0.03125, %v3453_v53 }
0x2740   : > { %v3455_v20 = vadd.f32 1e-05, %v3454_v17 }
0x2742   : > { %7719 = vrsqrt.f32 %v3455_v20 }
0x274c   : > { %v7720_v35 = vpop.eup %7719 }
0x274d   : > { %v3457_v26 = vmul.f32 %v7720_v35, %v3449_v1  ;;  %v9003_v1 = vld [vmem:[#allocation3] sm:$0xff] }
0x274f   : > { %v3458_v32 = vmul.f32 %v3457_v26, %v3443_v13 }
0x2751   : > { %v3459_v3 = vadd.f32 %v3458_v32, %v3444_v43 }
0x2753   : > { %6819 = vmatmul.mubr.msk.f32.vlgmr.msra.gmra.mrb[20].mxu0 %vm606_vm2, %v3459_v3 }
0x2754   : > { %6825 = vmatprep.mubr.msk.f32.mxu0 %vm7834_vm3, %v7835_v11 }
0x2826   : > { %v3534_v36 = vpop.f32.mrb[20].mxu0 }
0x2827   : > { %v8969_v44 = vadd.f32 %v3534_v36, %v3464_v31  ;;  %v6820_v41 = vpop.f32.mrb[21].mxu0 }
0x2829   : > { %3539 = vrot.lane.b32.xlu1 %v8969_v44, %s9668_s2 }
0x289b   : > { %v3540_v18 = vpop.permute.xlu1 %3539 }
0x289c   : > { %3542 = vst.msk [vmem:[#allocation2 + $0x9] sm:$0x1] %vm2117_vm0, %v3540_v18 }
0x28a3   : > { %v3548_v47 = vld [vmem:[#allocation2 + $0x8] sm:$0xff] }
0x28a4   : > { %v8977_v2 = vpack.i.bf16 %v3548_v47, %v8974_v59  ;;  %v7317_v7 = vpack.c.bf16 %v3548_v47, %v8974_v59 }
0x28a6   : > { %7612 = vrot.lane.b32.xlu1 %v8977_v2, %s9662_s22  ;;  %7319 = vmatpush3.bf16.xpose.msk.msra.mxu0 %vm8218_vm5, %v7317_v7 }
0x28a7   : > { %7327 = vmatprep.subr.bf16.mxu0 %v7833_v6 }
0x28aa   : > { %3717 = vrot.lane.b32.xlu1 %v8969_v44, %s9662_s22 }
0x28ad   : > { %6826 = vmatmul.mubr.msk.f32.vlgmr.msra.gmra.mrb[22].mxu0 %vm855_vm4, %v8969_v44 }
0x28ae   : > { %6846 = vmatprep.mubr.msk.f32.mxu0 %vm7834_vm3, %v7835_v11 }
0x2918   : > { %v7613_v24 = vpop.permute.xlu1 %7612 }
0x2919   : > { %v7615_v61 = vunpack.i.h.bf16 %v7613_v24  ;;  %v7614_v53 = vunpack.i.l.bf16 %v7613_v24 }
0x291b   : > { %v7324_v17 = vpack.c.bf16 %v7615_v61, %v7614_v53 }
0x291c   : > { %v3718_v20 = vpop.permute.xlu1 %3717 }
0x2980   : > { %v3627_v8 = vpop.f32.mrb[22].mxu0 }
0x2981   : > { %v3631_v19 = vmul.f32 0.35355338, %v3627_v8  ;;  %v6827_v12 = vpop.f32.mrb[23].mxu0 }
0x2983   : > { %v3632_v21 = vsel %vm3552_vm11, %v3631_v19, -1e+09 }
0x2984   : > { %v3633_v27 = vsel %vm2306_vm6, %v3632_v21, -inf }
0x2985   : > { %3634 = vmax.xlane.f32.xlu0 %v3633_v27 }
0x299b   : > { %3543 = vrot.lane.b32.xlu0 %v8969_v44, %s9669_s0 }
0x2a12   : > { %v3635_v63 = vpop.xlane.xlu0 %3634 }
0x2a13   : > { %v3636_v33 = vsub.f32 %v3632_v21, %v3635_v63 }
0x2a15   : > { %v3637_v39 = vmul.f32 1.442695, %v3636_v33 }
0x2a16   : > { %v3544_v40 = vpop.permute.xlu0 %3543 }
0x2a17   : > { %3546 = vst.msk [vmem:[#allocation3 + $0x9] sm:$0x1] %vm2117_vm0, %v3544_v40  ;;  %7721 = vpow2.f32 %v3637_v39 }
0x2a1e   : > { %v3550_v16 = vld [vmem:[#allocation3 + $0x8] sm:$0xff] }
0x2a1f   : > { %v9006_v37 = vpack.i.bf16 %v3550_v16, %v9003_v1  ;;  %v7321_v23 = vpack.c.bf16 %v3550_v16, %v9003_v1 }
0x2a21   : > { %7617 = vrot.lane.b32.xlu0 %v9006_v37, %s9662_s22  ;;  %7322 = vmatpush3.bf16.msra.mxu1 %v7321_v23  ;;  %v9012_v22 = vpop.eup %7721 }
0x2a22   : > { %7323 = vmatprep.subr.bf16.mxu1 %v7833_v6 }
0x2a24   : > { %6833 = vmatmul.mubr.msk.f32.vlgmr.msra.gmra.mrb[38].mxu1 %vm936_vm7, %v9012_v22 }
0x2a25   : > { %7622 = vrot.lane.b32.xlu0 %v8977_v2, %s9663_s26  ;;  %6839 = vmatprep.mubr.msk.f32.mxu1 %vm7834_vm3, %v7835_v11 }
0x2a29   : > { %3893 = vrot.lane.b32.xlu0 %v8969_v44, %s9663_s26 }
0x2a2a   : > { %7326 = vmatpush3.bf16.xpose.msk.msra.mxu1 %vm8218_vm5, %v7324_v17 }
0x2a2b   : > { %7334 = vmatprep.subr.bf16.mxu1 %v7833_v6 }
0x2a31   : > { %6840 = vmatmul.mubr.msk.f32.vlgmr.msra.gmra.mrb[40].mxu1 %vm855_vm4, %v3718_v20 }
0x2a32   : > { %6860 = vmatprep.mubr.msk.f32.mxu1 %vm7834_vm3, %v7835_v11 }
0x2a93   : > { %v7618_v35 = vpop.permute.xlu0 %7617 }
0x2a94   : > { %v7620_v13 = vunpack.i.h.bf16 %v7618_v35  ;;  %v7619_v26 = vunpack.i.l.bf16 %v7618_v35 }
0x2a96   : > { %v7328_v43 = vpack.c.bf16 %v7620_v13, %v7619_v26 }
0x2a97   : > { %v7623_v33 = vpop.permute.xlu0 %7622 }
0x2a98   : > { %7329 = vmatpush3.bf16.msra.mxu0 %v7328_v43  ;;  %v7625_v39 = vunpack.i.h.bf16 %v7623_v33  ;;  %v7624_v40 = vunpack.i.l.bf16 %v7623_v33 }
0x2a99   : > { %7330 = vmatprep.subr.bf16.mxu0 %v7833_v6 }
0x2a9a   : > { %v7331_v23 = vpack.c.bf16 %v7625_v39, %v7624_v40 }
0x2af7   : > { %v9029_v32 = vpop.f32.mrb[38].mxu1 }
0x2af8   : > { %v6834_v3 = vpop.f32.mrb[39].mxu1 }
0x2b04   : > { %v3795_v31 = vpop.f32.mrb[40].mxu1 }
0x2b05   : > { %v3799_v36 = vmul.f32 0.35355338, %v3795_v31  ;;  %v6841_v41 = vpop.f32.mrb[41].mxu1 }
0x2b07   : > { %v3800_v18 = vsel %vm3552_vm11, %v3799_v36, -1e+09 }
0x2b08   : > { %v3801_v47 = vsel %vm2306_vm6, %v3800_v18, -inf }
0x2b09   : > { %3802 = vmax.xlane.f32.xlu1 %v3801_v47 }
0x2b1a   : > { %7627 = vrot.lane.b32.xlu1 %v9006_v37, %s9663_s26 }
0x2b1e   : > { %4067 = vrot.lane.b32.xlu1 %v8969_v44, %s9664_s21  ;;  %v3894_v44 = vpop.permute.xlu0 %3893 }
0x2b96   : > { %v3803_v7 = vpop.xlane.xlu1 %3802 }
0x2b97   : > { %v3804_v8 = vsub.f32 %v3800_v18, %v3803_v7 }
0x2b99   : > { %v3805_v19 = vmul.f32 1.442695, %v3804_v8 }
0x2b9a   : > { %v7628_v12 = vpop.permute.xlu1 %7627 }
0x2b9b   : > { %7723 = vpow2.f32 %v3805_v19  ;;  %v7630_v21 = vunpack.i.h.bf16 %v7628_v12  ;;  %v7629_v27 = vunpack.i.l.bf16 %v7628_v12 }
0x2b9d   : > { %v7335_v63 = vpack.c.bf16 %v7630_v21, %v7629_v27 }
0x2b9f   : > { %7336 = vmatpush3.bf16.msra.mxu1 %v7335_v63 }
0x2ba0   : > { %7337 = vmatprep.subr.bf16.mxu1 %v7833_v6 }
0x2ba5   : > { %v7724_v16 = vpop.eup %7723 }
0x2ba6   : > { %6847 = vmatmul.mubr.msk.f32.vlgmr.msra.gmra.mrb[24].mxu0 %vm936_vm7, %v7724_v16  ;;  %v3807_v26 = vsel %vm2306_vm6, %v7724_v16, 0.0 }
0x2ba7   : > { %7333 = vmatpush3.bf16.xpose.msk.msra.mxu0 %vm8218_vm5, %v7331_v23  ;;  %6853 = vmatprep.mubr.msk.f32.mxu0 %vm7834_vm3, %v7835_v11 }
0x2ba8   : > { %7341 = vmatprep.subr.bf16.mxu0 %v7833_v6 }
0x2bae   : > { %6854 = vmatmul.mubr.msk.f32.vlgmr.msra.gmra.mrb[26].mxu0 %vm855_vm4, %v3894_v44 }
0x2baf   : > { %6874 = vmatprep.mubr.msk.f32.mxu0 %vm7834_vm3, %v7835_v11 }
0x2c79   : > { %v3887_v24 = vpop.f32.mrb[24].mxu0 }
0x2c7a   : > { %v6848_v61 = vpop.f32.mrb[25].mxu0 }
0x2c81   : > { %v3971_v53 = vpop.f32.mrb[26].mxu0 }
0x2c82   : > { %v3975_v17 = vmul.f32 0.35355338, %v3971_v53  ;;  %v6855_v20 = vpop.f32.mrb[27].mxu0 }
0x2c84   : > { %v3976_v35 = vsel %vm3552_vm11, %v3975_v17, -1e+09 }
0x2c85   : > { %v3977_v13 = vsel %vm2306_vm6, %v3976_v35, -inf }
0x2c86   : > { %3978 = vmax.xlane.f32.xlu0 %v3977_v13 }
0x2c9c   : > { %7632 = vrot.lane.b32.xlu0 %v8977_v2, %s9664_s21 }
0x2ca0   : > { %7637 = vrot.lane.b32.xlu0 %v9006_v37, %s9664_s21  ;;  %v4068_v37 = vpop.permute.xlu1 %4067 }
0x2cbf   : > { %3808 = vadd.xlane.f32.xlu0 %v3807_v26  ;;  %v3639_v26 = vsel %vm2306_vm6, %v9012_v22, 0.0  ;;  %v4259_v22 = vld [vmem:[%s9586_s8 + $0x18] sm:$0xff] }
0x2d13   : > { %v3979_v43 = vpop.xlane.xlu0 %3978 }
0x2d14   : > { %v3980_v3 = vsub.f32 %v3976_v35, %v3979_v43 }
0x2d16   : > { %v3981_v31 = vmul.f32 1.442695, %v3980_v3 }
0x2d17   : > { %v7633_v36 = vpop.permute.xlu0 %7632 }
0x2d18   : > { %7725 = vpow2.f32 %v3981_v31  ;;  %v7635_v7 = vunpack.i.h.bf16 %v7633_v36  ;;  %v7634_v8 = vunpack.i.l.bf16 %v7633_v36  ;;  %v4256_v31 = vld [vmem:[%s9586_s8] sm:$0xff]  ;;  %v4257_v36 = vld [vmem:[%s9586_s8 + $0x8] sm:$0xff] }
0x2d1a   : > { %v7338_v12 = vpack.c.bf16 %v7635_v7, %v7634_v8 }
0x2d1b   : > { %v7638_v41 = vpop.permute.xlu0 %7637 }
0x2d1c   : > { %v7640_v18 = vunpack.i.h.bf16 %v7638_v41  ;;  %v7639_v47 = vunpack.i.l.bf16 %v7638_v41  ;;  %v4258_v41 = vld [vmem:[%s9586_s8 + $0x10] sm:$0xff] }
0x2d1e   : > { %v7342_v19 = vpack.c.bf16 %v7640_v18, %v7639_v47  ;;  %v9090_v18 = vpack.c.bf16 %v4257_v36, %v4256_v31  ;;  %v9096_v47 = vpack.c.bf16 %v4259_v22, %v4258_v41  ;;  %v4355_v31 = vld [vmem:[%s9590_s12 + $0x10] sm:$0xff]  ;;  %v4356_v36 = vld [vmem:[%s9590_s12 + $0x18] sm:$0xff]  ;;  %v4440_v22 = vld [vmem:[%s9592_s14] sm:$0xff] }
0x2d1f   : > { %v9135_v41 = vpack.c.bf16 %v4356_v36, %v4355_v31  ;;  %v4452_v31 = vld [vmem:[%s9592_s14 + $0x60] sm:$0xff]  ;;  %v4453_v36 = vld [vmem:[%s9592_s14 + $0x68] sm:$0xff] }
0x2d20   : > { %7343 = vmatpush3.bf16.msra.mxu0 %v7342_v19 }
0x2d21   : > { %7344 = vmatprep.subr.bf16.mxu0 %v7833_v6 }
0x2d22   : > { %v7726_v2 = vpop.eup %7725 }
0x2d23   : > { %6861 = vmatmul.mubr.msk.f32.vlgmr.msra.gmra.mrb[42].mxu1 %vm936_vm7, %v7726_v2  ;;  %v3983_v53 = vsel %vm2306_vm6, %v7726_v2, 0.0 }
0x2d24   : > { %7340 = vmatpush3.bf16.xpose.msk.msra.mxu1 %vm8218_vm5, %v7338_v12  ;;  %6867 = vmatprep.mubr.msk.f32.mxu1 %vm7834_vm3, %v7835_v11 }
0x2d25   : > { %7350 = vmatprep.subr.bf16.mxu1 %v7833_v6 }
0x2d2b   : > { %6868 = vmatmul.mubr.msk.f32.vlgmr.msra.gmra.mrb[44].mxu1 %vm855_vm4, %v4068_v37 }
0x2d2c   : > { %6896 = vmatprep.mubr.msk.f32.mxu1 %vm7834_vm3, %v7835_v11 }
0x2d4c   : > { %v3809_v21 = vpop.xlane.xlu0 %3808 }
0x2d4d   : > { %7727 = vrcp.f32 %v3809_v21 }
0x2d57   : > { %v7728_v27 = vpop.eup %7727 }
0x2d58   : > { %v3892_v63 = vmul.f32 %v7728_v27, %v3887_v24 }
0x2d5a   : > { %4242 = vrot.lane.b32.xlu0 %v3892_v63, %s9666_s25 }
0x2dcc   : > { %v4243_v63 = vpop.permute.xlu0 %4242 }
0x2df6   : > { %v4061_v33 = vpop.f32.mrb[42].mxu1 }
0x2df7   : > { %v6862_v39 = vpop.f32.mrb[43].mxu1 }
0x2dfe   : > { %v4145_v40 = vpop.f32.mrb[44].mxu1 }
0x2dff   : > { %v4149_v16 = vmul.f32 0.35355338, %v4145_v40  ;;  %v6869_v23 = vpop.f32.mrb[45].mxu1 }
0x2e01   : > { %v4150_v44 = vsel %vm3552_vm11, %v4149_v16, -1e+09 }
0x2e02   : > { %v4151_v61 = vsel %vm2306_vm6, %v4150_v44, -inf }
0x2e03   : > { %4152 = vmax.xlane.f32.xlu1 %v4151_v61  ;;  %v4334_v61 = vld [vmem:[%s9587_s9] sm:$0x1] }
0x2e07   : > { %3984 = vadd.xlane.f32.xlu1 %v3983_v53 }
0x2e90   : > { %v4153_v17 = vpop.xlane.xlu1 %4152 }
0x2e91   : > { %v4154_v20 = vsub.f32 %v4150_v44, %v4153_v17 }
0x2e93   : > { %v4155_v24 = vmul.f32 1.442695, %v4154_v20 }
0x2e94   : > { %v3985_v4 = vpop.xlane.xlu1 %3984 }
0x2e95   : > { %7729 = vpow2.f32 %v4155_v24 }
0x2e96   : > { %7731 = vrcp.f32 %v3985_v4 }
0x2e9f   : > { %v7730_v35 = vpop.eup %7729 }
0x2ea0   : > { %6875 = vmatmul.mubr.msk.f32.vlgmr.msra.gmra.mrb[28].mxu0 %vm936_vm7, %v7730_v35  ;;  %v4157_v13 = vsel %vm2306_vm6, %v7730_v35, 0.0  ;;  %v7732_v43 = vpop.eup %7731 }
0x2ea1   : > { %4158 = vadd.xlane.f32.xlu1 %v4157_v13  ;;  %6885 = vmatprep.mubr.msk.f32.mxu0 %vm7834_vm3, %v7835_v11  ;;  %v4066_v3 = vmul.f32 %v7732_v43, %v4061_v33  ;;  %v4353_v43 = vld [vmem:[%s9590_s12] sm:$0xff] }
0x2ea2   : > { %7346 = vmatpush3.bf16.msra.mxu0 %v9090_v18 }
0x2ea3   : > { %7347 = vmatprep.subr.bf16.mxu0 %v7833_v6 }
0x2ea5   : > { %3640 = vadd.xlane.f32.xlu1 %v3639_v26 }
0x2ea6   : > { %7349 = vmatpush3.bf16.msra.mxu0 %v9096_v47 }
0x2ea7   : > { %7356 = vmatprep.subr.bf16.mxu0 %v7833_v6 }
0x2eb6   : > { %4246 = vrot.lane.b32.xlu1 %v4066_v3, %s9665_s24 }
0x2f2e   : > { %v4159_v7 = vpop.xlane.xlu1 %4158 }
0x2f2f   : > { %7733 = vrcp.f32 %v4159_v7  ;;  %v4441_v7 = vld [vmem:[%s9592_s14 + $0x8] sm:$0xff] }
0x2f32   : > { %v3641_v37 = vpop.xlane.xlu1 %3640 }
0x2f33   : > { %7735 = vrcp.f32 %v3641_v37 }
0x2f36   : > { %v4247_v33 = vpop.permute.xlu1 %4246 }
0x2f39   : > { %v7734_v8 = vpop.eup %7733 }
0x2f3d   : > { %v7736_v21 = vpop.eup %7735 }
0x2f3e   : > { %v3716_v27 = vmul.f32 %v7736_v21, %v9029_v32  ;;  %v4336_v21 = vld [vmem:[%s9588_s10] sm:$0x1] }
0x2f40   : > { %v4253_v39 = vsel %vm855_vm4, %v3716_v27, %v4243_v63  ;;  %v4337_v63 = vld [vmem:[%s9589_s11] sm:$0x1] }
0x2f41   : > { %v4254_v40 = vsel %vm936_vm7, %v4253_v39, %v4247_v33 }
0x2f73   : > { %v4235_v19 = vpop.f32.mrb[28].mxu0 }
0x2f74   : > { %v4240_v2 = vmul.f32 %v7734_v8, %v4235_v19  ;;  %v6876_v12 = vpop.f32.mrb[29].mxu0  ;;  %v9144_v8 = vpack.c.bf16 %v4441_v7, %v4440_v22  ;;  %v9211_v22 = vpack.c.bf16 %v4453_v36, %v4452_v31  ;;  %v4454_v7 = vld [vmem:[%s9592_s14 + $0x70] sm:$0xff] }
0x2f76   : > { %4250 = vrot.lane.b32.xlu1 %v4240_v2, %s9667_s28 }
0x2fe8   : > { %v4251_v16 = vpop.permute.xlu1 %4250 }
0x2fe9   : > { %v4255_v23 = vsel %vm1559_vm8, %v4254_v40, %v4251_v16  ;;  %v4442_v40 = vld [vmem:[%s9592_s14 + $0x10] sm:$0xff]  ;;  %v4443_v16 = vld [vmem:[%s9592_s14 + $0x18] sm:$0xff] }
0x2fea   : > { %6886 = vmatmul.mubr.msk.f32.vlgmr.msra.gmra.mrb[30].mxu0 %vm606_vm2, %v4255_v23  ;;  %v9162_v23 = vpack.c.bf16 %v4443_v16, %v4442_v40 }
0x2feb   : > { %6931 = vmatprep.mubr.msk.f32.mxu0 %vm7834_vm3, %v7835_v11  ;;  %7358 = vmatpush3.bf16.msra.mxu0 %v9144_v8 }
0x2fec   : > { %7359 = vmatprep.subr.bf16.mxu0 %v7833_v6 }
0x2fef   : > { %7361 = vmatpush3.bf16.msra.mxu0 %v9162_v23 }
0x2ff0   : > { %7362 = vmatprep.subr.bf16.mxu0 %v7833_v6 }
0x30bd   : > { %v4329_v44 = vpop.f32.mrb[30].mxu0 }
0x30be   : > { %v4333_v32 = vadd.f32 %v4329_v44, %v8931_v28  ;;  %v6887_v53 = vpop.f32.mrb[31].mxu0  ;;  %v4354_v28 = vld [vmem:[%s9590_s12 + $0x8] sm:$0xff]  ;;  %v4444_v44 = vld [vmem:[%s9592_s14 + $0x20] sm:$0xff] }
0x30bf   : > { %v9125_v3 = vpack.c.bf16 %v4354_v28, %v4353_v43  ;;  %v4446_v53 = vld [vmem:[%s9592_s14 + $0x30] sm:$0xff]  ;;  %v4451_v43 = vld [vmem:[%s9592_s14 + $0x58] sm:$0xff] }
0x30c0   : > { %v9113_v17 = vadd.f32 %v4334_v61, %v4333_v32  ;;  %v4445_v61 = vld [vmem:[%s9592_s14 + $0x28] sm:$0xff] }
0x30c1   : > { %7352 = vmatpush3.bf16.msra.mxu1 %v9125_v3  ;;  %v9172_v32 = vpack.c.bf16 %v4445_v61, %v4444_v44 }
0x30c2   : > { %v4338_v20 = vsel %vm2117_vm0, %v9113_v17, 0.0  ;;  %7353 = vmatprep.subr.bf16.mxu1 %v7833_v6 }
0x30c3   : > { %4339 = vadd.xlane.f32.xlu0 %v4338_v20  ;;  %7364 = vmatpush3.bf16.msra.mxu0 %v9172_v32  ;;  %v4447_v20 = vld [vmem:[%s9592_s14 + $0x38] sm:$0xff] }
0x30c4   : > { %7365 = vmatprep.subr.bf16.mxu0 %v7833_v6 }
0x30c5   : > { %7355 = vmatpush3.bf16.msra.mxu1 %v9135_v41 }
0x3150   : > { %v4340_v24 = vpop.xlane.xlu0 %4339 }
0x3151   : > { %v4341_v35 = vmul.f32 0.03125, %v4340_v24  ;;  %v9182_v24 = vpack.c.bf16 %v4447_v20, %v4446_v53 }
0x3153   : > { %v4342_v13 = vsub.f32 %v9113_v17, %v4341_v35  ;;  %v4448_v35 = vld [vmem:[%s9592_s14 + $0x40] sm:$0xff]  ;;  %7367 = vmatpush3.bf16.msra.mxu0 %v9182_v24 }
0x3154   : > { %7368 = vmatprep.subr.bf16.mxu0 %v7833_v6 }
0x3155   : > { %v4343_v4 = vmul.f32 %v4342_v13, %v4342_v13 }
0x3157   : > { %v4344_v26 = vsel %vm2117_vm0, %v4343_v4, 0.0 }
0x3158   : > { %4345 = vadd.xlane.f32.xlu1 %v4344_v26  ;;  %v4450_v26 = vld [vmem:[%s9592_s14 + $0x50] sm:$0xff] }
0x3159   : > { %v9201_v28 = vpack.c.bf16 %v4451_v43, %v4450_v26 }
0x31e5   : > { %v4346_v19 = vpop.xlane.xlu1 %4345 }
0x31e6   : > { %v4347_v2 = vmul.f32 0.03125, %v4346_v19  ;;  %v4455_v19 = vld [vmem:[%s9592_s14 + $0x78] sm:$0xff] }
0x31e8   : > { %v4348_v12 = vadd.f32 1e-05, %v4347_v2  ;;  %v9221_v2 = vpack.c.bf16 %v4455_v19, %v4454_v7 }
0x31ea   : > { %7737 = vrsqrt.f32 %v4348_v12  ;;  %v4357_v12 = vld [vmem:[%s9591_s13] sm:$0x1] }
0x31f4   : > { %v7738_v37 = vpop.eup %7737 }
0x31f5   : > { %v4350_v27 = vmul.f32 %v7738_v37, %v4342_v13  ;;  %v4449_v13 = vld [vmem:[%s9592_s14 + $0x48] sm:$0xff] }
0x31f6   : > { %v9191_v4 = vpack.c.bf16 %v4449_v13, %v4448_v35  ;;  %v4527_v13 = vld [vmem:[%s9593_s15] sm:$0x1] }
0x31f7   : > { %v4351_v33 = vmul.f32 %v4350_v27, %v4336_v21 }
0x31f8   : > { %7370 = vmatpush3.bf16.msra.mxu0 %v9191_v4 }
0x31f9   : > { %v4352_v39 = vadd.f32 %v4351_v33, %v4337_v63  ;;  %7371 = vmatprep.subr.bf16.mxu0 %v7833_v6 }
0x31fb   : > { %6897 = vmatmul.mubr.msk.f32.vlgmr.msra.gmra.mrb[46].mxu1 %vm606_vm2, %v4352_v39 }
0x31fc   : > { %4624 = vmatprep.mubr.f32.mxu1 %v7835_v11  ;;  %7373 = vmatpush3.bf16.msra.mxu0 %v9201_v28 }
0x31fd   : > { %7374 = vmatprep.subr.bf16.mxu0 %v7833_v6 }
0x3200   : > { %7376 = vmatpush3.bf16.msra.mxu0 %v9211_v22 }
0x3201   : > { %7377 = vmatprep.subr.bf16.mxu0 %v7833_v6 }
0x3204   : > { %7379 = vmatpush3.bf16.msra.mxu0 %v9221_v2 }
0x3205   : > { %7420 = vmatprep.subr.bf16.mxu0 %v7833_v6 }
0x32ce   : > { %v4427_v37 = vpop.f32.mrb[46].mxu1 }
0x32cf   : > { %v4428_v21 = vadd.f32 %v4427_v37, %v4357_v12  ;;  %v6898_v27 = vpop.f32.mrb[47].mxu1  ;;  %v4551_v37 = vld [vmem:[%s9659_s19 + $0x8] sm:$0xff] }
0x32d0   : > { %v4550_v27 = vld [vmem:[%s9659_s19] sm:$0xff] }
0x32d1   : > { %v4432_v63 = vmul.f32 0.044715, %v4428_v21  ;;  %v4431_v61 = vmul.f32 0.5, %v4428_v21 }
0x32d3   : > { %v4433_v33 = vmul.f32 %v4432_v63, %v4428_v21  ;;  %v4552_v63 = vld [vmem:[%s9659_s19 + $0x10] sm:$0xff] }
0x32d5   : > { %v4434_v39 = vmul.f32 %v4433_v33, %v4428_v21  ;;  %v9255_v33 = vpack.c.bf16 %v4552_v63, %v4550_v27 }
0x32d7   : > { %v4435_v40 = vadd.f32 %v4434_v39, %v4428_v21  ;;  %v4555_v39 = vld [vmem:[%s9659_s19 + $0x28] sm:$0xff] }
0x32d9   : > { %v4436_v16 = vmul.f32 0.7978846, %v4435_v40  ;;  %v4557_v40 = vld [vmem:[%s9659_s19 + $0x38] sm:$0xff] }
0x32db   : > { %7739 = vtanh.f32 %v4436_v16  ;;  %v4554_v16 = vld [vmem:[%s9659_s19 + $0x20] sm:$0xff] }
0x32e5   : > { %v7740_v44 = vpop.eup %7739 }
0x32e6   : > { %v4438_v53 = vadd.f32 1.0, %v7740_v44  ;;  %v9268_v44 = vpack.c.bf16 %v4557_v40, %v4555_v39 }
0x32e8   : > { %v4439_v20 = vmul.f32 %v4438_v53, %v4431_v61  ;;  %v4556_v61 = vld [vmem:[%s9659_s19 + $0x30] sm:$0xff] }
0x32e9   : > { %v9273_v53 = vpack.c.bf16 %v4556_v61, %v4554_v16  ;;  %v4698_v61 = vld [vmem:[%s9655_s23 + $0xa] sm:$0x1] }
0x32ea   : > { %6932 = vmatmul.mubr.f32.vlgmr.msra.gmra.mrb[32].mxu0 %v4439_v20 }
0x32eb   : > { %7422 = vmatpush3.bf16.msra.mxu0 %v8943_v55  ;;  %6942 = vmatprep.mubr.msk.f32.mxu0 %vm7834_vm3, %v7835_v11 }
0x32ec   : > { %7423 = vmatprep.subr.bf16.mxu0 %v7833_v6 }
0x32ef   : > { %7425 = vmatpush3.bf16.msra.mxu0 %v8953_v10 }
0x32f0   : > { %7426 = vmatprep.subr.bf16.mxu0 %v7833_v6 }
0x33bd   : > { %v4522_v35 = vpop.f32.mrb[32].mxu0 }
0x33be   : > { %v4526_v26 = vadd.f32 %v4522_v35, %v9113_v17  ;;  %v6933_v43 = vpop.f32.mrb[33].mxu0  ;;  %v4553_v17 = vld [vmem:[%s9659_s19 + $0x18] sm:$0xff] }
0x33bf   : > { %v9247_v21 = vpack.c.bf16 %v4553_v17, %v4551_v37  ;;  %v4529_v43 = vld [vmem:[%s9670_s30] sm:$0x1] }
0x33c0   : > { %v4528_v31 = vadd.f32 %v4527_v13, %v4526_v26 }
0x33c1   : > { %7381 = vmatprep.subr.bf16.mxu1 %v9247_v21 }
0x33c2   : > { %v4531_v55 = vsel %vm2117_vm0, %v4528_v31, 0.0  ;;  %7383 = vmatpush1.bf16.msra.mxu1 %v9255_v33 }
0x33c3   : > { %4532 = vadd.xlane.f32.xlu0 %v4531_v55  ;;  %7385 = vmatprep.subr.bf16.mxu1 %v9268_v44  ;;  %v4530_v55 = vld [vmem:[%s9671_s17] sm:$0x1] }
0x33c6   : > { %7387 = vmatpush1.bf16.msra.mxu1 %v9273_v53 }
0x33c7   : > { %7389 = vmatprep.subr.bf16.mxu1 %v8780_v45 }
0x3450   : > { %v4533_v36 = vpop.xlane.xlu0 %4532 }
0x3451   : > { %v4534_v7 = vmul.f32 0.03125, %v4533_v36  ;;  %v3221_v36 = vrot.slane %v8758_v60, 1 }
0x3453   : > { %v4535_v19 = vsub.f32 %v4528_v31, %v4534_v7  ;;  %v3223_v45 = vadd.f32 %v3221_v36, %v8525_v30 }
0x3455   : > { %v4536_v12 = vmul.f32 %v4535_v19, %v4535_v19 }
0x3457   : > { %v4537_v10 = vsel %vm2117_vm0, %v4536_v12, 0.0 }
0x3458   : > { %4538 = vadd.xlane.f32.xlu0 %v4537_v10 }
0x34e5   : > { %v4539_v20 = vpop.xlane.xlu0 %4538 }
0x34e6   : > { %v4540_v35 = vmul.f32 0.03125, %v4539_v20 }
0x34e8   : > { %v4541_v13 = vadd.f32 1e-05, %v4540_v35 }
0x34ea   : > { %7741 = vrsqrt.f32 %v4541_v13 }
0x34f4   : > { %v7742_v26 = vpop.eup %7741 }
0x34f5   : > { %v4543_v31 = vmul.f32 %v7742_v26, %v4535_v19 }
0x34f7   : > { %v4544_v7 = vmul.f32 %v4543_v31, %v4529_v43 }
0x34f9   : > { %v4545_v12 = vadd.f32 %v4544_v7, %v4530_v55 }
0x34fb   : > { %6170 = vmatmul.mubr.msk.f32.vlgmr.msra.gmra.mrb[48].mxu1 %vm606_vm2, %v4545_v12  ;;  %v4547_v10 = vrot.slane %v4545_v12, 1 }
0x34fc   : > { %7391 = vmatpush3.bf16.msra.mxu1 %v8791_v14 }
0x34fd   : > { %7393 = vmatprep.subr.bf16.mxu1 %v8793_v15  ;;  %v9289_v37 = vadd.f32 %v4547_v10, %v3223_v45  ;;  %v4769_v10 = vld [vmem:[%s9656_s4] sm:$0x1] }
0x3500   : > { %7395 = vmatpush3.bf16.msra.mxu1 %v8809_v62 }
0x3501   : > { %7397 = vmatprep.subr.bf16.mxu1 %v8812_v34 }
0x3504   : > { %7399 = vmatpush3.bf16.msra.mxu1 %v8827_v46 }
0x3505   : > { %7401 = vmatprep.subr.bf16.mxu1 %v8830_v0 }
0x3508   : > { %7403 = vmatpush3.bf16.msra.mxu1 %v8845_v49 }
0x3509   : > { %7405 = vmatprep.subr.bf16.mxu1 %v8848_v56 }
0x350c   : > { %7407 = vmatpush3.bf16.msra.mxu1 %v8863_v5 }
0x350d   : > { %7409 = vmatprep.subr.bf16.mxu1 %v8866_v57 }
0x3510   : > { %7411 = vmatpush3.bf16.msra.mxu1 %v8881_v50 }
0x3511   : > { %7413 = vmatprep.subr.bf16.mxu1 %v8884_v25 }
0x3514   : > { %7415 = vmatpush3.bf16.msra.mxu1 %v8893_v29 }
0x3515   : > { %7417 = vmatprep.subr.bf16.mxu1 %v8904_v58 }
0x3518   : > { %7419 = vmatpush3.bf16.msra.mxu1 %v8912_v42 }
0x3519   : > { %7430 = vmatprep.subr.bf16.mxu1 %v7833_v6 }
0x35ce   : > { %v4626_v30 = vpop.f32.mrb[48].mxu1 }
0x35cf   : > { %v4631_v60 = vsel %vm1976_vm9, %v4626_v30, -inf  ;;  %v4628_v14 = vpop.f32.mrb[49].mxu1 }
0x35d0   : > { %v4632_v15 = vsel %vm1976_vm9, %v4628_v14, -inf }
0x35d1   : > { %v4633_v62 = vmax.f32 %v4631_v60, %v4632_v15  ;;  %v4770_v60 = vld [vmem:[%s9583_s5] sm:$0x1] }
0x35d3   : > { %4634 = vmax.xlane.f32.xlu1 %v4633_v62  ;;  %v4790_v62 = vld [vmem:[%s9585_s7] sm:$0x1] }
0x3660   : > { %v4635_v34 = vpop.xlane.xlu1 %4634 }
0x3661   : > { %vm4636_vm12 = vcmp.eq.f32.partialorder %v4626_v30, %v4635_v34  ;;  %vm4637_vm13 = vcmp.eq.f32.partialorder %v4628_v14, %v4635_v34 }
0x3662   : > { %v4638_v46 = vsel %vm4636_vm12, %v8146_v51, 256  ;;  %v4639_v0 = vsel %vm4637_vm13, %v8149_v52, 256 }
0x3663   : > { %v4640_v49 = vsel %vm1976_vm9, %v4638_v46, 2147483647  ;;  %v4641_v56 = vsel %vm1976_vm9, %v4639_v0, 2147483647 }
0x3664   : > { %vm4642_vm14 = vcmp.lt.s32.totalorder %v4640_v49, %v4641_v56 }
0x3665   : > { %v4643_v5 = vsel %vm4642_vm14, %v4640_v49, %v4641_v56 }
0x3666   : > { %v4645_v57 = vshra.s32 %v4643_v5, 16  ;;  %v4644_v25 = vand.u32 65535, %v4643_v5 }
0x3668   : > { %v4647_v50 = vcvt.s32.f32 %v4645_v57  ;;  %v4646_v58 = vcvt.s32.f32 %v4644_v25 }
0x366a   : > { %4648 = vmin.xlane.f32.xlu0 %v4647_v50 }
0x36f7   : > { %v4649_v29 = vpop.xlane.xlu0 %4648 }
0x36f8   : > { %vm4650_vm15 = vcmp.eq.f32.partialorder %v4647_v50, %v4649_v29  ;;  %v4655_v19 = vcvt.f32.s32 %v4649_v29 }
0x36f9   : > { %v4651_v42 = vsel %vm4650_vm15, %v4646_v58, inf  ;;  %v9366_v58 = vadd.s32 10, %v8237_v48 }
0x36fa   : > { %4652 = vmin.xlane.f32.xlu1 %v4651_v42  ;;  %v4656_v27 = vshll.u32 %v4655_v19, 16 }
0x36fb   : > { %vm4878_vm12 = vcmp.le.s32.totalorder %v8146_v51, %v9366_v58 }
0x3787   : > { %v4653_v17 = vpop.xlane.xlu1 %4652 }
0x3788   : > { %v4654_v63 = vcvt.f32.s32 %v4653_v17 }
0x378a   : > { %v4657_v39 = vadd.s32 %v4656_v27, %v4654_v63 }
0x378c   : > { %v9313_v40 = vsel %vm4664_vm1, %v4657_v39, %v8920_v9  ;;  %vm4659_vm10 = vcmp.eq.s32.totalorder %v8149_v52, %v4657_v39  ;;  %vm4658_vm11 = vcmp.eq.s32.totalorder %v8146_v51, %v4657_v39 }
0x378d   : > { %6173 = vmatprep.mubr.msk.f32.mxu1 %vm4659_vm10, %v7832_v54 }
0x378e   : > { %6174 = vmatmul.mubr.msk.f32.vlgmr.msra.gmra.mrb[50].mxu1 %vm4658_vm11, %v7832_v54 }
0x378f   : > { %6956 = vmatprep.mubr.msk.f32.mxu1 %vm7834_vm3, %v7835_v11 }
0x3861   : > { %v6503_v16 = vpop.f32.mrb[50].mxu1 }
0x3862   : > { %v6504_v20 = vpop.f32.mrb[51].mxu1 }
0x3863   : > { %v6505_v35 = vadd.f32 %v6504_v20, %v6503_v16 }
0x3865   : > { %v9324_v9 = vadd.f32 %v6505_v35, %v4698_v61 }
0x3867   : > { %v4771_v13 = vsel %vm2117_vm0, %v9324_v9, 0.0 }
0x3868   : > { %4772 = vadd.xlane.f32.xlu0 %v4771_v13 }
0x38f5   : > { %v4773_v26 = vpop.xlane.xlu0 %4772 }
0x38f6   : > { %v4774_v43 = vmul.f32 0.03125, %v4773_v26 }
0x38f8   : > { %v4775_v54 = vsub.f32 %v9324_v9, %v4774_v43 }
0x38fa   : > { %v4776_v31 = vmul.f32 %v4775_v54, %v4775_v54 }
0x38fc   : > { %v4777_v55 = vsel %vm2117_vm0, %v4776_v31, 0.0 }
0x38fd   : > { %4778 = vadd.xlane.f32.xlu1 %v4777_v55 }
0x398a   : > { %v4779_v36 = vpop.xlane.xlu1 %4778 }
0x398b   : > { %v4780_v7 = vmul.f32 0.03125, %v4779_v36 }
0x398d   : > { %v4781_v12 = vadd.f32 1e-05, %v4780_v7 }
0x398f   : > { %7743 = vrsqrt.f32 %v4781_v12 }
0x3999   : > { %v7744_v45 = vpop.eup %7743 }
0x399a   : > { %v4783_v30 = vmul.f32 %v7744_v45, %v4775_v54 }
0x399c   : > { %v4784_v14 = vmul.f32 %v4783_v30, %v4769_v10 }
0x399e   : > { %v4785_v15 = vadd.f32 %v4784_v14, %v4770_v60 }
0x39a0   : > { %6943 = vmatmul.mubr.msk.f32.vlgmr.msra.gmra.mrb[34].mxu0 %vm606_vm2, %v4785_v15 }
0x39a1   : > { %6949 = vmatprep.mubr.msk.f32.mxu0 %vm7834_vm3, %v7835_v11 }
0x3a73   : > { %v4860_v34 = vpop.f32.mrb[34].mxu0 }
0x3a74   : > { %v9342_v46 = vadd.f32 %v4860_v34, %v4790_v62  ;;  %v6944_v0 = vpop.f32.mrb[35].mxu0 }
0x3a76   : > { %4869 = vrot.lane.b32.xlu1 %v9342_v46, %s9669_s0  ;;  %4865 = vrot.lane.b32.xlu0 %v9342_v46, %s9668_s2  ;;  %s9675_s0 = sld [smem:[#allocation24_spill]] }
0x3a7c   : > { %s9676_s18 = smov %s9675_s0 }
0x3ae8   : > { %v4870_v49 = vpop.permute.xlu1 %4869  ;;  %v4866_v56 = vpop.permute.xlu0 %4865 }
0x3ae9   : > { %4872 = vst.msk [vmem:[#allocation3 + $0xa] sm:$0x1] %vm2117_vm0, %v4870_v49  ;;  %4868 = vst.msk [vmem:[#allocation2 + $0xa] sm:$0x1] %vm2117_vm0, %v4866_v56 }
0x3af0   : > { %v4876_v5 = vld [vmem:[#allocation3 + $0x8] sm:$0xff]  ;;  %v4874_v57 = vld [vmem:[#allocation2 + $0x8] sm:$0xff] }
0x3af1   : > { %v7431_v50 = vpack.c.bf16 %v4876_v5, %v9003_v1  ;;  %v9352_v25 = vpack.i.bf16 %v4874_v57, %v8974_v59  ;;  %v7427_v29 = vpack.c.bf16 %v4874_v57, %v8974_v59  ;;  %v9377_v63 = vpack.i.bf16 %v4876_v5, %v9003_v1 }
0x3af3   : > { %7432 = vmatpush3.bf16.msra.mxu1 %v7431_v50  ;;  %7642 = vrot.lane.b32.xlu0 %v9352_v25, %s9662_s22 }
0x3af4   : > { %7429 = vmatpush3.bf16.xpose.msk.msra.mxu0 %vm8218_vm5, %v7427_v29  ;;  %7433 = vmatprep.subr.bf16.mxu1 %v7833_v6 }
0x3af5   : > { %7437 = vmatprep.subr.bf16.mxu0 %v7833_v6 }
0x3afb   : > { %6950 = vmatmul.mubr.msk.f32.vlgmr.msra.gmra.mrb[36].mxu0 %vm855_vm4, %v9342_v46 }
0x3afc   : > { %6970 = vmatprep.mubr.msk.f32.mxu0 %vm7834_vm3, %v7835_v11 }
0x3b65   : > { %v7643_v20 = vpop.permute.xlu0 %7642 }
0x3b66   : > { %v7645_v1 = vunpack.i.h.bf16 %v7643_v20  ;;  %v7644_v43 = vunpack.i.l.bf16 %v7643_v20 }
0x3b68   : > { %v7434_v55 = vpack.c.bf16 %v7645_v1, %v7644_v43 }
0x3bce   : > { %v4953_v59 = vpop.f32.mrb[36].mxu0 }
0x3bcf   : > { %v4957_v42 = vmul.f32 0.35355338, %v4953_v59  ;;  %v6951_v19 = vpop.f32.mrb[37].mxu0 }
0x3bd1   : > { %v4958_v17 = vsel %vm4878_vm12, %v4957_v42, -1e+09 }
0x3bd2   : > { %v4959_v27 = vsel %vm2306_vm6, %v4958_v17, -inf }
0x3bd3   : > { %4960 = vmax.xlane.f32.xlu1 %v4959_v27 }
0x3be4   : > { %5043 = vrot.lane.b32.xlu1 %v9342_v46, %s9662_s22 }
0x3be8   : > { %7647 = vrot.lane.b32.xlu1 %v9377_v63, %s9662_s22  ;;  %s7771_s22 = sshll.u32 %s7844_s27, 4  ;;  %s7772_s22 = int_to_ptr.vmem [resolvable:$false] %s7771_s22 }
0x3be9   : > { %s7773_s4 = scalar_lea.vmem %s7772_s22, 32 }
0x3bec   : > { %7652 = vrot.lane.b32.xlu1 %v9352_v25, %s9663_s26 }
0x3bf0   : > { %5219 = vrot.lane.b32.xlu1 %v9342_v46, %s9663_s26 }
0x3c60   : > { %v4961_v48 = vpop.xlane.xlu1 %4960 }
0x3c61   : > { %v4962_v39 = vsub.f32 %v4958_v17, %v4961_v48 }
0x3c63   : > { %v4963_v16 = vmul.f32 1.442695, %v4962_v39 }
0x3c64   : > { %v5044_v61 = vpop.permute.xlu1 %5043 }
0x3c65   : > { %7745 = vpow2.f32 %v4963_v16 }
0x3c68   : > { %v7648_v35 = vpop.permute.xlu1 %7647 }
0x3c69   : > { %v7650_v13 = vunpack.i.h.bf16 %v7648_v35  ;;  %v7649_v26 = vunpack.i.l.bf16 %v7648_v35 }
0x3c6b   : > { %v7438_v54 = vpack.c.bf16 %v7650_v13, %v7649_v26 }
0x3c6c   : > { %v7653_v5 = vpop.permute.xlu1 %7652 }
0x3c6d   : > { %7439 = vmatpush3.bf16.msra.mxu0 %v7438_v54  ;;  %v7655_v57 = vunpack.i.h.bf16 %v7653_v5  ;;  %v7654_v50 = vunpack.i.l.bf16 %v7653_v5 }
0x3c6e   : > { %7440 = vmatprep.subr.bf16.mxu0 %v7833_v6 }
0x3c6f   : > { %v9386_v31 = vpop.eup %7745  ;;  %v7441_v59 = vpack.c.bf16 %v7655_v57, %v7654_v50 }
0x3c70   : > { %6957 = vmatmul.mubr.msk.f32.vlgmr.msra.gmra.mrb[52].mxu1 %vm936_vm7, %v9386_v31  ;;  %v4965_v57 = vsel %vm2306_vm6, %v9386_v31, 0.0 }
0x3c71   : > { %7436 = vmatpush3.bf16.xpose.msk.msra.mxu1 %vm8218_vm5, %v7434_v55  ;;  %6963 = vmatprep.mubr.msk.f32.mxu1 %vm7834_vm3, %v7835_v11 }
0x3c72   : > { %7444 = vmatprep.subr.bf16.mxu1 %v7833_v6 }
0x3c78   : > { %6964 = vmatmul.mubr.msk.f32.vlgmr.msra.gmra.mrb[54].mxu1 %vm855_vm4, %v5044_v61 }
0x3c79   : > { %6984 = vmatprep.mubr.msk.f32.mxu1 %vm7834_vm3, %v7835_v11 }
0x3d43   : > { %v9398_v36 = vpop.f32.mrb[52].mxu1 }
0x3d44   : > { %v6958_v7 = vpop.f32.mrb[53].mxu1 }
0x3d4b   : > { %v5121_v12 = vpop.f32.mrb[54].mxu1 }
0x3d4c   : > { %v5125_v45 = vmul.f32 0.35355338, %v5121_v12  ;;  %v6965_v10 = vpop.f32.mrb[55].mxu1 }
0x3d4e   : > { %v5126_v30 = vsel %vm4878_vm12, %v5125_v45, -1e+09 }
0x3d4f   : > { %v5127_v60 = vsel %vm2306_vm6, %v5126_v30, -inf }
0x3d50   : > { %5128 = vmax.xlane.f32.xlu0 %v5127_v60 }
0x3d66   : > { %7657 = vrot.lane.b32.xlu0 %v9377_v63, %s9663_s26  ;;  %s592_s26 = sand.u32 1, %s9672_s1  }
0x3d67   : > { %s5992_s16 = scalar_lea.sflag [#allocation5], %s592_s26 }
0x3d6a   : > { %5393 = vrot.lane.b32.xlu0 %v9342_v46, %s9664_s21  ;;  %v5220_v46 = vpop.permute.xlu1 %5219 }
0x3ddd   : > { %v5129_v14 = vpop.xlane.xlu0 %5128 }
0x3dde   : > { %v5130_v15 = vsub.f32 %v5126_v30, %v5129_v14 }
0x3de0   : > { %v5131_v62 = vmul.f32 1.442695, %v5130_v15 }
0x3de1   : > { %v7658_v34 = vpop.permute.xlu0 %7657 }
0x3de2   : > { %7747 = vpow2.f32 %v5131_v62  ;;  %v7660_v0 = vunpack.i.h.bf16 %v7658_v34  ;;  %v7659_v49 = vunpack.i.l.bf16 %v7658_v34 }
0x3de4   : > { %v7445_v56 = vpack.c.bf16 %v7660_v0, %v7659_v49 }
0x3de6   : > { %7446 = vmatpush3.bf16.msra.mxu1 %v7445_v56 }
0x3de7   : > { %7447 = vmatprep.subr.bf16.mxu1 %v7833_v6 }
0x3dec   : > { %v7748_v29 = vpop.eup %7747 }
0x3ded   : > { %6971 = vmatmul.mubr.msk.f32.vlgmr.msra.gmra.mrb[38].mxu0 %vm936_vm7, %v7748_v29  ;;  %v5133_v61 = vsel %vm2306_vm6, %v7748_v29, 0.0 }
0x3dee   : > { %7443 = vmatpush3.bf16.xpose.msk.msra.mxu0 %vm8218_vm5, %v7441_v59  ;;  %6977 = vmatprep.mubr.msk.f32.mxu0 %vm7834_vm3, %v7835_v11 }
0x3def   : > { %7451 = vmatprep.subr.bf16.mxu0 %v7833_v6 }
0x3df5   : > { %6978 = vmatmul.mubr.msk.f32.vlgmr.msra.gmra.mrb[40].mxu0 %vm855_vm4, %v5220_v46 }
0x3df6   : > { %6998 = vmatprep.mubr.msk.f32.mxu0 %vm7834_vm3, %v7835_v11 }
0x3ec0   : > { %v9418_v42 = vpop.f32.mrb[38].mxu0 }
0x3ec1   : > { %v6972_v19 = vpop.f32.mrb[39].mxu0 }
0x3ec8   : > { %v5297_v17 = vpop.f32.mrb[40].mxu0 }
0x3ec9   : > { %v5301_v27 = vmul.f32 0.35355338, %v5297_v17  ;;  %v6979_v48 = vpop.f32.mrb[41].mxu0 }
0x3ecb   : > { %v5302_v39 = vsel %vm4878_vm12, %v5301_v27, -1e+09 }
0x3ecc   : > { %v5303_v16 = vsel %vm2306_vm6, %v5302_v39, -inf }
0x3ecd   : > { %5304 = vmax.xlane.f32.xlu1 %v5303_v16 }
0x3ede   : > { %7662 = vrot.lane.b32.xlu1 %v9352_v25, %s9664_s21 }
0x3ee2   : > { %7667 = vrot.lane.b32.xlu1 %v9377_v63, %s9664_s21  ;;  %v5394_v63 = vpop.permute.xlu0 %5393  ;;  %s9520_s21 = scalar_lea.vmem [#allocation4], %s592_s26 }
0x3f06   : > { %5134 = vadd.xlane.f32.xlu1 %v5133_v61 }
0x3f5a   : > { %v5305_v20 = vpop.xlane.xlu1 %5304 }
0x3f5b   : > { %v5306_v35 = vsub.f32 %v5302_v39, %v5305_v20 }
0x3f5d   : > { %v5307_v13 = vmul.f32 1.442695, %v5306_v35 }
0x3f5e   : > { %v7663_v26 = vpop.permute.xlu1 %7662 }
0x3f5f   : > { %7749 = vpow2.f32 %v5307_v13  ;;  %v7665_v55 = vunpack.i.h.bf16 %v7663_v26  ;;  %v7664_v7 = vunpack.i.l.bf16 %v7663_v26 }
0x3f61   : > { %v7448_v45 = vpack.c.bf16 %v7665_v55, %v7664_v7  ;;  %v5663_v7 = vld [vmem:[%s9589_s11] sm:$0x1] }
0x3f62   : > { %v7668_v1 = vpop.permute.xlu1 %7667 }
0x3f63   : > { %v7670_v43 = vunpack.i.h.bf16 %v7668_v1  ;;  %v7669_v54 = vunpack.i.l.bf16 %v7668_v1 }
0x3f65   : > { %v7452_v12 = vpack.c.bf16 %v7670_v43, %v7669_v54 }
0x3f67   : > { %7453 = vmatpush3.bf16.msra.mxu0 %v7452_v12 }
0x3f68   : > { %7454 = vmatprep.subr.bf16.mxu0 %v7833_v6 }
0x3f69   : > { %v7750_v25 = vpop.eup %7749 }
0x3f6a   : > { %6985 = vmatmul.mubr.msk.f32.vlgmr.msra.gmra.mrb[56].mxu1 %vm936_vm7, %v7750_v25  ;;  %v5309_v62 = vsel %vm2306_vm6, %v7750_v25, 0.0 }
0x3f6b   : > { %7450 = vmatpush3.bf16.xpose.msk.msra.mxu1 %vm8218_vm5, %v7448_v45  ;;  %6991 = vmatprep.mubr.msk.f32.mxu1 %vm7834_vm3, %v7835_v11  ;;  %v5683_v45 = vld [vmem:[%s9591_s13] sm:$0x1] }
0x3f6c   : > { %7460 = vmatprep.subr.bf16.mxu1 %v7833_v6 }
0x3f72   : > { %6992 = vmatmul.mubr.msk.f32.vlgmr.msra.gmra.mrb[58].mxu1 %vm855_vm4, %v5394_v63 }
0x3f73   : > { %7462 = vmatpush3.bf16.msra.mxu1 %v9125_v3  ;;  %7020 = vmatprep.mubr.msk.f32.mxu1 %vm7834_vm3, %v7835_v11 }
0x3f74   : > { %7463 = vmatprep.subr.bf16.mxu1 %v7833_v6 }
0x3f77   : > { %7465 = vmatpush3.bf16.msra.mxu1 %v9135_v41 }
0x3f78   : > { %7491 = vmatprep.subr.bf16.mxu1 %v9247_v21 }
0x3f93   : > { %v5135_v50 = vpop.xlane.xlu1 %5134 }
0x403d   : > { %v5387_v38 = vpop.f32.mrb[56].mxu1 }
0x403e   : > { %v6986_v10 = vpop.f32.mrb[57].mxu1 }
0x4045   : > { %v5471_v30 = vpop.f32.mrb[58].mxu1 }
0x4046   : > { %v5475_v60 = vmul.f32 0.35355338, %v5471_v30  ;;  %v6993_v14 = vpop.f32.mrb[59].mxu1 }
0x4048   : > { %v5476_v15 = vsel %vm4878_vm12, %v5475_v60, -1e+09 }
0x4049   : > { %v5477_v3 = vsel %vm2306_vm6, %v5476_v15, -inf }
0x404a   : > { %5478 = vmax.xlane.f32.xlu0 %v5477_v3 }
0x404e   : > { %5310 = vadd.xlane.f32.xlu0 %v5309_v62 }
0x40d7   : > { %v5479_v34 = vpop.xlane.xlu0 %5478 }
0x40d8   : > { %v5480_v0 = vsub.f32 %v5476_v15, %v5479_v34 }
0x40da   : > { %v5481_v41 = vmul.f32 1.442695, %v5480_v0 }
0x40db   : > { %v5311_v49 = vpop.xlane.xlu0 %5310 }
0x40dc   : > { %7751 = vpow2.f32 %v5481_v41 }
0x40dd   : > { %7753 = vrcp.f32 %v5311_v49 }
0x40de   : > { %7755 = vrcp.f32 %v5135_v50 }
0x40e6   : > { %v7752_v21 = vpop.eup %7751 }
0x40e7   : > { %v7754_v56 = vpop.eup %7753  ;;  %6999 = vmatmul.mubr.msk.f32.vlgmr.msra.gmra.mrb[42].mxu0 %vm936_vm7, %v7752_v21  ;;  %v5483_v5 = vsel %vm2306_vm6, %v7752_v21, 0.0 }
0x40e8   : > { %5484 = vadd.xlane.f32.xlu0 %v5483_v5  ;;  %v5392_v58 = vmul.f32 %v7754_v56, %v5387_v38  ;;  %7456 = vmatpush3.bf16.msra.mxu0 %v9090_v18  ;;  %v7756_v29 = vpop.eup %7755 }
0x40e9   : > { %7457 = vmatprep.subr.bf16.mxu0 %v7833_v6  ;;  %7009 = vmatprep.mubr.msk.f32.mxu0 %vm7834_vm3, %v7835_v11  ;;  %v5218_v18 = vmul.f32 %v7756_v29, %v9418_v42 }
0x40ea   : > { %5572 = vrot.lane.b32.xlu1 %v5392_v58, %s9665_s24 }
0x40ec   : > { %4966 = vadd.xlane.f32.xlu0 %v4965_v57  ;;  %7459 = vmatpush3.bf16.msra.mxu0 %v9096_v47 }
0x40ed   : > { %7466 = vmatprep.subr.bf16.mxu0 %v7833_v6 }
0x4102   : > { %5568 = vrot.lane.b32.xlu0 %v5218_v18, %s9666_s25  ;;  %s6007_s25 = sshll.u32 %s9520_s21, 4  ;;  %s6008_s25 = int_to_ptr.vmem [resolvable:$true] %s6007_s25 }
0x4103   : > { %s7767_s3 = scalar_lea.vmem %s6008_s25, 16  ;;  %p7774_p0 = scmp.lt.s32.totalorder %s6008_s25, %s7772_s22 }
0x4104   : > { %p7768_p11 = scmp.ne.s32.totalorder %s6008_s25, %s7767_s3  ;;  %p7775_p1 = scmp.lt.s32.totalorder %s7773_s4, %s7767_s3 }
0x4106   : > { %p7769_p12 = pnand %p7768_p11, %p7983_p5  ;;  %p7776_p2 = por %p7775_p1, %p7774_p0 }
0x4108   : > { %p7770_p13 = pneg %p7769_p12 }
0x410a   : > { %p7777_p3 = pnand %p7776_p2, %p7770_p13 }
0x415c   : > { %v5573_v61 = vpop.permute.xlu1 %5572 }
0x4175   : > { %v5485_v59 = vpop.xlane.xlu0 %5484 }
0x4176   : > { %7757 = vrcp.f32 %v5485_v59 }
0x4179   : > { %v4967_v31 = vpop.xlane.xlu0 %4966 }
0x417a   : > { %7759 = vrcp.f32 %v4967_v31 }
0x417d   : > { %v5569_v39 = vpop.permute.xlu0 %5568 }
0x4180   : > { %v7758_v46 = vpop.eup %7757 }
0x4184   : > { %v7760_v47 = vpop.eup %7759 }
0x4185   : > { %v5042_v48 = vmul.f32 %v7760_v47, %v9398_v36 }
0x4187   : > { %v5579_v16 = vsel %vm855_vm4, %v5042_v48, %v5569_v39 }
0x4188   : > { %v5580_v42 = vsel %vm936_vm7, %v5579_v16, %v5573_v61 }
0x41ba   : > { %v5561_v19 = vpop.f32.mrb[42].mxu0 }
0x41bb   : > { %v5566_v17 = vmul.f32 %v7758_v46, %v5561_v19  ;;  %v7000_v27 = vpop.f32.mrb[43].mxu0  ;;  %v5855_v19 = vld [vmem:[%s9670_s30] sm:$0x1]  ;;  %s9673_s30 = sld [smem:[#allocation11_spill]] }
0x41bc   : > { %v5856_v27 = vld [vmem:[%s9671_s17] sm:$0x1] }
0x41bd   : > { %5576 = vrot.lane.b32.xlu0 %v5566_v17, %s9667_s28 }
0x41c1   : > { %s6195_s24 = sshll.u32 %s9673_s30, 4 }
0x41c2   : > { %s9534_s20 = scalar_lea.hbm %s9675_s0, %s6195_s24 }
0x422f   : > { %v5577_v20 = vpop.permute.xlu0 %5576 }
0x4230   : > { %v5581_v35 = vsel %vm1559_vm8, %v5580_v42, %v5577_v20 }
0x4231   : > { %7010 = vmatmul.mubr.msk.f32.vlgmr.msra.gmra.mrb[44].mxu0 %vm606_vm2, %v5581_v35 }
0x4232   : > { %7468 = vmatpush3.bf16.msra.mxu0 %v9144_v8  ;;  %7055 = vmatprep.mubr.msk.f32.mxu0 %vm7834_vm3, %v7835_v11  ;;  %vm5987_vm3 = vcmask 261127  }
0x4233   : > { %7469 = vmatprep.subr.bf16.mxu0 %v7833_v6 }
0x4236   : > { %7471 = vmatpush3.bf16.msra.mxu0 %v9162_v23  ;;  %v5660_v23 = vld [vmem:[%s9587_s9] sm:$0x1] }
0x4237   : > { %7472 = vmatprep.subr.bf16.mxu0 %v7833_v6 }
0x423a   : > { %7474 = vmatpush3.bf16.msra.mxu0 %v9172_v32 }
0x423b   : > { %7475 = vmatprep.subr.bf16.mxu0 %v7833_v6 }
0x423e   : > { %7477 = vmatpush3.bf16.msra.mxu0 %v9182_v24 }
0x423f   : > { %7478 = vmatprep.subr.bf16.mxu0 %v7833_v6 }
0x4242   : > { %7480 = vmatpush3.bf16.msra.mxu0 %v9191_v4 }
0x4243   : > { %7481 = vmatprep.subr.bf16.mxu0 %v7833_v6 }
0x4246   : > { %7483 = vmatpush3.bf16.msra.mxu0 %v9201_v28 }
0x4247   : > { %7484 = vmatprep.subr.bf16.mxu0 %v7833_v6 }
0x424a   : > { %7486 = vmatpush3.bf16.msra.mxu0 %v9211_v22 }
0x424b   : > { %7487 = vmatprep.subr.bf16.mxu0 %v7833_v6 }
0x424e   : > { %7489 = vmatpush3.bf16.msra.mxu0 %v9221_v2 }
0x4304   : > { %v5655_v8 = vpop.f32.mrb[44].mxu0 }
0x4305   : > { %v5659_v32 = vadd.f32 %v5655_v8, %v9324_v9  ;;  %v7011_v24 = vpop.f32.mrb[45].mxu0  ;;  %v5662_v9 = vld [vmem:[%s9588_s10] sm:$0x1] }
0x4307   : > { %v5661_v4 = vadd.f32 %v5660_v23, %v5659_v32 }
0x4309   : > { %v5664_v36 = vsel %vm2117_vm0, %v5661_v4, 0.0 }
0x430a   : > { %5665 = vadd.xlane.f32.xlu1 %v5664_v36 }
0x4397   : > { %v5666_v28 = vpop.xlane.xlu1 %5665 }
0x4398   : > { %v5667_v13 = vmul.f32 0.03125, %v5666_v28 }
0x439a   : > { %v5668_v26 = vsub.f32 %v5661_v4, %v5667_v13 }
0x439c   : > { %v5669_v22 = vmul.f32 %v5668_v26, %v5668_v26 }
0x439e   : > { %v5670_v6 = vsel %vm2117_vm0, %v5669_v22, 0.0 }
0x439f   : > { %5671 = vadd.xlane.f32.xlu0 %v5670_v6 }
0x442c   : > { %v5672_v2 = vpop.xlane.xlu0 %5671 }
0x442d   : > { %v5673_v1 = vmul.f32 0.03125, %v5672_v2 }
0x442f   : > { %v5674_v43 = vadd.f32 1e-05, %v5673_v1 }
0x4431   : > { %7761 = vrsqrt.f32 %v5674_v43 }
0x443b   : > { %v7762_v54 = vpop.eup %7761 }
0x443c   : > { %v5676_v55 = vmul.f32 %v7762_v54, %v5668_v26 }
0x443e   : > { %v5677_v12 = vmul.f32 %v5676_v55, %v5662_v9 }
0x4440   : > { %v5678_v25 = vadd.f32 %v5677_v12, %v5663_v7 }
0x4442   : > { %7021 = vmatmul.mubr.msk.f32.vlgmr.msra.gmra.mrb[60].mxu1 %vm606_vm2, %v5678_v25 }
0x4443   : > { %7493 = vmatpush1.bf16.msra.mxu1 %v9255_v33  ;;  %5950 = vmatprep.mubr.f32.mxu1 %v7835_v11 }
0x4444   : > { %7495 = vmatprep.subr.bf16.mxu1 %v9268_v44 }
0x4447   : > { %7497 = vmatpush1.bf16.msra.mxu1 %v9273_v53  ;;  %v5853_v53 = vld [vmem:[%s9593_s15] sm:$0x1] }
0x4515   : > { %v5753_v63 = vpop.f32.mrb[60].mxu1 }
0x4516   : > { %v5754_v38 = vadd.f32 %v5753_v63, %v5683_v45  ;;  %v7022_v10 = vpop.f32.mrb[61].mxu1 }
0x4518   : > { %v5758_v30 = vmul.f32 0.044715, %v5754_v38  ;;  %v5757_v62 = vmul.f32 0.5, %v5754_v38 }
0x451a   : > { %v5759_v60 = vmul.f32 %v5758_v30, %v5754_v38 }
0x451c   : > { %v5760_v14 = vmul.f32 %v5759_v60, %v5754_v38 }
0x451e   : > { %v5761_v15 = vadd.f32 %v5760_v14, %v5754_v38 }
0x4520   : > { %v5762_v3 = vmul.f32 0.7978846, %v5761_v15 }
0x4522   : > { %7763 = vtanh.f32 %v5762_v3 }
0x452c   : > { %v7764_v33 = vpop.eup %7763 }
0x452d   : > { %v5764_v11 = vadd.f32 1.0, %v7764_v33 }
0x452f   : > { %v5765_v34 = vmul.f32 %v5764_v11, %v5757_v62 }
0x4531   : > { %7056 = vmatmul.mubr.f32.vlgmr.msra.gmra.mrb[46].mxu0 %v5765_v34 }
0x4604   : > { %v5848_v44 = vpop.f32.mrb[46].mxu0 }
0x4605   : > { %v5852_v0 = vadd.f32 %v5848_v44, %v5661_v4  ;;  %v7057_v41 = vpop.f32.mrb[47].mxu0 }
0x4607   : > { %v5854_v49 = vadd.f32 %v5853_v53, %v5852_v0 }
0x4609   : > { %v5857_v21 = vsel %vm2117_vm0, %v5854_v49, 0.0 }
0x460a   : > { %5858 = vadd.xlane.f32.xlu0 %v5857_v21 }
0x4697   : > { %v5859_v56 = vpop.xlane.xlu0 %5858 }
0x4698   : > { %v5860_v5 = vmul.f32 0.03125, %v5859_v56 }
0x469a   : > { %v5861_v58 = vsub.f32 %v5854_v49, %v5860_v5 }
0x469c   : > { %v5862_v57 = vmul.f32 %v5861_v58, %v5861_v58 }
0x469e   : > { %v5863_v50 = vsel %vm2117_vm0, %v5862_v57, 0.0 }
0x469f   : > { %5864 = vadd.xlane.f32.xlu1 %v5863_v50 }
0x472c   : > { %v5865_v29 = vpop.xlane.xlu1 %5864 }
0x472d   : > { %v5866_v18 = vmul.f32 0.03125, %v5865_v29 }
0x472f   : > { %v5867_v59 = vadd.f32 1e-05, %v5866_v18 }
0x4731   : > { %7765 = vrsqrt.f32 %v5867_v59 }
0x473b   : > { %v7766_v46 = vpop.eup %7765 }
0x473c   : > { %v5869_v17 = vmul.f32 %v7766_v46, %v5861_v58 }
0x473e   : > { %v5870_v31 = vmul.f32 %v5869_v17, %v5855_v19 }
0x4740   : > { %v5871_v47 = vadd.f32 %v5870_v31, %v5856_v27 }
0x4742   : > { %6194 = vmatmul.mubr.msk.f32.vlgmr.msra.gmra.mrb[62].mxu1 %vm606_vm2, %v5871_v47  ;;  %v5873_v48 = vrot.slane %v5871_v47, 1 }
0x4744   : > { %v5875_v39 = vadd.f32 %v5873_v48, %v9289_v37 }
0x4746   : > { %v5986_v16 = vmul.f32 0.25, %v5875_v39 }
0x4748   : > { %5988 = vst.msk [vmem:[%s9520_s21 - $0x7] sm:$0x80] %vm5987_vm3, %v5986_v16 }
0x4815   : > { %v5952_v61 = vpop.f32.mrb[62].mxu1 }
0x4816   : > { %v5957_v42 = vsel %vm1976_vm9, %v5952_v61, -inf  ;;  %v5954_v20 = vpop.f32.mrb[63].mxu1 }
0x4817   : > { %v5958_v35 = vsel %vm1976_vm9, %v5954_v20, -inf }
0x4818   : > { %v5959_v8 = vmax.f32 %v5957_v42, %v5958_v35 }
0x481a   : > { %5960 = vmax.xlane.f32.xlu0 %v5959_v8 }
0x48a7   : > { %v5961_v23 = vpop.xlane.xlu0 %5960 }
0x48a8   : > { %vm5962_vm2 = vcmp.eq.f32.partialorder %v5952_v61, %v5961_v23  ;;  %vm5963_vm4 = vcmp.eq.f32.partialorder %v5954_v20, %v5961_v23 }
0x48a9   : > { %v5964_v37 = vsel %vm5962_vm2, %v8146_v51, 256  ;;  %v5965_v32 = vsel %vm5963_vm4, %v8149_v52, 256 }
0x48aa   : > { %v5966_v24 = vsel %vm1976_vm9, %v5964_v37, 2147483647  ;;  %v5967_v4 = vsel %vm1976_vm9, %v5965_v32, 2147483647 }
0x48ab   : > { %vm5968_vm5 = vcmp.lt.s32.totalorder %v5966_v24, %v5967_v4 }
0x48ac   : > { %v5969_v36 = vsel %vm5968_vm5, %v5966_v24, %v5967_v4 }
0x48ad   : > { %v5971_v28 = vshra.s32 %v5969_v36, 16  ;;  %v5970_v26 = vand.u32 65535, %v5969_v36 }
0x48af   : > { %v5973_v13 = vcvt.s32.f32 %v5971_v28  ;;  %v5972_v6 = vcvt.s32.f32 %v5970_v26 }
0x48b1   : > { %5974 = vmin.xlane.f32.xlu1 %v5973_v13 }
0x493e   : > { %v5975_v22 = vpop.xlane.xlu1 %5974 }
0x493f   : > { %vm5976_vm7 = vcmp.eq.f32.partialorder %v5973_v13, %v5975_v22 }
0x4940   : > { %v5977_v2 = vsel %vm5976_vm7, %v5972_v6, inf }
0x4941   : > { %5978 = vmin.xlane.f32.xlu0 %v5977_v2 }
0x4942   : > { %7780 = shalt.err (!%p7777_p3)
}
0x4943   : > { %s7781_s1 = scalar_lea.hbm %s9534_s20, 16  ;;  %s7785_s30 = scalar_lea.hbm %s9676_s18, 32 }
0x4944   : > { %p7782_p4 = scmp.ne.s32.totalorder %s9534_s20, %s7781_s1  ;;  %p7786_p9 = scmp.lt.u32.totalorder %s9534_s20, %s9676_s18 }
0x4945   : > { %p7787_p10 = scmp.lt.u32.totalorder %s7785_s30, %s7781_s1  ;;  %p7789_p12 = scmp.lt.u32.totalorder %s7781_s1, %s9534_s20 }
0x4946   : > { %p7783_p7 = pnand %p7782_p4, %p7983_p5 }
0x4947   : > { %p7788_p11 = por %p7787_p10, %p7786_p9 }
0x4948   : > { %p7784_p8 = pneg %p7783_p7 }
0x4949   : > { %p7790_p13 = por %p7789_p12, %p7788_p11 }
0x494b   : > { %p7791_p0 = pnand %p7790_p13, %p7784_p8 }
0x494d   : > { %7794 = shalt.err (!%p7791_p0)
}
0x494e   : > { %s9677_s4 = sld [smem:[#allocation16_spill]]  ;;  %v5981_v52 = vcvt.f32.s32 %v5975_v22  ;;  %vm5984_vm8 = vcmp.eq.s32.totalorder %v8146_v51, 3  ;;  %s9678_s3 = sld [smem:[#allocation25_spill]]  ;;  %vm5989_vm9 = vcmask 24576  }
0x494f   : > { %7498 = dma.vmem_to_hbm [thread:$0]  (%p7983_p5), %s6008_s25, 16, %s9534_s20, %s5992_s16  }
0x4950   : > { %v5982_v43 = vshll.u32 %v5981_v52, 16 }
0x4954   : > { %s605_s27 = scalar_lea.vmem %s9678_s3, %s9677_s4 }
0x49ce   : > { %v5979_v1 = vpop.xlane.xlu0 %5978 }
0x49cf   : > { %v5980_v54 = vcvt.f32.s32 %v5979_v1 }
0x49d1   : > { %v5983_v9 = vadd.s32 %v5982_v43, %v5980_v54 }
0x49d3   : > { %v5985_v55 = vsel %vm5984_vm8, %v5983_v9, %v9313_v40 }
0x49d4   : > { %5990 = vst.msk [vmem:[%s605_s27] sm:$0x1] %vm5989_vm9, %v5985_v55 }
0x49d5 PF: > { %s9679_s17 = sld [smem:[#allocation10_spill]]  ;;  %s9680_s22 = sld [smem:[#allocation7_spill]] }
0x49db   : > { %p7504_p5 = scmp.ge.s32.totalorder %s9679_s17, 2  ;;  %s6022_s25 = sand.u32 1, %s9680_s22  }
0x49dc   : > { %s6023_s20 = scalar_lea.sflag [#allocation5], %s6022_s25 }
0x49dd   : > { %p7501_p1 = pnand %p7504_p5, %p7987_p6 }
0x49df   : > { %7812 = dma.done.wait (!%p7501_p1), %s6023_s20, 16  }
0x49e0   : > { %7814 = vsyncadd (!%p7501_p1), %s6023_s20, 4294967280  ;;  %s9682_s21 = sld [smem:[#allocation12_spill]]  ;;  %s9683_s0 = sld [smem:[#allocation8_spill]] }
0x49e1   : > { %s9684_s30 = sld [smem:[#allocation9_spill]]  ;;  %s9685_s20 = sld [smem:[#allocation13_spill]] }
0x49e6   : > { %p30_p2 = scmp.ge.s32.totalorder %s9682_s21, 4  }
0x49e8   :  { %32 = sbr.rel (!%p30_p2) target bundleno = 13 (0xd), region = 139 }
0x49ef   :  { %6033 = vsyncpa [#allocation5], 1 }
0x49f0   :  { %6035 = vsyncpa [#allocation5 + $0x1], 1 }

</bundles_post_ra>
